<compile_context>
chip_gen: v7x
topology: tpu7x:2x2x1
jax: 0.10.0
libtpu: 0.0.40
codegen_flags: <defaults>
</compile_context>

<pallas_src>
import math
import numpy as np
import jax
import jax.numpy as jnp
from jax import lax
from jax.experimental import pallas as pl
from jax.experimental.pallas import tpu as pltpu

LN_EPS = 1e-5
DIM_SCALE = 4


# ------------------------------ Pallas kernel -------------------------------
def _expand_norm_kernel(x_ref, w_ref, r_ref, e_ref, g_ref, b_ref, o_ref):
    # x_ref : (N, WC)   f32  - all batch*row pixels, (w, channel) on lanes
    # w_ref : (WC, OC)  bf16 - block-diag expand weight, columns ordered (p1,w,p2,c)
    # r_ref : (OC, G)   f32  - block-diag group-mean reducer (entries 1/c)
    # e_ref : (G, OC)   f32  - block-diag group broadcaster (entries 1)
    # g_ref : (1, OC)   f32  - LayerNorm gamma tiled per group
    # b_ref : (1, OC)   f32  - LayerNorm beta  tiled per group
    # o_ref : (N, OC)   f32  - lane-dense output slab
    xb = x_ref[...].astype(jnp.bfloat16)
    y = jnp.dot(xb, w_ref[...], preferred_element_type=jnp.float32)

    # Group (size c) statistics, kept f32-exact: LN amplifies stat errors by
    # 1/sigma of the group, so bf16-rounded stats would violate the tolerance.
    # Both reductions depend only on y (no mean->var chain); factored R keeps
    # the work O(OC*G) instead of the old dense OC^2 matrix.
    mean_g = jnp.dot(y, r_ref[...], preferred_element_type=jnp.float32,
                     precision=lax.Precision.HIGHEST)
    msq_g = jnp.dot(y * y, r_ref[...], preferred_element_type=jnp.float32,
                    precision=lax.Precision.HIGHEST)
    var_g = jnp.maximum(msq_g - mean_g * mean_g, 0.0)
    inv_g = lax.rsqrt(var_g + LN_EPS)

    # Broadcast per-group scale / shift back to OC lanes (block-diag ones).
    scale = jnp.dot(inv_g, e_ref[...], preferred_element_type=jnp.float32,
                    precision=lax.Precision.HIGHEST)
    shift = jnp.dot(mean_g * inv_g, e_ref[...], preferred_element_type=jnp.float32,
                    precision=lax.Precision.HIGHEST)

    # (y - mean) * inv * gamma + beta  ==  (y*scale - shift) * gamma + beta
    o_ref[...] = (y * scale - shift) * g_ref[...] + b_ref[...]


# --------------------- one-time parameter preprocessing ---------------------
def prepare_params(wt, gamma, beta, H, W, p=DIM_SCALE):
    """Done once at init (kept out of the per-call hot path).

    wt    : (C, p*C)  expand weight stored transposed (y = x @ wt)
    gamma : (C//p,)   LayerNorm weight
    beta  : (C//p,)   LayerNorm bias
    """
    C = wt.shape[0]
    c = C // p
    WC = W * C
    OC = p * WC                      # output columns ordered (p1, w, p2, c)
    G = OC // c                      # number of LayerNorm groups per output row

    # wbig[(w, k), (p1, w', j)] = wt[k, p1*C + j] if w == w' else 0, j = p2*c+cc
    wt3 = wt.astype(jnp.float32).reshape(C, p, C)
    wbig = jnp.einsum('wv,kpj->wkpvj', jnp.eye(W, dtype=jnp.float32), wt3)
    wbig = wbig.reshape(WC, OC).astype(jnp.bfloat16)     # native MXU operand dtype

    # Rank factorisation of the block-diagonal averaging matrix: M = R @ E.
    R = jnp.kron(jnp.eye(G, dtype=jnp.float32),
                 jnp.full((c, 1), 1.0 / c, jnp.float32))          # (OC, G)
    E = jnp.kron(jnp.eye(G, dtype=jnp.float32),
                 jnp.ones((1, c), jnp.float32))                   # (G, OC)

    gamma_t = jnp.tile(gamma.astype(jnp.float32), G).reshape(1, OC)
    beta_t = jnp.tile(beta.astype(jnp.float32), G).reshape(1, OC)
    return wbig, R, E, gamma_t, beta_t


# ------------------------------ forward wrapper ------------------------------
def final_patch_expand2d(x, wbig, R, E, gamma_t, beta_t, p=DIM_SCALE):
    B, H, W, C = x.shape
    c = C // p
    WC = W * C
    OC = p * WC
    G = OC // c
    N = B * H

    x2 = x.reshape(N, WC)            # free row-major reshape

    out = pl.pallas_call(
        _expand_norm_kernel,
        out_shape=jax.ShapeDtypeStruct((N, OC), jnp.float32),
        grid=(1,),                   # single step: whole problem fits VMEM easily
        in_specs=[
            pl.BlockSpec((N, WC), lambda i: (0, 0)),
            pl.BlockSpec((WC, OC), lambda i: (0, 0)),
            pl.BlockSpec((OC, G), lambda i: (0, 0)),
            pl.BlockSpec((G, OC), lambda i: (0, 0)),
            pl.BlockSpec((1, OC), lambda i: (0, 0)),
            pl.BlockSpec((1, OC), lambda i: (0, 0)),
        ],
        out_specs=pl.BlockSpec((N, OC), lambda i: (0, 0)),
        compiler_params=pltpu.CompilerParams(
            dimension_semantics=("arbitrary",)),
    )(x2, wbig, R, E, gamma_t, beta_t)

    # Columns are already (p1, w, p2, c)-ordered -> pure reshape recovers
    # rearrange('b h w (p1 p2 c) -> b (h p1) (w p2) c'); no transpose needed.
    return out.reshape(B, H * p, W * p, c)


# --------------------------- pure-JAX reference ------------------------------
def reference_forward(x, wt, gamma, beta, p=DIM_SCALE):
    """Faithful reference of the PyTorch module.

    Matmul operands are rounded to bf16 to mirror the MXU's native input
    precision used by the kernel (accumulation stays in f32); the rearrange and
    LayerNorm statistics are computed exactly in f32.
    """
    B, H, W, C = x.shape
    c = C // p
    xb = x.astype(jnp.bfloat16).astype(jnp.float32)
    wb = wt.astype(jnp.bfloat16).astype(jnp.float32)
    y = jnp.einsum('bhwk,kd->bhwd', xb, wb)                     # expand (Linear)
    y = y.reshape(B, H, W, p, p, c)
    y = jnp.transpose(y, (0, 1, 3, 2, 4, 5)).reshape(B, H * p, W * p, c)
    mu = jnp.mean(y, axis=-1, keepdims=True)
    var = jnp.mean((y - mu) ** 2, axis=-1, keepdims=True)
    return (y - mu) / jnp.sqrt(var + LN_EPS) * gamma + beta


# ----------------------------------- main ------------------------------------
if __name__ == "__main__":
    key = jax.random.PRNGKey(0)
    kx, kw, kg, kb = jax.random.split(key, 4)

    B, H, W, C = 2, 8, 8, 16         # dim=16, dim_scale=4 -> output (2, 32, 32, 4)
    P = DIM_SCALE

    x = jax.random.normal(kx, (B, H, W, C), jnp.float32)
    # nn.Linear(C, 4*C, bias=False).weight is (4C, C); store it transposed.
    wt = jax.random.normal(kw, (C, P * C), jnp.float32) / math.sqrt(C)
    gamma = 1.0 + 0.1 * jax.random.normal(kg, (C // P,), jnp.float32)
    beta = 0.1 * jax.random.normal(kb, (C // P,), jnp.float32)

    # One-time preprocessing of the weights into the fused-kernel layout.
    wbig, R, E, gamma_t, beta_t = prepare_params(wt, gamma, beta, H, W, P)

    fwd = jax.jit(lambda xx: final_patch_expand2d(xx, wbig, R, E, gamma_t, beta_t, P))
    out = jax.block_until_ready(fwd(x))

    ref = jax.block_until_ready(reference_forward(x, wt, gamma, beta, P))

    assert out.shape == (B, H * P, W * P, C // P)
    assert np.all(np.isfinite(np.asarray(out)))
    np.testing.assert_allclose(np.asarray(out), np.asarray(ref), rtol=2e-3, atol=2e-3)
    print("KERNEL_OK")
</pallas_src>

<mosaic_0001>
module attributes {stable_mosaic.version = 11 : i64} {
  func.func @_expand_norm_kernel(%arg0: i32, %arg1: memref<16x128xf32, #tpu.memory_space<vmem>>, %arg2: memref<128x512xbf16, #tpu.memory_space<vmem>>, %arg3: memref<512x128xf32, #tpu.memory_space<vmem>>, %arg4: memref<128x512xf32, #tpu.memory_space<vmem>>, %arg5: memref<1x512xf32, #tpu.memory_space<vmem>>, %arg6: memref<1x512xf32, #tpu.memory_space<vmem>>, %arg7: memref<16x512xf32, #tpu.memory_space<vmem>>) attributes {dimension_semantics = [#tpu.dimension_semantics<arbitrary>], iteration_bounds = array<i64: 1>, scalar_prefetch = 0 : i64, scratch_operands = 0 : i64, tpu.core_type = #tpu.core_type<tc>, window_params = [{pipeline_mode = #tpu.pipeline_mode<synchronous>, transform_indices = @transform_0, window_bounds = array<i64: 16, 128>}, {pipeline_mode = #tpu.pipeline_mode<synchronous>, transform_indices = @transform_1, window_bounds = array<i64: 128, 512>}, {pipeline_mode = #tpu.pipeline_mode<synchronous>, transform_indices = @transform_2, window_bounds = array<i64: 512, 128>}, {pipeline_mode = #tpu.pipeline_mode<synchronous>, transform_indices = @transform_3, window_bounds = array<i64: 128, 512>}, {pipeline_mode = #tpu.pipeline_mode<synchronous>, transform_indices = @transform_4, window_bounds = array<i64: 1, 512>}, {pipeline_mode = #tpu.pipeline_mode<synchronous>, transform_indices = @transform_5, window_bounds = array<i64: 1, 512>}, {pipeline_mode = #tpu.pipeline_mode<synchronous>, transform_indices = @transform_6, window_bounds = array<i64: 16, 512>}]} {
    %c0 = arith.constant 0 : index
    %c0_0 = arith.constant 0 : index
    %0 = vector.load %arg1[%c0, %c0_0] : memref<16x128xf32, #tpu.memory_space<vmem>>, vector<16x128xf32>
    %1 = arith.truncf %0 : vector<16x128xf32> to vector<16x128xbf16>
    %c0_1 = arith.constant 0 : index
    %c0_2 = arith.constant 0 : index
    %2 = vector.load %arg2[%c0_1, %c0_2] : memref<128x512xbf16, #tpu.memory_space<vmem>>, vector<128x512xbf16>
    %cst = arith.constant dense<0.000000e+00> : vector<16x512xf32>
    %3 = tpu.matmul %1, %2, %cst {dimension_numbers = #tpu.dot_dimension_numbers<[1], [0], [0], [1], [0, 0, 1, 1], [], []>} : vector<16x128xbf16>, vector<128x512xbf16>, vector<16x512xf32> -> vector<16x512xf32>
    %c0_3 = arith.constant 0 : index
    %c0_4 = arith.constant 0 : index
    %4 = vector.load %arg3[%c0_3, %c0_4] : memref<512x128xf32, #tpu.memory_space<vmem>>, vector<512x128xf32>
    %cst_5 = arith.constant dense<0.000000e+00> : vector<16x128xf32>
    %5 = tpu.matmul %3, %4, %cst_5 {dimension_numbers = #tpu.dot_dimension_numbers<[1], [0], [0], [1], [0, 0, 1, 1], [], []>, precision = #tpu.contract_precision<fp32>} : vector<16x512xf32>, vector<512x128xf32>, vector<16x128xf32> -> vector<16x128xf32>
    %6 = arith.mulf %3, %3 : vector<16x512xf32>
    %c0_6 = arith.constant 0 : index
    %c0_7 = arith.constant 0 : index
    %7 = vector.load %arg3[%c0_6, %c0_7] : memref<512x128xf32, #tpu.memory_space<vmem>>, vector<512x128xf32>
    %cst_8 = arith.constant dense<0.000000e+00> : vector<16x128xf32>
    %8 = tpu.matmul %6, %7, %cst_8 {dimension_numbers = #tpu.dot_dimension_numbers<[1], [0], [0], [1], [0, 0, 1, 1], [], []>, precision = #tpu.contract_precision<fp32>} : vector<16x512xf32>, vector<512x128xf32>, vector<16x128xf32> -> vector<16x128xf32>
    %9 = arith.mulf %5, %5 : vector<16x128xf32>
    %10 = arith.subf %8, %9 : vector<16x128xf32>
    %cst_9 = arith.constant 0.000000e+00 : f32
    %11 = vector.broadcast %cst_9 : f32 to vector<16x128xf32>
    %12 = arith.maximumf %10, %11 : vector<16x128xf32>
    %cst_10 = arith.constant 9.99999974E-6 : f32
    %13 = vector.broadcast %cst_10 : f32 to vector<16x128xf32>
    %14 = arith.addf %12, %13 : vector<16x128xf32>
    %15 = math.rsqrt %14 : vector<16x128xf32>
    %c0_11 = arith.constant 0 : index
    %c0_12 = arith.constant 0 : index
    %16 = vector.load %arg4[%c0_11, %c0_12] : memref<128x512xf32, #tpu.memory_space<vmem>>, vector<128x512xf32>
    %cst_13 = arith.constant dense<0.000000e+00> : vector<16x512xf32>
    %17 = tpu.matmul %15, %16, %cst_13 {dimension_numbers = #tpu.dot_dimension_numbers<[1], [0], [0], [1], [0, 0, 1, 1], [], []>, precision = #tpu.contract_precision<fp32>} : vector<16x128xf32>, vector<128x512xf32>, vector<16x512xf32> -> vector<16x512xf32>
    %18 = arith.mulf %5, %15 : vector<16x128xf32>
    %c0_14 = arith.constant 0 : index
    %c0_15 = arith.constant 0 : index
    %19 = vector.load %arg4[%c0_14, %c0_15] : memref<128x512xf32, #tpu.memory_space<vmem>>, vector<128x512xf32>
    %cst_16 = arith.constant dense<0.000000e+00> : vector<16x512xf32>
    %20 = tpu.matmul %18, %19, %cst_16 {dimension_numbers = #tpu.dot_dimension_numbers<[1], [0], [0], [1], [0, 0, 1, 1], [], []>, precision = #tpu.contract_precision<fp32>} : vector<16x128xf32>, vector<128x512xf32>, vector<16x512xf32> -> vector<16x512xf32>
    %21 = arith.mulf %3, %17 : vector<16x512xf32>
    %22 = arith.subf %21, %20 : vector<16x512xf32>
    %c0_17 = arith.constant 0 : index
    %c0_18 = arith.constant 0 : index
    %23 = vector.load %arg5[%c0_17, %c0_18] : memref<1x512xf32, #tpu.memory_space<vmem>>, vector<1x512xf32>
    %24 = vector.broadcast %23 : vector<1x512xf32> to vector<16x512xf32>
    %25 = arith.mulf %22, %24 : vector<16x512xf32>
    %c0_19 = arith.constant 0 : index
    %c0_20 = arith.constant 0 : index
    %26 = vector.load %arg6[%c0_19, %c0_20] : memref<1x512xf32, #tpu.memory_space<vmem>>, vector<1x512xf32>
    %27 = vector.broadcast %26 : vector<1x512xf32> to vector<16x512xf32>
    %28 = arith.addf %25, %27 : vector<16x512xf32>
    %c0_21 = arith.constant 0 : index
    %c0_22 = arith.constant 0 : index
    %29 = vector.load %arg7[%c0_21, %c0_22] : memref<16x512xf32, #tpu.memory_space<vmem>>, vector<16x512xf32>
    tpu.vector_store %arg7[%c0_21, %c0_22], %28 {strides = array<i32>} : memref<16x512xf32, #tpu.memory_space<vmem>>, vector<16x512xf32>,
    return
  }
  func.func @transform_0(%arg0: i32) -> (i32, i32) {
    %c0_i32 = arith.constant 0 : i32
    %c0_i32_0 = arith.constant 0 : i32
    %c0_i32_1 = arith.constant 0 : i32
    return %c0_i32, %c0_i32_0 : i32, i32
  }
  func.func @transform_1(%arg0: i32) -> (i32, i32) {
    %c0_i32 = arith.constant 0 : i32
    %c0_i32_0 = arith.constant 0 : i32
    %c0_i32_1 = arith.constant 0 : i32
    return %c0_i32, %c0_i32_0 : i32, i32
  }
  func.func @transform_2(%arg0: i32) -> (i32, i32) {
    %c0_i32 = arith.constant 0 : i32
    %c0_i32_0 = arith.constant 0 : i32
    %c0_i32_1 = arith.constant 0 : i32
    return %c0_i32, %c0_i32_0 : i32, i32
  }
  func.func @transform_3(%arg0: i32) -> (i32, i32) {
    %c0_i32 = arith.constant 0 : i32
    %c0_i32_0 = arith.constant 0 : i32
    %c0_i32_1 = arith.constant 0 : i32
    return %c0_i32, %c0_i32_0 : i32, i32
  }
  func.func @transform_4(%arg0: i32) -> (i32, i32) {
    %c0_i32 = arith.constant 0 : i32
    %c0_i32_0 = arith.constant 0 : i32
    %c0_i32_1 = arith.constant 0 : i32
    return %c0_i32, %c0_i32_0 : i32, i32
  }
  func.func @transform_5(%arg0: i32) -> (i32, i32) {
    %c0_i32 = arith.constant 0 : i32
    %c0_i32_0 = arith.constant 0 : i32
    %c0_i32_1 = arith.constant 0 : i32
    return %c0_i32, %c0_i32_0 : i32, i32
  }
  func.func @transform_6(%arg0: i32) -> (i32, i32) {
    %c0_i32 = arith.constant 0 : i32
    %c0_i32_0 = arith.constant 0 : i32
    %c0_i32_1 = arith.constant 0 : i32
    return %c0_i32, %c0_i32_0 : i32, i32
  }
}

</mosaic_0001>

<bundles_post_ra>
// kernel: _lambda_.1
= control target key start
LH: loop header
LB: loop body
LE: loop exit
PB: predicated region body
PF: predicated region fallthrough
CT: control target
= control target key end

     0   :  { %11 = vsyncpa [#allocation3], 0  ;;  %s10485_s21 = smov [#allocation2]   ;;  %s14567_s0 = inlined_call_operand.vmem [shape: f32[16,128], index: 0, kind: input, shape index: {}]   ;;  %s14568_s1 = inlined_call_operand.vmem [shape: bf16[128,512], index: 1, kind: input, shape index: {}]   ;;  %s14569_s2 = inlined_call_operand.hbm [shape: f32[512,128], index: 2, kind: input, shape index: {}]   ;;  %s14570_s3 = inlined_call_operand.vmem [shape: f32[128,512], index: 3, kind: input, shape index: {}]   ;;  %s14571_s4 = inlined_call_operand.vmem [shape: f32[1,512], index: 4, kind: input, shape index: {}]   ;;  %s14572_s5 = inlined_call_operand.vmem [shape: f32[1,512], index: 5, kind: input, shape index: {}]   ;;  %s14573_s6 = inlined_call_operand.vmem [shape: f32[16,512], index: 6, kind: output, shape index: {}]  }
   0x1   :  { %s21_s22 = sshll.u32 %s10485_s21, 4  ;;  %s10461_s25 = scalar_lea.hbm %s14569_s2, 8192  ;;  %s22_s22 = int_to_ptr.vmem [resolvable:$true] %s21_s22 }
   0x2   :  { %p10462_p0 = scmp.ne.s32.totalorder %s14569_s2, %s10461_s25  ;;  %p10465_p1 = scmp.lt.u32.totalorder %s10461_s25, %s14569_s2 }
   0x4   :  { %p10467_p2 = pnand %p10465_p1, %p10462_p0 }
   0x6   :  { %10470 = shalt.err (!%p10467_p2)
}
   0x7   :  { %s10471_s30 = scalar_lea.vmem %s22_s22, 8192  ;;  %p10476_p4 = scmp.lt.s32.totalorder %s22_s22, %s22_s22 }
   0x8   :  { %p10472_p3 = scmp.ne.s32.totalorder %s22_s22, %s10471_s30  ;;  %p10477_p5 = scmp.lt.s32.totalorder %s10471_s30, %s10471_s30 }
   0xa   :  { %p10478_p6 = por %p10477_p5, %p10476_p4 }
   0xc   :  { %p10479_p7 = pnand %p10478_p6, %p10472_p3 }
   0xe   :  { %10482 = shalt.err (!%p10479_p7)
}
   0xf   :  { %s10486_s7 = smov 128   ;;  %s10487_s8 = smov 8  }
  0x10   :  { %27 = dma.hbm_to_vmem [thread:$0]  %s14569_s2, 8192, %s22_s22, [#allocation3], %s10486_s7, %s10486_s7, %s10487_s8  }
  0x11   :  { %10483 = dma.done.wait [#allocation3], 8192  }
  0x12   :  { %10484 = vsyncadd [#allocation3], 4294959104  ;;  %v10488_v0 = vmov 0   ;;  %v10409_v1 = vld [vmem:[%s14568_s1 + $0x4] ss:$16 sps:$4 sm:$0xff]   ;;  %v39_v23 = vld [vmem:[%s14567_s0 + $0x8] sm:$0xff] }
  0x13   :  { %265 = vmatprep.mubr.bf16.mxu0 %v10488_v0  ;;  %308 = vmatprep.mubr.bf16.mxu1 %v10488_v0  ;;  %v10411_v2 = vld [vmem:[%s14568_s1] ss:$16 sps:$4 sm:$0xff]   ;;  %v10412_v3 = vld [vmem:[%s14568_s1 + $0x24] ss:$16 sps:$4 sm:$0xff]   ;;  %v10433_v10 = vld [vmem:[%s14568_s1 + $0xc] ss:$16 sps:$4 sm:$0xff]  }
  0x14   :  { %233 = vmatprep.subr.bf16.mxu0 %v10409_v1  ;;  %v10414_v4 = vld [vmem:[%s14568_s1 + $0x20] ss:$16 sps:$4 sm:$0xff]   ;;  %v10415_v5 = vld [vmem:[%s14568_s1 + $0x44] ss:$16 sps:$4 sm:$0xff]   ;;  %v10435_v11 = vld [vmem:[%s14568_s1 + $0x8] ss:$16 sps:$4 sm:$0xff]   ;;  %276 = vmatprep.subr.bf16.mxu1 %v10433_v10 }
  0x15   :  { %234 = vmatpush1.bf16.msra.mxu0 %v10411_v2  ;;  %v10417_v6 = vld [vmem:[%s14568_s1 + $0x40] ss:$16 sps:$4 sm:$0xff]   ;;  %v10418_v7 = vld [vmem:[%s14568_s1 + $0x64] ss:$16 sps:$4 sm:$0xff]   ;;  %v10436_v12 = vld [vmem:[%s14568_s1 + $0x2c] ss:$16 sps:$4 sm:$0xff]   ;;  %277 = vmatpush1.bf16.msra.mxu1 %v10435_v11 }
  0x16   :  { %235 = vmatprep.subr.bf16.mxu0 %v10412_v3  ;;  %v10420_v8 = vld [vmem:[%s14568_s1 + $0x60] ss:$16 sps:$4 sm:$0xff]   ;;  %v10421_v9 = vld [vmem:[%s14568_s1 + $0x84] ss:$16 sps:$4 sm:$0xff]   ;;  %v10438_v14 = vld [vmem:[%s14568_s1 + $0x28] ss:$16 sps:$4 sm:$0xff]   ;;  %278 = vmatprep.subr.bf16.mxu1 %v10436_v12 }
  0x17   :  { %v10423_v13 = vld [vmem:[%s14568_s1 + $0x80] ss:$16 sps:$4 sm:$0xff]   ;;  %v10424_v15 = vld [vmem:[%s14568_s1 + $0xa4] ss:$16 sps:$4 sm:$0xff]   ;;  %v10439_v16 = vld [vmem:[%s14568_s1 + $0x4c] ss:$16 sps:$4 sm:$0xff]  }
  0x18   :  { %v10426_v17 = vld [vmem:[%s14568_s1 + $0xa0] ss:$16 sps:$4 sm:$0xff]   ;;  %v10427_v18 = vld [vmem:[%s14568_s1 + $0xc4] ss:$16 sps:$4 sm:$0xff]   ;;  %v10441_v19 = vld [vmem:[%s14568_s1 + $0x48] ss:$16 sps:$4 sm:$0xff]  }
  0x19   :  { %236 = vmatpush1.bf16.msra.mxu0 %v10414_v4  ;;  %279 = vmatpush1.bf16.msra.mxu1 %v10438_v14  ;;  %v38_v20 = vld [vmem:[%s14567_s0] sm:$0xff]  ;;  %v10442_v21 = vld [vmem:[%s14568_s1 + $0x6c] ss:$16 sps:$4 sm:$0xff]   ;;  %v10444_v24 = vld [vmem:[%s14568_s1 + $0x68] ss:$16 sps:$4 sm:$0xff]  }
  0x1a   :  { %237 = vmatprep.subr.bf16.mxu0 %v10415_v5  ;;  %280 = vmatprep.subr.bf16.mxu1 %v10439_v16  ;;  %v10429_v22 = vld [vmem:[%s14568_s1 + $0xc0] ss:$16 sps:$4 sm:$0xff]   ;;  %v10430_v25 = vld [vmem:[%s14568_s1 + $0xe4] ss:$16 sps:$4 sm:$0xff]   ;;  %v336_v27 = vld [vmem:[#allocation2 + $0x88] sm:$0xff]  ;;  %v10623_v40 = vpack.c.bf16 %v39_v23, %v38_v20 }
  0x1b   :  { %v335_v26 = vld [vmem:[#allocation2 + $0x80] sm:$0xff]  ;;  %v435_v30 = vand.u32 4294901760, %v336_v27  ;;  %v10614_v31 = vld [vmem:[#allocation2 + $0x8] sm:$0xff]  ;;  %v337_v33 = vld [vmem:[#allocation2 + $0x90] sm:$0xff] }
  0x1c   :  { %v10612_v28 = vld [vmem:[#allocation2] sm:$0xff]  ;;  %v432_v29 = vand.u32 4294901760, %v335_v26  ;;  %v338_v34 = vld [vmem:[#allocation2 + $0x98] sm:$0xff]  ;;  %v387_v36 = vand.u32 4294901760, %v10614_v31  ;;  %v438_v37 = vand.u32 4294901760, %v337_v33  ;;  %v10621_v39 = vld [vmem:[#allocation2 + $0x10] sm:$0xff] }
  0x1d   :  { %238 = vmatpush1.bf16.msra.mxu0 %v10417_v6  ;;  %281 = vmatpush1.bf16.msra.mxu1 %v10441_v19  ;;  %v384_v32 = vand.u32 4294901760, %v10612_v28  ;;  %v10445_v35 = vld [vmem:[%s14568_s1 + $0x8c] ss:$16 sps:$4 sm:$0xff]   ;;  %v441_v38 = vand.u32 4294901760, %v338_v34  ;;  %v10627_v42 = vsub.f32 %v336_v27, %v435_v30  ;;  %v10432_v45 = vld [vmem:[%s14568_s1 + $0xe0] ss:$16 sps:$4 sm:$0xff]  }
  0x1e   :  { %239 = vmatprep.subr.bf16.mxu0 %v10418_v7  ;;  %282 = vmatprep.subr.bf16.mxu1 %v10442_v21  ;;  %v10625_v41 = vsub.f32 %v335_v26, %v432_v29  ;;  %v10634_v44 = vld [vmem:[#allocation2 + $0x18] sm:$0xff]  ;;  %v10639_v46 = vpack.c.bf16 %v435_v30, %v432_v29  ;;  %v10644_v47 = vsub.f32 %v10614_v31, %v387_v36  ;;  %v390_v54 = vand.u32 4294901760, %v10621_v39  ;;  %v339_v4 = vld [vmem:[#allocation2 + $0xa0] sm:$0xff]  ;;  %v340_v5 = vld [vmem:[#allocation2 + $0xa8] sm:$0xff] }
  0x1f   :  { %v10632_v43 = vsub.f32 %v10612_v28, %v384_v32  ;;  %v10646_v48 = vsub.f32 %v337_v33, %v438_v37  ;;  %v10648_v49 = vsub.f32 %v338_v34, %v441_v38  ;;  %v10447_v50 = vld [vmem:[%s14568_s1 + $0x88] ss:$16 sps:$4 sm:$0xff]   ;;  %v14592_v52 = vand.u32 4294901760, %v10627_v42  ;;  %v10448_v55 = vld [vmem:[%s14568_s1 + $0xac] ss:$16 sps:$4 sm:$0xff]   ;;  %v10702_v20 = vld [vmem:[#allocation2 + $0x20] sm:$0xff] }
  0x20   :  { %15188 = vst [vmem:[#allocation5_spill] sm:$0xff] %v10639_v46  ;;  %v14594_v51 = vand.u32 4294901760, %v10625_v41  ;;  %v14589_v56 = vand.u32 4294901760, %v10644_v47  ;;  %v393_v59 = vand.u32 4294901760, %v10634_v44  ;;  %v10674_v63 = vsub.f32 %v10621_v39, %v390_v54  ;;  %v10450_v6 = vld [vmem:[%s14568_s1 + $0xa8] ss:$16 sps:$4 sm:$0xff]  }
  0x21   :  { %240 = vmatpush1.bf16.msra.mxu0 %v10420_v8  ;;  %283 = vmatpush1.bf16.msra.mxu1 %v10444_v24  ;;  %v14590_v53 = vand.u32 4294901760, %v10632_v43  ;;  %v14586_v57 = vand.u32 4294901760, %v10646_v48  ;;  %v14585_v58 = vand.u32 4294901760, %v10648_v49  ;;  %v633_v61 = vsub.f32 %v10627_v42, %v14592_v52  ;;  %v10451_v11 = vld [vmem:[%s14568_s1 + $0xcc] ss:$16 sps:$4 sm:$0xff]  }
  0x22   :  { %241 = vmatprep.subr.bf16.mxu0 %v10421_v9  ;;  %284 = vmatprep.subr.bf16.mxu1 %v10445_v35  ;;  %v626_v60 = vsub.f32 %v10625_v41, %v14594_v51  ;;  %v521_v0 = vsub.f32 %v10644_v47, %v14589_v56  ;;  %v10686_v3 = vsub.f32 %v10634_v44, %v393_v59  ;;  %v14584_v10 = vand.u32 4294901760, %v10674_v63  ;;  %v10704_v21 = vld [vmem:[#allocation2 + $0x28] sm:$0xff]  ;;  %v342_v27 = vld [vmem:[#allocation2 + $0xb8] sm:$0xff] }
  0x23   :  { %v514_v62 = vsub.f32 %v10632_v43, %v14590_v53  ;;  %v640_v1 = vsub.f32 %v10646_v48, %v14586_v57  ;;  %v647_v2 = vsub.f32 %v10648_v49, %v14585_v58  ;;  %v634_v8 = vand.u32 4294901760, %v633_v61  ;;  %v10453_v29 = vld [vmem:[%s14568_s1 + $0xc8] ss:$16 sps:$4 sm:$0xff]   ;;  %v10454_v28 = vld [vmem:[%s14568_s1 + $0xec] ss:$16 sps:$4 sm:$0xff]  }
  0x24   :  { %v627_v7 = vand.u32 4294901760, %v626_v60  ;;  %v522_v12 = vand.u32 4294901760, %v521_v0  ;;  %v447_v19 = vand.u32 4294901760, %v340_v5  ;;  %v10718_v26 = vpack.c.bf16 %v387_v36, %v384_v32  ;;  %v10752_v0 = vld [vmem:[#allocation2 + $0x38] sm:$0xff] }
  0x25   :  { %242 = vmatpush1.bf16.msra.mxu0 %v10423_v13  ;;  %285 = vmatpush1.bf16.msra.mxu1 %v10447_v50  ;;  %v515_v9 = vand.u32 4294901760, %v514_v62  ;;  %v10695_v13 = vpack.c.bf16 %v441_v38, %v438_v37  ;;  %v641_v14 = vand.u32 4294901760, %v640_v1  ;;  %v648_v16 = vand.u32 4294901760, %v647_v2  ;;  %v10740_v50 = vld [vmem:[#allocation2 + $0x30] sm:$0xff] }
  0x26   :  { %243 = vmatprep.subr.bf16.mxu0 %v10424_v15  ;;  %286 = vmatprep.subr.bf16.mxu1 %v10448_v55  ;;  %v14583_v15 = vand.u32 4294901760, %v10686_v3  ;;  %v10707_v23 = vpack.c.bf16 %v634_v8, %v627_v7  ;;  %15192 = vst [vmem:[#allocation9_spill] sm:$0xff] %v10718_v26  ;;  %v10727_v35 = vsub.f32 %v340_v5, %v447_v19  ;;  %v396_v32 = vand.u32 4294901760, %v10702_v20 }
  0x27   :  { %15189 = vst [vmem:[#allocation6_spill] sm:$0xff] %v10695_v13  ;;  %v10709_v24 = vpack.c.bf16 %v522_v12, %v515_v9  ;;  %v399_v36 = vand.u32 4294901760, %v10704_v21  ;;  %v453_v44 = vand.u32 4294901760, %v342_v27  ;;  %v10742_v55 = vpack.c.bf16 %v648_v16, %v641_v14  ;;  %v343_v9 = vld [vmem:[#allocation2 + $0xc0] sm:$0xff] }
  0x28   :  { %15190 = vst [vmem:[#allocation7_spill] sm:$0xff] %v10707_v23  ;;  %v14580_v39 = vand.u32 4294901760, %v10727_v35  ;;  %v10745_v60 = vsub.f32 %v10702_v20, %v396_v32  ;;  %v402_v8 = vand.u32 4294901760, %v10740_v50  ;;  %v405_v16 = vand.u32 4294901760, %v10752_v0 }
  0x29   :  { %244 = vmatpush1.bf16.msra.mxu0 %v10426_v17  ;;  %v528_v17 = vsub.f32 %v10674_v63, %v14584_v10  ;;  %15191 = vst [vmem:[#allocation8_spill] sm:$0xff] %v10709_v24  ;;  %287 = vmatpush1.bf16.msra.mxu1 %v10450_v6  ;;  %15195 = vst [vmem:[#allocation12_spill] sm:$0xff] %v10742_v55  ;;  %v10748_v61 = vsub.f32 %v10704_v21, %v399_v36  ;;  %v344_v21 = vld [vmem:[#allocation2 + $0xc8] sm:$0xff] }
  0x2a   :  { %245 = vmatprep.subr.bf16.mxu0 %v10427_v18  ;;  %v444_v18 = vand.u32 4294901760, %v339_v4  ;;  %288 = vmatprep.subr.bf16.mxu1 %v10451_v11  ;;  %v661_v2 = vsub.f32 %v10727_v35, %v14580_v39  ;;  %v14579_v5 = vand.u32 4294901760, %v10745_v60  ;;  %v10785_v20 = vsub.f32 %v10740_v50, %v402_v8  ;;  %v10843_v39 = vld [vmem:[#allocation2 + $0x50] sm:$0xff] }
  0x2b   :  { %v529_v30 = vand.u32 4294901760, %v528_v17  ;;  %v14578_v6 = vand.u32 4294901760, %v10748_v61 }
  0x2c   :  { %v10723_v33 = vpack.c.bf16 %v447_v19, %v444_v18  ;;  %v10725_v34 = vsub.f32 %v339_v4, %v444_v18  ;;  %v10765_v4 = vsub.f32 %v342_v27, %v453_v44  ;;  %v662_v12 = vand.u32 4294901760, %v661_v2 }
  0x2d   :  { %246 = vmatpush1.bf16.msra.mxu0 %v10429_v22  ;;  %v341_v22 = vld [vmem:[#allocation2 + $0xb0] sm:$0xff]  ;;  %289 = vmatpush1.bf16.msra.mxu1 %v10453_v29  ;;  %v542_v17 = vsub.f32 %v10745_v60, %v14579_v5  ;;  %v549_v18 = vsub.f32 %v10748_v61, %v14578_v6  ;;  %v10793_v27 = vsub.f32 %v10752_v0, %v405_v16  ;;  %v456_v29 = vand.u32 4294901760, %v343_v9 }
  0x2e   :  { %247 = vmatprep.subr.bf16.mxu0 %v10430_v25  ;;  %v535_v25 = vsub.f32 %v10686_v3, %v14583_v15  ;;  %15193 = vst [vmem:[#allocation10_spill] sm:$0xff] %v10723_v33  ;;  %v450_v37 = vand.u32 4294901760, %v341_v22  ;;  %v14581_v38 = vand.u32 4294901760, %v10725_v34  ;;  %290 = vmatprep.subr.bf16.mxu1 %v10454_v28  ;;  %v14574_v14 = vand.u32 4294901760, %v10765_v4 }
  0x2f   :  { %v550_v50 = vand.u32 4294901760, %v549_v18  ;;  %v10802_v2 = vsub.f32 %v343_v9, %v456_v29  ;;  %v345_v18 = vld [vmem:[#allocation2 + $0xd0] sm:$0xff]  ;;  %v10841_v5 = vpack.c.bf16 %v405_v16, %v402_v8 }
  0x30   :  { %v536_v31 = vand.u32 4294901760, %v535_v25  ;;  %v10750_v62 = vsub.f32 %v341_v22, %v450_v37  ;;  %v654_v1 = vsub.f32 %v10725_v34, %v14581_v38  ;;  %v10787_v22 = vpack.c.bf16 %v453_v44, %v450_v37  ;;  %v10847_v38 = vld [vmem:[#allocation2 + $0xe0] sm:$0xff] }
  0x31   :  { %248 = vmatpush1.bf16.msra.mxu0 %v10432_v45  ;;  %v10738_v45 = vpack.c.bf16 %v393_v59, %v390_v54  ;;  %v10456_v54 = vld [vmem:[%s14568_s1 + $0xe8] ss:$16 sps:$4 sm:$0xff]   ;;  %v675_v25 = vsub.f32 %v10765_v4, %v14574_v14  ;;  %v14577_v44 = vand.u32 4294901760, %v10793_v27  ;;  %15202 = vst [vmem:[#allocation19_spill] sm:$0xff] %v10841_v5 }
  0x32   :  { %8789 = vmatprep.subr.bf16.mxu0 %v10639_v46  ;;  %v10757_v59 = vpack.c.bf16 %v536_v31, %v529_v30  ;;  %v14575_v7 = vand.u32 4294901760, %v10750_v62  ;;  %v655_v11 = vand.u32 4294901760, %v654_v1  ;;  %291 = vmatpush1.bf16.msra.mxu1 %v10456_v54  ;;  %15197 = vst [vmem:[#allocation14_spill] sm:$0xff] %v10787_v22  ;;  %v10795_v30 = vld [vmem:[#allocation2 + $0x40] sm:$0xff]  ;;  %v543_v31 = vand.u32 4294901760, %v542_v17  ;;  %v10804_v14 = vld [vmem:[#allocation2 + $0x48] sm:$0xff] }
  0x33   :  { %15194 = vst [vmem:[#allocation11_spill] sm:$0xff] %v10738_v45  ;;  %8821 = vmatprep.subr.bf16.mxu1 %v10707_v23  ;;  %v14576_v54 = vand.u32 4294901760, %v10785_v20  ;;  %v459_v1 = vand.u32 4294901760, %v344_v21  ;;  %v676_v0 = vand.u32 4294901760, %v675_v25  ;;  %v14597_v17 = vand.u32 4294901760, %v10795_v30 }
  0x34   :  { %266 = vmatmul.mubr.bf16.vlgmr.msra.gmra.mrb[0].mxu0 %v10623_v40  ;;  %15196 = vst [vmem:[#allocation13_spill] sm:$0xff] %v10757_v59  ;;  %v668_v19 = vsub.f32 %v10750_v62, %v14575_v7  ;;  %v10798_v28 = vpack.c.bf16 %v662_v12, %v655_v11  ;;  %v10810_v12 = vpack.c.bf16 %v399_v36, %v396_v32  ;;  %v14582_v25 = vand.u32 4294901760, %v10802_v2 }
  0x35   :  { %8791 = vmatpush3.bf16.msra.mxu0 %v10718_v26  ;;  %309 = vmatmul.mubr.bf16.vlgmr.msra.gmra.mrb[0].mxu1 %v10623_v40  ;;  %v556_v11 = vsub.f32 %v10785_v20, %v14576_v54  ;;  %v10814_v7 = vpack.c.bf16 %v550_v50, %v543_v31  ;;  %v563_v9 = vsub.f32 %v10793_v27, %v14577_v44  ;;  %v411_v54 = vand.u32 4294901760, %v10804_v14 }
  0x36   :  { %8793 = vmatprep.subr.bf16.mxu0 %v10695_v13  ;;  %15198 = vst [vmem:[#allocation15_spill] sm:$0xff] %v10798_v28  ;;  %v669_v37 = vand.u32 4294901760, %v668_v19  ;;  %15199 = vst [vmem:[#allocation16_spill] sm:$0xff] %v10810_v12  ;;  %v346_v19 = vld [vmem:[#allocation2 + $0xd8] sm:$0xff]  ;;  %8823 = vmatpush3.bf16.msra.mxu1 %v10709_v24  ;;  %v10819_v40 = vpack.c.bf16 %v459_v1, %v456_v29  ;;  %v10823_v36 = vsub.f32 %v344_v21, %v459_v1 }
  0x37   :  { %15200 = vst [vmem:[#allocation17_spill] sm:$0xff] %v10814_v7  ;;  %8825 = vmatprep.subr.bf16.mxu1 %v10742_v55  ;;  %v557_v32 = vand.u32 4294901760, %v556_v11  ;;  %v10830_v31 = vsub.f32 %v10795_v30, %v14597_v17  ;;  %v564_v50 = vand.u32 4294901760, %v563_v9  ;;  %v682_v29 = vsub.f32 %v10802_v2, %v14582_v25  ;;  %v10845_v9 = vld [vmem:[#allocation2 + $0x58] sm:$0xff] }
  0x38   :  { %15201 = vst [vmem:[#allocation18_spill] sm:$0xff] %v10819_v40  ;;  %v462_v44 = vand.u32 4294901760, %v345_v18  ;;  %v465_v11 = vand.u32 4294901760, %v346_v19  ;;  %v14588_v21 = vand.u32 4294901760, %v10823_v36  ;;  %v10839_v6 = vsub.f32 %v10804_v14, %v411_v54 }
  0x39   :  { %8795 = vmatpush3.bf16.msra.mxu0 %v10738_v45  ;;  %v14587_v1 = vand.u32 4294901760, %v10830_v31  ;;  %v10850_v25 = vpack.c.bf16 %v676_v0, %v669_v37  ;;  %v10852_v15 = vpack.c.bf16 %v564_v50, %v557_v32  ;;  %v683_v10 = vand.u32 4294901760, %v682_v29  ;;  %v10867_v37 = vld [vmem:[#allocation2 + $0xe8] sm:$0xff] }
  0x3a   :  { %8797 = vmatprep.subr.bf16.mxu0 %v10723_v33  ;;  %8827 = vmatpush3.bf16.msra.mxu1 %v10757_v59  ;;  %v10854_v58 = vsub.f32 %v345_v18, %v462_v44  ;;  %v689_v8 = vsub.f32 %v10823_v36, %v14588_v21  ;;  %v14591_v16 = vand.u32 4294901760, %v10839_v6  ;;  %v10864_v57 = vsub.f32 %v346_v19, %v465_v11 }
  0x3b   :  { %15203 = vst [vmem:[#allocation20_spill] sm:$0xff] %v10850_v25  ;;  %15204 = vst [vmem:[#allocation21_spill] sm:$0xff] %v10852_v15  ;;  %8829 = vmatprep.subr.bf16.mxu1 %v10798_v28  ;;  %v570_v14 = vsub.f32 %v10830_v31, %v14587_v1  ;;  %v14595_v18 = vand.u32 4294901760, %v10843_v39  ;;  %v14596_v32 = vand.u32 4294901760, %v10845_v9  ;;  %v14601_v50 = vand.u32 4294901760, %v10847_v38 }
  0x3c   :  { %v14593_v0 = vand.u32 4294901760, %v10854_v58  ;;  %v690_v29 = vand.u32 4294901760, %v689_v8  ;;  %v577_v19 = vsub.f32 %v10839_v6, %v14591_v16  ;;  %v14599_v21 = vand.u32 4294901760, %v10864_v57 }
  0x3d   :  { %8799 = vmatpush3.bf16.msra.mxu0 %v10810_v12  ;;  %v571_v1 = vand.u32 4294901760, %v570_v14  ;;  %v10885_v53 = vsub.f32 %v10843_v39, %v14595_v18  ;;  %v10890_v8 = vsub.f32 %v10845_v9, %v14596_v32  ;;  %v10902_v51 = vsub.f32 %v10847_v38, %v14601_v50  ;;  %v10904_v18 = vld [vmem:[#allocation2 + $0x60] sm:$0xff] }
  0x3e   :  { %8801 = vmatprep.subr.bf16.mxu0 %v10787_v22  ;;  %8831 = vmatpush3.bf16.msra.mxu1 %v10814_v7  ;;  %v696_v56 = vsub.f32 %v10854_v58, %v14593_v0  ;;  %v10894_v16 = vpack.c.bf16 %v690_v29, %v683_v10  ;;  %v578_v52 = vand.u32 4294901760, %v577_v19  ;;  %v703_v0 = vsub.f32 %v10864_v57, %v14599_v21  ;;  %v10910_v29 = vld [vmem:[#allocation2 + $0x68] sm:$0xff] }
  0x3f   :  { %15205 = vst [vmem:[#allocation22_spill] sm:$0xff] %v10885_v53  ;;  %15206 = vst [vmem:[#allocation23_spill] sm:$0xff] %v10890_v8  ;;  %8833 = vmatprep.subr.bf16.mxu1 %v10850_v25  ;;  %v10906_v32 = vpack.c.bf16 %v465_v11, %v462_v44  ;;  %v14602_v14 = vand.u32 4294901760, %v10885_v53  ;;  %v14605_v10 = vand.u32 4294901760, %v10890_v8  ;;  %v14607_v21 = vand.u32 4294901760, %v10902_v51 }
  0x40   :  { %15207 = vst [vmem:[#allocation24_spill] sm:$0xff] %v10894_v16  ;;  %15208 = vst [vmem:[#allocation25_spill] sm:$0xff] %v10902_v51  ;;  %v697_v17 = vand.u32 4294901760, %v696_v56  ;;  %v10912_v19 = vpack.c.bf16 %v578_v52, %v571_v1  ;;  %v704_v25 = vand.u32 4294901760, %v703_v0  ;;  %v15211_v7 = vand.u32 4294901760, %v10867_v37 }
  0x41   :  { %8803 = vmatpush3.bf16.msra.mxu0 %v10841_v5  ;;  %15209 = vst [vmem:[#allocation26_spill] sm:$0xff] %v10906_v32  ;;  %v584_v56 = vsub.f32 %v10885_v53, %v14602_v14  ;;  %v591_v44 = vsub.f32 %v10890_v8, %v14605_v10  ;;  %v15213_v52 = vand.u32 4294901760, %v10795_v30  ;;  %v420_v1 = vand.u32 4294901760, %v10904_v18 }
  0x42   :  { %8805 = vmatprep.subr.bf16.mxu0 %v10819_v40  ;;  %15210 = vst [vmem:[#allocation27_spill] sm:$0xff] %v10912_v19  ;;  %v10918_v50 = vsub.f32 %v10867_v37, %v15211_v7  ;;  %8835 = vmatpush3.bf16.msra.mxu1 %v10852_v15  ;;  %v10933_v7 = vpack.c.bf16 %v704_v25, %v697_v17  ;;  %v423_v15 = vand.u32 4294901760, %v10910_v29 }
  0x43   :  { %v10929_v11 = vpack.c.bf16 %v411_v54, %v15213_v52  ;;  %8837 = vmatprep.subr.bf16.mxu1 %v10894_v16  ;;  %v710_v0 = vsub.f32 %v10902_v51, %v14607_v21  ;;  %v585_v28 = vand.u32 4294901760, %v584_v56  ;;  %v592_v10 = vand.u32 4294901760, %v591_v44 }
  0x44   :  { %15212 = vst [vmem:[#allocation28_spill] sm:$0xff] %v10918_v50  ;;  %15215 = vst [vmem:[#allocation30_spill] sm:$0xff] %v10933_v7  ;;  %v14606_v14 = vand.u32 4294901760, %v10918_v50  ;;  %v10942_v30 = vsub.f32 %v10904_v18, %v420_v1  ;;  %v10948_v25 = vsub.f32 %v10910_v29, %v423_v15 }
  0x45   :  { %15214 = vst [vmem:[#allocation29_spill] sm:$0xff] %v10929_v11  ;;  %8807 = vmatpush3.bf16.msra.mxu0 %v10929_v11  ;;  %v711_v54 = vand.u32 4294901760, %v710_v0  ;;  %v10952_v52 = vpack.c.bf16 %v592_v10, %v585_v28 }
  0x46   :  { %15216 = vst [vmem:[#allocation31_spill] sm:$0xff] %v10942_v30  ;;  %v717_v17 = vsub.f32 %v10918_v50, %v14606_v14  ;;  %15217 = vst [vmem:[#allocation32_spill] sm:$0xff] %v10948_v25  ;;  %8809 = vmatprep.subr.bf16.mxu0 %v10906_v32  ;;  %8839 = vmatpush3.bf16.msra.mxu1 %v10912_v19  ;;  %v14610_v56 = vand.u32 4294901760, %v10942_v30  ;;  %v14614_v44 = vand.u32 4294901760, %v10948_v25 }
  0x47   :  { %15218 = vst [vmem:[#allocation33_spill] sm:$0xff] %v10952_v52  ;;  %8841 = vmatprep.subr.bf16.mxu1 %v10933_v7  ;;  %v350_v7 = vld [vmem:[#allocation2 + $0xf8] sm:$0xff] }
  0x48   :  { %v718_v18 = vand.u32 4294901760, %v717_v17  ;;  %v598_v0 = vsub.f32 %v10942_v30, %v14610_v56  ;;  %v605_v29 = vsub.f32 %v10948_v25, %v14614_v44  ;;  %v349_v17 = vld [vmem:[#allocation2 + $0xf0] sm:$0xff]  ;;  %v477_v56 = vand.u32 4294901760, %v350_v7 }
  0x49   :  { %v474_v19 = vand.u32 4294901760, %v349_v17  ;;  %v15225_v30 = vand.u32 4294901760, %v10847_v38 }
  0x4a   :  { %v10960_v14 = vpack.c.bf16 %v718_v18, %v711_v54  ;;  %8843 = vmatpush3.bf16.msra.mxu1 %v10952_v52  ;;  %v599_v28 = vand.u32 4294901760, %v598_v0  ;;  %v606_v10 = vand.u32 4294901760, %v605_v29  ;;  %v333_v54 = vld [vmem:[#allocation2 + $0x70] sm:$0xff]  ;;  %v334_v18 = vld [vmem:[#allocation2 + $0x78] sm:$0xff]  ;;  %v10972_v44 = vsub.f32 %v350_v7, %v477_v56 }
  0x4b   :  { %v426_v16 = vand.u32 4294901760, %v333_v54  ;;  %v429_v59 = vand.u32 4294901760, %v334_v18  ;;  %v10970_v55 = vsub.f32 %v349_v17, %v474_v19  ;;  %v11018_v38 = vpack.c.bf16 %v477_v56, %v474_v19 }
  0x4c   :  { %15219 = vst [vmem:[#allocation34_spill] sm:$0xff] %v10960_v14  ;;  %8845 = vmatprep.subr.bf16.mxu1 %v10960_v14  ;;  %v10967_v21 = vpack.c.bf16 %v606_v10, %v599_v28  ;;  %15222 = vst [vmem:[#allocation37_spill] sm:$0xff] %v10972_v44  ;;  %v14629_v28 = vand.u32 4294901760, %v10972_v44 }
  0x4d   :  { %15221 = vst [vmem:[#allocation36_spill] sm:$0xff] %v10970_v55  ;;  %v10974_v0 = vsub.f32 %v333_v54, %v426_v16  ;;  %v10976_v14 = vsub.f32 %v334_v18, %v429_v59  ;;  %v14624_v29 = vand.u32 4294901760, %v10970_v55  ;;  %15234 = vst [vmem:[#allocation45_spill] sm:$0xff] %v11018_v38 }
  0x4e   :  { %15220 = vst [vmem:[#allocation35_spill] sm:$0xff] %v10967_v21  ;;  %8847 = vmatpush3.bf16.msra.mxu1 %v10967_v21  ;;  %v731_v7 = vsub.f32 %v10972_v44, %v14629_v28  ;;  %v15229_v28 = vand.u32 4294901760, %v10843_v39  ;;  %v11026_v39 = vpack.c.bf16 %v10627_v42, %v10625_v41 }
  0x4f   :  { %15223 = vst [vmem:[#allocation38_spill] sm:$0xff] %v10974_v0  ;;  %15224 = vst [vmem:[#allocation39_spill] sm:$0xff] %v10976_v14  ;;  %v14630_v10 = vand.u32 4294901760, %v10974_v0  ;;  %v14635_v21 = vand.u32 4294901760, %v10976_v14  ;;  %v724_v52 = vsub.f32 %v10970_v55, %v14624_v29  ;;  %v15226_v29 = vand.u32 4294901760, %v10867_v37 }
  0x50   :  { %v732_v24 = vand.u32 4294901760, %v731_v7  ;;  %15236 = vst [vmem:[#allocation47_spill] sm:$0xff] %v11026_v39 }
  0x51   :  { %v612_v17 = vsub.f32 %v10974_v0, %v14630_v10  ;;  %v619_v54 = vsub.f32 %v10976_v14, %v14635_v21  ;;  %v725_v18 = vand.u32 4294901760, %v724_v52  ;;  %v10998_v50 = vpack.c.bf16 %v15226_v29, %v15225_v30 }
  0x52   :  { %v15230_v10 = vand.u32 4294901760, %v10845_v9  ;;  %v11035_v9 = vpack.c.bf16 %v10976_v14, %v10974_v0  ;;  %v15276_v14 = vld [vmem:[#allocation25_spill] sm:$0xff] }
  0x53   :  { %v613_v23 = vand.u32 4294901760, %v612_v17  ;;  %v620_v25 = vand.u32 4294901760, %v619_v54  ;;  %15227 = vst [vmem:[#allocation40_spill] sm:$0xff] %v10998_v50  ;;  %v11000_v51 = vpack.c.bf16 %v732_v24, %v725_v18  ;;  %v11015_v24 = vpack.c.bf16 %v423_v15, %v420_v1 }
  0x54   :  { %v11006_v8 = vpack.c.bf16 %v15230_v10, %v15229_v28  ;;  %v11031_v15 = vpack.c.bf16 %v10972_v44, %v10970_v55  ;;  %15238 = vst [vmem:[#allocation49_spill] sm:$0xff] %v11035_v9  ;;  %v11094_v18 = vpack.c.bf16 %v10648_v49, %v10646_v48 }
  0x55   :  { %15228 = vst [vmem:[#allocation41_spill] sm:$0xff] %v11000_v51  ;;  %v11008_v53 = vpack.c.bf16 %v620_v25, %v613_v23  ;;  %8849 = vmatprep.subr.bf16.mxu1 %v11000_v51  ;;  %15233 = vst [vmem:[#allocation44_spill] sm:$0xff] %v11015_v24  ;;  %v11021_v23 = vpack.c.bf16 %v429_v59, %v426_v16  ;;  %v11086_v51 = vpack.c.bf16 %v10644_v47, %v10632_v43 }
  0x56   :  { %15231 = vst [vmem:[#allocation42_spill] sm:$0xff] %v11006_v8  ;;  %8811 = vmatpush3.bf16.msra.mxu0 %v11006_v8  ;;  %15237 = vst [vmem:[#allocation48_spill] sm:$0xff] %v11031_v15 }
  0x57   :  { %15232 = vst [vmem:[#allocation43_spill] sm:$0xff] %v11008_v53  ;;  %8851 = vmatpush3.bf16.msra.mxu1 %v11008_v53  ;;  %8813 = vmatprep.subr.bf16.mxu0 %v10998_v50  ;;  %15235 = vst [vmem:[#allocation46_spill] sm:$0xff] %v11021_v23 }
  0x58   :  { %8885 = vmatprep.subr.bf16.mxu1 %v10639_v46  ;;  %15246 = vst [vmem:[#allocation57_spill] sm:$0xff] %v11086_v51  ;;  %15247 = vst [vmem:[#allocation58_spill] sm:$0xff] %v11094_v18 }
  0x5a   :  { %8815 = vmatpush3.bf16.msra.mxu0 %v11015_v24 }
  0x5b   :  { %8817 = vmatprep.subr.bf16.mxu0 %v11018_v38 }
  0x5e   :  { %8819 = vmatpush3.bf16.msra.mxu0 %v11021_v23 }
  0x5f   :  { %8853 = vmatprep.subr.bf16.mxu0 %v11026_v39 }
 0x107   :  { %v11037_v37 = vpop.f32.mrb[0].mxu0 }
 0x108   :  { %15239 = vst [vmem:[#allocation50_spill] sm:$0xff] %v11037_v37  ;;  %v11040_v59 = vand.u32 4294901760, %v11037_v37  ;;  %v11042_v16 = vpop.f32.mrb[1].mxu0 }
 0x109   :  { %15241 = vst [vmem:[#allocation52_spill] sm:$0xff] %v11042_v16  ;;  %v11045_v19 = vand.u32 4294901760, %v11042_v16  ;;  %v11047_v1 = vpop.f32.mrb[2].mxu0 }
 0x10a   :  { %15240 = vst [vmem:[#allocation51_spill] sm:$0xff] %v11040_v59  ;;  %15242 = vst [vmem:[#allocation53_spill] sm:$0xff] %v11047_v1  ;;  %v11051_v30 = vsub.f32 %v11037_v37, %v11040_v59  ;;  %v11054_v25 = vand.u32 4294901760, %v11047_v1  ;;  %v11056_v52 = vpop.f32.mrb[3].mxu0  ;;  %v11099_v37 = vpop.f32.mrb[0].mxu1 }
 0x10b   :  { %15244 = vst [vmem:[#allocation55_spill] sm:$0xff] %v11056_v52  ;;  %v480_v56 = vsub.f32 %v11042_v16, %v11045_v19  ;;  %v11061_v29 = vand.u32 4294901760, %v11056_v52  ;;  %735 = vmatprep.mubr.f32.mxu1 %v11045_v19  ;;  %15249 = vst [vmem:[#allocation59_spill] sm:$0xff] %v11099_v37  ;;  %v11101_v16 = vpop.f32.mrb[1].mxu1  ;;  %v11169_v37 = vld [vmem:[#allocation2 + $0x1f0] sm:$0xff] }
 0x10c   :  { %15243 = vst [vmem:[#allocation54_spill] sm:$0xff] %v11054_v25  ;;  %v11066_v28 = vsub.f32 %v11047_v1, %v11054_v25  ;;  %737 = vmatmul.mubr.f32.vlgmr.msra.gmra.mrb[4].mxu1 %v11040_v59  ;;  %v14641_v10 = vand.u32 4294901760, %v11051_v30  ;;  %15250 = vst [vmem:[#allocation60_spill] sm:$0xff] %v11101_v16  ;;  %v15274_v16 = vld [vmem:[#allocation23_spill] sm:$0xff]  ;;  %v11201_v59 = vld [vmem:[#allocation2 + $0x180] sm:$0xff] }
 0x10d   :  { %15245 = vst [vmem:[#allocation56_spill] sm:$0xff] %v11061_v29  ;;  %v11072_v7 = vsub.f32 %v11056_v52, %v11061_v29  ;;  %8887 = vmatpush3.bf16.msra.mxu1 %v10718_v26  ;;  %742 = vmatprep.mubr.f32.mxu1 %v11061_v29  ;;  %v481_v17 = vand.u32 4294901760, %v480_v56  ;;  %15268 = vst [vmem:[#allocation76_spill] sm:$0xff] %v11169_v37  ;;  %v11181_v29 = vld [vmem:[#allocation2 + $0x170] sm:$0xff] }
 0x10e   :  { %8889 = vmatprep.subr.bf16.mxu1 %v10695_v13  ;;  %v488_v54 = vsub.f32 %v11051_v30, %v14641_v10  ;;  %v15248_v52 = vand.u32 4294901760, %v11066_v28  ;;  %15271 = vst [vmem:[#allocation79_spill] sm:$0xff] %v11181_v29 }
 0x10f   :  { %v482_v21 = vsub.f32 %v480_v56, %v481_v17  ;;  %v14648_v39 = vand.u32 4294901760, %v11072_v7 }
 0x110   :  { %744 = vmatmul.mubr.f32.gmra.mrb[6].mxu1 %v11054_v25  ;;  %v489_v10 = vand.u32 4294901760, %v488_v54  ;;  %v11107_v54 = vpack.c.bf16 %v10686_v3, %v10674_v63  ;;  %v11171_v25 = vld [vmem:[#allocation2 + $0x1f8] sm:$0xff] }
 0x111   :  { %8891 = vmatpush3.bf16.msra.mxu1 %v10738_v45  ;;  %995 = vmatprep.mubr.f32.mxu1 %v481_v17  ;;  %v483_v53 = vand.u32 4294901760, %v482_v21  ;;  %v497_v1 = vsub.f32 %v11072_v7, %v14648_v39  ;;  %v503_v17 = vsub.f32 %v11066_v28, %v15248_v52  ;;  %v11109_v39 = vpop.f32.mrb[2].mxu1  ;;  %15269 = vst [vmem:[#allocation77_spill] sm:$0xff] %v11171_v25 }
 0x112   :  { %8893 = vmatprep.subr.bf16.mxu1 %v10723_v33  ;;  %15251 = vst [vmem:[#allocation61_spill] sm:$0xff] %v11107_v54  ;;  %15252 = vst [vmem:[#allocation62_spill] sm:$0xff] %v11109_v39  ;;  %v11116_v52 = vpop.f32.mrb[3].mxu1 }
 0x113   :  { %484 = vmatprep.mubr.f32.mxu0 %v483_v53  ;;  %v498_v21 = vand.u32 4294901760, %v497_v1  ;;  %v504_v53 = vand.u32 4294901760, %v503_v17  ;;  %v11114_v1 = vpack.c.bf16 %v10727_v35, %v10725_v34  ;;  %15254 = vst [vmem:[#allocation64_spill] sm:$0xff] %v11116_v52  ;;  %v11128_v17 = vpack.c.bf16 %v10765_v4, %v10750_v62 }
 0x114   :  { %490 = vmatmul.mubr.f32.vlgmr.msra.gmra.mrb[4].mxu0 %v489_v10  ;;  %v11123_v10 = vpack.c.bf16 %v10748_v61, %v10745_v60 }
 0x115   :  { %8855 = vmatpush3.bf16.msra.mxu0 %v11086_v51  ;;  %8895 = vmatpush3.bf16.msra.mxu1 %v10810_v12  ;;  %15253 = vst [vmem:[#allocation63_spill] sm:$0xff] %v11114_v1  ;;  %15256 = vst [vmem:[#allocation66_spill] sm:$0xff] %v11128_v17  ;;  %v11149_v51 = vld [vmem:[#allocation2 + $0x160] sm:$0xff] }
 0x116   :  { %499 = vmatprep.mubr.f32.mxu0 %v498_v21  ;;  %8857 = vmatprep.subr.bf16.mxu0 %v11094_v18  ;;  %15255 = vst [vmem:[#allocation65_spill] sm:$0xff] %v11123_v10  ;;  %v11130_v21 = vld [vmem:[#allocation2 + $0x150] sm:$0xff]  ;;  %v11132_v18 = vld [vmem:[#allocation2 + $0x158] sm:$0xff]  ;;  %15261 = vst [vmem:[#allocation71_spill] sm:$0xff] %v11149_v51 }
 0x117   :  { %8897 = vmatprep.subr.bf16.mxu1 %v10787_v22  ;;  %15257 = vst [vmem:[#allocation67_spill] sm:$0xff] %v11130_v21  ;;  %15258 = vst [vmem:[#allocation68_spill] sm:$0xff] %v11132_v18  ;;  %v15266_v39 = vand.u32 4294901760, %v11132_v18 }
 0x118   :  { %505 = vmatmul.mubr.f32.gmra.mrb[6].mxu0 %v504_v53  ;;  %v11139_v53 = vpack.c.bf16 %v10793_v27, %v10785_v20 }
 0x119   :  { %8859 = vmatpush3.bf16.msra.mxu0 %v11107_v54  ;;  %8899 = vmatpush3.bf16.msra.mxu1 %v10841_v5  ;;  %v11147_v54 = vpack.c.bf16 %v10823_v36, %v10802_v2  ;;  %v11167_v52 = vsub.f32 %v11132_v18, %v15266_v39  ;;  %v11183_v39 = vld [vmem:[#allocation2 + $0x178] sm:$0xff]  ;;  %v11203_v18 = vld [vmem:[#allocation2 + $0x188] sm:$0xff] }
 0x11a   :  { %879 = vmatprep.mubr.f32.mxu0 %v480_v56  ;;  %8861 = vmatprep.subr.bf16.mxu0 %v11114_v1  ;;  %15259 = vst [vmem:[#allocation69_spill] sm:$0xff] %v11139_v53  ;;  %v11157_v56 = vpack.c.bf16 %v10839_v6, %v10830_v31  ;;  %v15264_v1 = vand.u32 4294901760, %v11130_v21  ;;  %15272 = vst [vmem:[#allocation80_spill] sm:$0xff] %v11183_v39 }
 0x11b   :  { %8901 = vmatprep.subr.bf16.mxu1 %v10819_v40  ;;  %15260 = vst [vmem:[#allocation70_spill] sm:$0xff] %v11147_v54  ;;  %15267 = vst [vmem:[#allocation75_spill] sm:$0xff] %v11167_v52 }
 0x11c   :  { %15263 = vst [vmem:[#allocation73_spill] sm:$0xff] %v11157_v56 }
 0x11d   :  { %8863 = vmatpush3.bf16.msra.mxu0 %v11123_v10  ;;  %8903 = vmatpush3.bf16.msra.mxu1 %v10929_v11  ;;  %v11151_v10 = vld [vmem:[#allocation2 + $0x168] sm:$0xff] }
 0x11e   :  { %8865 = vmatprep.subr.bf16.mxu0 %v11128_v17  ;;  %8905 = vmatprep.subr.bf16.mxu1 %v10906_v32  ;;  %15262 = vst [vmem:[#allocation72_spill] sm:$0xff] %v11151_v10  ;;  %v11162_v17 = vsub.f32 %v11130_v21, %v15264_v1  ;;  %v15277_v1 = vld [vmem:[#allocation28_spill] sm:$0xff]  ;;  %v15280_v55 = vand.u32 4294901760, %v11151_v10  ;;  %v15282_v32 = vand.u32 4294901760, %v11167_v52 }
 0x11f   :  { %v11195_v0 = vpack.c.bf16 %v15277_v1, %v15276_v14  ;;  %v11225_v1 = vld [vmem:[#allocation2 + $0x108] sm:$0xff] }
 0x120   :  { %15265 = vst [vmem:[#allocation74_spill] sm:$0xff] %v11162_v17  ;;  %v11215_v21 = vsub.f32 %v11151_v10, %v15280_v55  ;;  %v15286_v55 = vand.u32 4294901760, %v11171_v25 }
 0x121   :  { %8867 = vmatpush3.bf16.msra.mxu0 %v11139_v53  ;;  %8907 = vmatpush3.bf16.msra.mxu1 %v11006_v8  ;;  %v11177_v53 = vpack.c.bf16 %v10864_v57, %v10854_v58  ;;  %15278 = vst [vmem:[#allocation23_spill] sm:$0xff] %v11195_v0  ;;  %v15288_v8 = vld [vmem:[#allocation32_spill] sm:$0xff] }
 0x122   :  { %8869 = vmatprep.subr.bf16.mxu0 %v11147_v54  ;;  %8909 = vmatprep.subr.bf16.mxu1 %v10998_v50  ;;  %v15273_v54 = vld [vmem:[#allocation22_spill] sm:$0xff]  ;;  %v11235_v10 = vsub.f32 %v11171_v25, %v15286_v55  ;;  %v11248_v55 = vld [vmem:[#allocation2 + $0x190] sm:$0xff]  ;;  %v15295_v25 = vand.u32 4294901760, %v10627_v42 }
 0x123   :  { %15270 = vst [vmem:[#allocation78_spill] sm:$0xff] %v11177_v53  ;;  %v11191_v50 = vpack.c.bf16 %v15274_v16, %v15273_v54 }
 0x125   :  { %8871 = vmatpush3.bf16.msra.mxu0 %v11157_v56  ;;  %8911 = vmatpush3.bf16.msra.mxu1 %v11015_v24  ;;  %15275 = vst [vmem:[#allocation22_spill] sm:$0xff] %v11191_v50  ;;  %v11205_v56 = vld [vmem:[#allocation2 + $0x100] sm:$0xff]  ;;  %v15279_v24 = vand.u32 4294901760, %v11149_v51 }
 0x126   :  { %8873 = vmatprep.subr.bf16.mxu0 %v11177_v53  ;;  %8913 = vmatprep.subr.bf16.mxu1 %v11018_v38  ;;  %v15281_v38 = vand.u32 4294901760, %v11162_v17  ;;  %v15287_v53 = vld [vmem:[#allocation31_spill] sm:$0xff] }
 0x127   :  { %v11210_v44 = vsub.f32 %v11149_v51, %v15279_v24  ;;  %v15284_v24 = vand.u32 4294901760, %v11169_v37 }
 0x128   :  { %v11223_v11 = vpack.c.bf16 %v15282_v32, %v15281_v38  ;;  %v11241_v32 = vpack.c.bf16 %v15288_v8, %v15287_v53  ;;  %v15291_v38 = vand.u32 4294901760, %v11183_v39 }
 0x129   :  { %v11230_v51 = vsub.f32 %v11169_v37, %v15284_v24  ;;  %8875 = vmatpush3.bf16.msra.mxu0 %v11191_v50  ;;  %8915 = vmatpush3.bf16.msra.mxu1 %v11021_v23  ;;  %v15290_v37 = vand.u32 4294901760, %v11181_v29  ;;  %v15294_v50 = vand.u32 4294901760, %v10625_v41  ;;  %v15301_v41 = vand.u32 4294901760, %v11201_v59 }
 0x12a   :  { %15283 = vst [vmem:[#allocation25_spill] sm:$0xff] %v11223_v11  ;;  %15289 = vst [vmem:[#allocation31_spill] sm:$0xff] %v11241_v32  ;;  %8877 = vmatprep.subr.bf16.mxu0 %v11195_v0  ;;  %8949 = vmatprep.subr.bf16.mxu1 %v10639_v46  ;;  %v11260_v11 = vsub.f32 %v11183_v39, %v15291_v38  ;;  %v11263_v0 = vld [vmem:[#allocation2 + $0x198] sm:$0xff]  ;;  %v15293_v46 = vand.u32 4294901760, %v11051_v30  ;;  %v15297_v38 = vand.u32 4294901760, %v11210_v44  ;;  %v15298_v39 = vand.u32 4294901760, %v11215_v21 }
 0x12b   :  { %15285 = vst [vmem:[#allocation81_spill] sm:$0xff] %v11230_v51  ;;  %v11255_v52 = vsub.f32 %v11181_v29, %v15290_v37  ;;  %v11271_v17 = vpack.c.bf16 %v15295_v25, %v15294_v50  ;;  %v11287_v42 = vsub.f32 %v11201_v59, %v15301_v41  ;;  %v15302_v50 = vand.u32 4294901760, %v11203_v18  ;;  %v11303_v41 = vld [vmem:[#allocation2 + $0x110] sm:$0xff] }
 0x12c   :  { %15292 = vst [vmem:[#allocation32_spill] sm:$0xff] %v11260_v11  ;;  %999 = vmatmul.mubr.f32.vlgmr.msra.gmra.mrb[8].mxu1 %v15293_v46  ;;  %v11279_v24 = vpack.c.bf16 %v15298_v39, %v15297_v38  ;;  %v15300_v46 = vand.u32 4294901760, %v11072_v7  ;;  %v15303_v29 = vand.u32 4294901760, %v11205_v56  ;;  %v15307_v38 = vand.u32 4294901760, %v11225_v1 }
 0x12d   :  { %15296 = vst [vmem:[#allocation82_spill] sm:$0xff] %v11271_v17  ;;  %8879 = vmatpush3.bf16.msra.mxu0 %v11241_v32  ;;  %v11292_v25 = vsub.f32 %v11203_v18, %v15302_v50  ;;  %8951 = vmatpush3.bf16.msra.mxu1 %v10718_v26  ;;  %v14715_v37 = vand.u32 4294901760, %v11255_v52  ;;  %v14714_v50 = vand.u32 4294901760, %v11260_v11  ;;  %v15304_v32 = vand.u32 4294901760, %v11230_v51  ;;  %v11321_v26 = vld [vmem:[#allocation2 + $0x118] sm:$0xff] }
 0x12e   :  { %15299 = vst [vmem:[#allocation83_spill] sm:$0xff] %v11279_v24  ;;  %1006 = vmatprep.mubr.f32.mxu1 %v15300_v46  ;;  %v11297_v39 = vsub.f32 %v11205_v56, %v15303_v29  ;;  %8881 = vmatprep.subr.bf16.mxu0 %v11031_v15  ;;  %v15305_v24 = vand.u32 4294901760, %v11235_v10  ;;  %v11317_v15 = vsub.f32 %v11225_v1, %v15307_v38  ;;  %v15308_v46 = vand.u32 4294901760, %v11066_v28 }
 0x12f   :  { %8953 = vmatprep.subr.bf16.mxu1 %v10695_v13  ;;  %v11327_v51 = vpack.c.bf16 %v14714_v50, %v14715_v37  ;;  %v15314_v13 = vand.u32 4294901760, %v10648_v49  ;;  %v14716_v11 = vand.u32 4294901760, %v11287_v42  ;;  %v15318_v49 = vand.u32 4294901760, %v11263_v0 }
 0x130   :  { %v11311_v29 = vpack.c.bf16 %v15305_v24, %v15304_v32  ;;  %1010 = vmatmul.mubr.f32.gmra.mrb[10].mxu1 %v15308_v46  ;;  %v15310_v32 = vand.u32 4294901760, %v10632_v43  ;;  %v15311_v24 = vand.u32 4294901760, %v10644_v47  ;;  %v15313_v46 = vand.u32 4294901760, %v10646_v48 }
 0x131   :  { %15309 = vst [vmem:[#allocation85_spill] sm:$0xff] %v11327_v51  ;;  %8883 = vmatpush3.bf16.msra.mxu0 %v11035_v9  ;;  %1287 = vmatprep.mubr.f32.mxu1 %v11045_v19  ;;  %v15320_v37 = vand.u32 4294901760, %v10674_v63  ;;  %v15321_v47 = vand.u32 4294901760, %v10686_v3  ;;  %v1544_v63 = vsub.f32 %v11287_v42, %v14716_v11  ;;  %v15326_v3 = vand.u32 4294901760, %v11303_v41 }
 0x132   :  { %15306 = vst [vmem:[#allocation84_spill] sm:$0xff] %v11311_v29  ;;  %v11335_v38 = vpack.c.bf16 %v15311_v24, %v15310_v32  ;;  %v11341_v29 = vpack.c.bf16 %v15314_v13, %v15313_v46  ;;  %8955 = vmatpush3.bf16.msra.mxu1 %v10738_v45  ;;  %8917 = vmatprep.subr.bf16.mxu0 %v11271_v17  ;;  %v15316_v32 = vand.u32 4294901760, %v11248_v55  ;;  %v14721_v46 = vand.u32 4294901760, %v11321_v26  ;;  %v15397_v45 = vld [vmem:[#allocation60_spill] sm:$0xff] }
 0x133   :  { %v11357_v13 = vsub.f32 %v11263_v0, %v15318_v49  ;;  %8957 = vmatprep.subr.bf16.mxu1 %v10723_v33  ;;  %v11367_v43 = vpack.c.bf16 %v15321_v47, %v15320_v37  ;;  %v15323_v49 = vand.u32 4294901760, %v10725_v34  ;;  %v15324_v24 = vand.u32 4294901760, %v10727_v35  ;;  %v11387_v37 = vld [vmem:[#allocation2 + $0x1a8] sm:$0xff] }
 0x134   :  { %15312 = vst [vmem:[#allocation86_spill] sm:$0xff] %v11335_v38  ;;  %15315 = vst [vmem:[#allocation87_spill] sm:$0xff] %v11341_v29  ;;  %v11352_v48 = vsub.f32 %v11248_v55, %v15316_v32  ;;  %882 = vmatmul.mubr.f32.vlgmr.msra.gmra.mrb[8].mxu0 %v11051_v30  ;;  %v11369_v32 = vld [vmem:[#allocation2 + $0x1a0] sm:$0xff]  ;;  %v11385_v30 = vsub.f32 %v11303_v41, %v15326_v3  ;;  %v15328_v34 = vand.u32 4294901760, %v11292_v25  ;;  %v15330_v3 = vand.u32 4294901760, %v11317_v15 }
 0x135   :  { %15319 = vst [vmem:[#allocation89_spill] sm:$0xff] %v11357_v13  ;;  %15322 = vst [vmem:[#allocation90_spill] sm:$0xff] %v11367_v43  ;;  %888 = vmatprep.mubr.f32.mxu0 %v11072_v7  ;;  %8919 = vmatpush3.bf16.msra.mxu0 %v11335_v38  ;;  %v11377_v50 = vpack.c.bf16 %v15324_v24, %v15323_v49  ;;  %v15329_v7 = vand.u32 4294901760, %v11297_v39  ;;  %v15333_v24 = vand.u32 4294901760, %v10748_v61  ;;  %v15335_v38 = vand.u32 4294901760, %v10750_v62 }
 0x136   :  { %15317 = vst [vmem:[#allocation88_spill] sm:$0xff] %v11352_v48  ;;  %15327 = vst [vmem:[#allocation92_spill] sm:$0xff] %v11385_v30  ;;  %8959 = vmatpush3.bf16.msra.mxu1 %v10810_v12  ;;  %8921 = vmatprep.subr.bf16.mxu0 %v11341_v29  ;;  %v1551_v35 = vsub.f32 %v11292_v25, %v15328_v34  ;;  %v1439_v11 = vsub.f32 %v11317_v15, %v15330_v3  ;;  %v15336_v17 = vand.u32 4294901760, %v10765_v4  ;;  %v11429_v34 = vld [vmem:[#allocation2 + $0x120] sm:$0xff]  ;;  %v15393_v12 = vld [vmem:[#allocation40_spill] sm:$0xff] }
 0x137   :  { %15325 = vst [vmem:[#allocation91_spill] sm:$0xff] %v11377_v50  ;;  %v1432_v47 = vsub.f32 %v11297_v39, %v15329_v7  ;;  %8961 = vmatprep.subr.bf16.mxu1 %v10787_v22  ;;  %v11406_v29 = vsub.f32 %v11321_v26, %v14721_v46  ;;  %v15332_v7 = vand.u32 4294901760, %v10745_v60  ;;  %v15338_v9 = vand.u32 4294901760, %v10785_v20 }
 0x138   :  { %891 = vmatmul.mubr.f32.gmra.mrb[10].mxu0 %v11066_v28  ;;  %v11420_v3 = vpack.c.bf16 %v15336_v17, %v15335_v38  ;;  %v15339_v46 = vand.u32 4294901760, %v10793_v27  ;;  %v14724_v28 = vand.u32 4294901760, %v11387_v37  ;;  %v15341_v60 = vand.u32 4294901760, %v10802_v2  ;;  %v11446_v38 = vld [vmem:[#allocation2 + $0x128] sm:$0xff] }
 0x139   :  { %15331 = vst [vmem:[#allocation93_spill] sm:$0xff] %v11406_v29  ;;  %v11414_v49 = vpack.c.bf16 %v15333_v24, %v15332_v7  ;;  %8923 = vmatpush3.bf16.msra.mxu0 %v11367_v43  ;;  %1176 = vmatprep.mubr.f32.mxu0 %v11045_v19  ;;  %v15342_v61 = vand.u32 4294901760, %v10823_v36  ;;  %v15344_v4 = vand.u32 4294901760, %v10830_v31  ;;  %v15345_v20 = vand.u32 4294901760, %v10839_v6  ;;  %v11456_v24 = vld [vmem:[#allocation2 + $0x1b0] sm:$0xff] }
 0x13a   :  { %15337 = vst [vmem:[#allocation95_spill] sm:$0xff] %v11420_v3  ;;  %v11426_v22 = vpack.c.bf16 %v15339_v46, %v15338_v9  ;;  %v1545_v9 = vand.u32 4294901760, %v1544_v63  ;;  %8963 = vmatpush3.bf16.msra.mxu1 %v10841_v5  ;;  %8925 = vmatprep.subr.bf16.mxu0 %v11377_v50  ;;  %v1552_v2 = vand.u32 4294901760, %v1551_v35  ;;  %v1433_v19 = vand.u32 4294901760, %v1432_v47  ;;  %v11458_v63 = vld [vmem:[#allocation2 + $0x1b8] sm:$0xff] }
 0x13b   :  { %15334 = vst [vmem:[#allocation94_spill] sm:$0xff] %v11414_v49  ;;  %v11437_v62 = vpack.c.bf16 %v15342_v61, %v15341_v60  ;;  %v11443_v27 = vpack.c.bf16 %v15345_v20, %v15344_v4  ;;  %v15347_v36 = vand.u32 4294901760, %v11352_v48  ;;  %v15348_v31 = vand.u32 4294901760, %v11357_v13  ;;  %8965 = vmatprep.subr.bf16.mxu1 %v10819_v40  ;;  %v15363_v61 = vld [vmem:[#allocation29_spill] sm:$0xff] }
 0x13c   :  { %15340 = vst [vmem:[#allocation96_spill] sm:$0xff] %v11426_v22  ;;  %v1440_v7 = vand.u32 4294901760, %v1439_v11  ;;  %v15349_v35 = vand.u32 4294901760, %v11369_v32  ;;  %v15351_v4 = vand.u32 4294901760, %v10854_v58  ;;  %v15352_v20 = vand.u32 4294901760, %v10864_v57  ;;  %v15359_v57 = vld [vmem:[#allocation28_spill] sm:$0xff] }
 0x13d   :  { %15343 = vst [vmem:[#allocation97_spill] sm:$0xff] %v11437_v62  ;;  %15346 = vst [vmem:[#allocation98_spill] sm:$0xff] %v11443_v27  ;;  %v1558_v46 = vsub.f32 %v11352_v48, %v15347_v36  ;;  %v1565_v6 = vsub.f32 %v11357_v13, %v15348_v31  ;;  %v15354_v31 = vand.u32 4294901760, %v15273_v54  ;;  %v15355_v17 = vand.u32 4294901760, %v15274_v16  ;;  %8927 = vmatpush3.bf16.msra.mxu0 %v11414_v49  ;;  %v15368_v49 = vld [vmem:[#allocation26_spill] sm:$0xff] }
 0x13e   :  { %v11465_v47 = vsub.f32 %v11369_v32, %v15349_v35  ;;  %v11472_v36 = vpack.c.bf16 %v15352_v20, %v15351_v4  ;;  %v11483_v60 = vsub.f32 %v11387_v37, %v14724_v28  ;;  %v15358_v58 = vand.u32 4294901760, %v15276_v14  ;;  %v11498_v28 = vld [vmem:[#allocation2 + $0x130] sm:$0xff]  ;;  %8967 = vmatpush3.bf16.msra.mxu1 %v15363_v61  ;;  %8929 = vmatprep.subr.bf16.mxu0 %v11420_v3  ;;  %v15377_v3 = vld [vmem:[#allocation36_spill] sm:$0xff]  ;;  %v11558_v61 = vld [vmem:[#allocation2 + $0x140] sm:$0xff] }
 0x13f   :  { %v11478_v11 = vpack.c.bf16 %v15355_v17, %v15354_v31  ;;  %v15360_v4 = vand.u32 4294901760, %v15359_v57  ;;  %v15362_v54 = vand.u32 4294901760, %v11385_v30  ;;  %v11502_v35 = vpack.c.bf16 %v1552_v2, %v1545_v9  ;;  %8969 = vmatprep.subr.bf16.mxu1 %v15368_v49  ;;  %v11524_v2 = vld [vmem:[#allocation2 + $0x1c0] sm:$0xff] }
 0x140   :  { %15350 = vst [vmem:[#allocation99_spill] sm:$0xff] %v11465_v47  ;;  %15353 = vst [vmem:[#allocation100_spill] sm:$0xff] %v11472_v36  ;;  %v15365_v14 = vand.u32 4294901760, %v15287_v53  ;;  %v11511_v17 = vpack.c.bf16 %v1440_v7, %v1433_v19  ;;  %v15370_v31 = vand.u32 4294901760, %v11406_v29  ;;  %v15371_v9 = vand.u32 4294901760, %v11429_v34 }
 0x141   :  { %15356 = vst [vmem:[#allocation101_spill] sm:$0xff] %v11478_v11  ;;  %15357 = vst [vmem:[#allocation102_spill] sm:$0xff] %v11483_v60  ;;  %v11491_v20 = vpack.c.bf16 %v15360_v4, %v15358_v58  ;;  %v1446_v16 = vsub.f32 %v11385_v30, %v15362_v54  ;;  %v15366_v58 = vand.u32 4294901760, %v15288_v8  ;;  %v1559_v4 = vand.u32 4294901760, %v1558_v46  ;;  %v11522_v8 = vld [vmem:[#allocation2 + $0x138] sm:$0xff]  ;;  %8931 = vmatpush3.bf16.msra.mxu0 %v11426_v22  ;;  %v15386_v22 = vld [vmem:[#allocation42_spill] sm:$0xff] }
 0x142   :  { %15364 = vst [vmem:[#allocation103_spill] sm:$0xff] %v11502_v35  ;;  %v1566_v54 = vand.u32 4294901760, %v1565_v6  ;;  %15369 = vst [vmem:[#allocation105_spill] sm:$0xff] %v11511_v17  ;;  %v1453_v50 = vsub.f32 %v11406_v29, %v15370_v31  ;;  %v11520_v53 = vsub.f32 %v11429_v34, %v15371_v9  ;;  %v15373_v46 = vand.u32 4294901760, %v11201_v59  ;;  %v11539_v9 = vld [vmem:[#allocation2 + $0x1c8] sm:$0xff]  ;;  %v15379_v59 = vld [vmem:[#allocation37_spill] sm:$0xff]  ;;  %8971 = vmatpush3.bf16.msra.mxu1 %v15386_v22 }
 0x143   :  { %15361 = vst [vmem:[#allocation28_spill] sm:$0xff] %v11491_v20  ;;  %v11508_v57 = vpack.c.bf16 %v15366_v58, %v15365_v14  ;;  %v15374_v19 = vand.u32 4294901760, %v11203_v18  ;;  %v15375_v31 = vand.u32 4294901760, %v11446_v38  ;;  %v15378_v43 = vand.u32 4294901760, %v15377_v3  ;;  %8933 = vmatprep.subr.bf16.mxu0 %v11437_v62  ;;  %8973 = vmatprep.subr.bf16.mxu1 %v15393_v12 }
 0x144   :  { %15372 = vst [vmem:[#allocation106_spill] sm:$0xff] %v11520_v53  ;;  %v15380_v49 = vand.u32 4294901760, %v15379_v59  ;;  %v11562_v3 = vpack.c.bf16 %v1566_v54, %v1559_v4  ;;  %v1454_v33 = vand.u32 4294901760, %v1453_v50  ;;  %v15394_v22 = vand.u32 4294901760, %v11465_v47 }
 0x145   :  { %15367 = vst [vmem:[#allocation104_spill] sm:$0xff] %v11508_v57  ;;  %v11530_v6 = vpack.c.bf16 %v15374_v19, %v15373_v46  ;;  %v11536_v14 = vsub.f32 %v11446_v38, %v15375_v31  ;;  %v1447_v46 = vand.u32 4294901760, %v1446_v16  ;;  %v15382_v19 = vand.u32 4294901760, %v11456_v24  ;;  %v15390_v16 = vld [vmem:[#allocation39_spill] sm:$0xff]  ;;  %8935 = vmatpush3.bf16.msra.mxu0 %v11443_v27  ;;  %v15402_v27 = vld [vmem:[#allocation45_spill] sm:$0xff] }
 0x146   :  { %v11546_v18 = vpack.c.bf16 %v15380_v49, %v15378_v43  ;;  %v15384_v31 = vand.u32 4294901760, %v11458_v63  ;;  %15387 = vst [vmem:[#allocation109_spill] sm:$0xff] %v11562_v3  ;;  %v15388_v43 = vld [vmem:[#allocation38_spill] sm:$0xff]  ;;  %v15391_v59 = vand.u32 4294901760, %v15390_v16  ;;  %v1572_v4 = vsub.f32 %v11465_v47, %v15394_v22  ;;  %v11580_v16 = vld [vmem:[#allocation2 + $0x1d0] sm:$0xff]  ;;  %8937 = vmatprep.subr.bf16.mxu0 %v11472_v36 }
 0x147   :  { %15376 = vst [vmem:[#allocation107_spill] sm:$0xff] %v11536_v14  ;;  %v11551_v7 = vsub.f32 %v11456_v24, %v15382_v19  ;;  %v15389_v49 = vand.u32 4294901760, %v15388_v43  ;;  %v15396_v50 = vand.u32 4294901760, %v11498_v28  ;;  %v11599_v51 = vand.u32 4294901760, %v15397_v45 }
 0x148   :  { %15381 = vst [vmem:[#allocation36_spill] sm:$0xff] %v11546_v18  ;;  %v11556_v58 = vsub.f32 %v11458_v63, %v15384_v31  ;;  %v11572_v31 = vld [vmem:[#allocation2 + $0x148] sm:$0xff]  ;;  %v15400_v22 = vand.u32 4294901760, %v11524_v2  ;;  %v15404_v36 = vand.u32 4294901760, %v11520_v53  ;;  %v15407_v30 = vand.u32 4294901760, %v11536_v14 }
 0x149   :  { %15383 = vst [vmem:[#allocation37_spill] sm:$0xff] %v11551_v7  ;;  %v11568_v40 = vpack.c.bf16 %v15391_v59, %v15389_v49  ;;  %v11582_v49 = vld [vmem:[#allocation2 + $0x1d8] sm:$0xff]  ;;  %v15395_v59 = vand.u32 4294901760, %v11483_v60  ;;  %v11591_v62 = vsub.f32 %v11498_v28, %v15396_v50  ;;  %v15399_v50 = vand.u32 4294901760, %v11522_v8  ;;  %8939 = vmatpush3.bf16.msra.mxu0 %v11478_v11 }
 0x14a   :  { %15385 = vst [vmem:[#allocation108_spill] sm:$0xff] %v11556_v58  ;;  %v11611_v43 = vsub.f32 %v11524_v2, %v15400_v22  ;;  %v1460_v47 = vsub.f32 %v11520_v53, %v15404_v36  ;;  %v1467_v54 = vsub.f32 %v11536_v14, %v15407_v30  ;;  %v11637_v36 = vld [vmem:[#allocation2 + $0x1e8] sm:$0xff]  ;;  %v15411_v12 = vand.u32 4294901760, %v11572_v31  ;;  %8941 = vmatprep.subr.bf16.mxu0 %v11491_v20  ;;  %v15417_v11 = vld [vmem:[#allocation56_spill] sm:$0xff] }
 0x14b   :  { %15392 = vst [vmem:[#allocation38_spill] sm:$0xff] %v11568_v40  ;;  %v1579_v5 = vsub.f32 %v11483_v60, %v15395_v59  ;;  %v15398_v59 = vld [vmem:[#allocation44_spill] sm:$0xff]  ;;  %v11606_v19 = vsub.f32 %v11522_v8, %v15399_v50  ;;  %v11616_v60 = vpack.c.bf16 %v1454_v33, %v1447_v46  ;;  %v15405_v50 = vand.u32 4294901760, %v11539_v9 }
 0x14c   :  { %8975 = vmatpush3.bf16.msra.mxu1 %v15398_v59  ;;  %15401 = vst [vmem:[#allocation39_spill] sm:$0xff] %v11611_v43  ;;  %v1573_v59 = vand.u32 4294901760, %v1572_v4  ;;  %v15408_v33 = vand.u32 4294901760, %v11558_v61  ;;  %v11635_v4 = vld [vmem:[#allocation2 + $0x1e0] sm:$0xff]  ;;  %v11649_v14 = vsub.f32 %v11572_v31, %v15411_v12  ;;  %v15413_v12 = vand.u32 4294901760, %v11582_v49 }
 0x14d   :  { %8977 = vmatprep.subr.bf16.mxu1 %v15402_v27  ;;  %15403 = vst [vmem:[#allocation110_spill] sm:$0xff] %v11616_v60  ;;  %v11624_v29 = vsub.f32 %v11539_v9, %v15405_v50  ;;  %v1580_v22 = vand.u32 4294901760, %v1579_v5  ;;  %v15409_v50 = vand.u32 4294901760, %v11551_v7  ;;  %v15410_v27 = vand.u32 4294901760, %v11556_v58  ;;  %8943 = vmatpush3.bf16.msra.mxu0 %v11508_v57 }
 0x14e   :  { %v11633_v46 = vsub.f32 %v11558_v61, %v15408_v33  ;;  %v11653_v33 = vsub.f32 %v15397_v45, %v11599_v51  ;;  %v1461_v45 = vand.u32 4294901760, %v1460_v47  ;;  %v1468_v53 = vand.u32 4294901760, %v1467_v54  ;;  %8945 = vmatprep.subr.bf16.mxu0 %v11546_v18 }
 0x14f   :  { %15406 = vst [vmem:[#allocation111_spill] sm:$0xff] %v11624_v29  ;;  %v1586_v5 = vsub.f32 %v11551_v7, %v15409_v50  ;;  %v1593_v30 = vsub.f32 %v11556_v58, %v15410_v27  ;;  %v15412_v7 = vand.u32 4294901760, %v11580_v16  ;;  %v11667_v58 = vsub.f32 %v11582_v49, %v15413_v12  ;;  %v15416_v12 = vld [vmem:[#allocation51_spill] sm:$0xff] }
 0x150   :  { %8979 = vmatpush3.bf16.msra.mxu1 %v11021_v23  ;;  %v11673_v50 = vpack.c.bf16 %v1580_v22, %v1573_v59  ;;  %v15418_v54 = vand.u32 4294901760, %v11606_v19  ;;  %v15419_v22 = vand.u32 4294901760, %v11611_v43  ;;  %v15421_v23 = vand.u32 4294901760, %v11635_v4 }
 0x151   :  { %v11662_v27 = vsub.f32 %v11580_v16, %v15412_v7  ;;  %9013 = vmatprep.subr.bf16.mxu1 %v11502_v35  ;;  %v15415_v7 = vand.u32 4294901760, %v11591_v62  ;;  %v1587_v47 = vand.u32 4294901760, %v1586_v5  ;;  %v1594_v35 = vand.u32 4294901760, %v1593_v30  ;;  %8947 = vmatpush3.bf16.msra.mxu0 %v11568_v40 }
 0x152   :  { %15414 = vst [vmem:[#allocation112_spill] sm:$0xff] %v11673_v50  ;;  %v1481_v59 = vsub.f32 %v11606_v19, %v15418_v54  ;;  %v15420_v30 = vand.u32 4294901760, %v11624_v29  ;;  %v11701_v54 = vsub.f32 %v11635_v4, %v15421_v23  ;;  %v15423_v5 = vand.u32 4294901760, %v11248_v55  ;;  %8981 = vmatprep.subr.bf16.mxu0 %v11530_v6 }
 0x153   :  { %v1474_v13 = vsub.f32 %v11591_v62, %v15415_v7  ;;  %1289 = vmatmul.mubr.f32.vlgmr.msra.gmra.mrb[12].mxu1 %v15416_v12  ;;  %v1600_v7 = vsub.f32 %v11611_v43, %v15419_v22  ;;  %v15424_v48 = vand.u32 4294901760, %v11263_v0  ;;  %v15427_v23 = vand.u32 4294901760, %v11633_v46  ;;  %v15428_v43 = vld [vmem:[#allocation54_spill] sm:$0xff] }
 0x154   :  { %1294 = vmatprep.mubr.f32.mxu1 %v15417_v11  ;;  %9015 = vmatpush3.bf16.msra.mxu1 %v11511_v17  ;;  %v1607_v20 = vsub.f32 %v11624_v29, %v15420_v30  ;;  %v15422_v17 = vand.u32 4294901760, %v11637_v36  ;;  %v15426_v30 = vand.u32 4294901760, %v11225_v1  ;;  %v15429_v0 = vand.u32 4294901760, %v11649_v14 }
 0x155   :  { %9017 = vmatprep.subr.bf16.mxu1 %v11562_v3  ;;  %v11712_v18 = vpack.c.bf16 %v15424_v48, %v15423_v5  ;;  %v15425_v3 = vand.u32 4294901760, %v11205_v56  ;;  %v1488_v29 = vsub.f32 %v11633_v46, %v15427_v23  ;;  %v1475_v55 = vand.u32 4294901760, %v1474_v13  ;;  %1178 = vmatmul.mubr.f32.vlgmr.msra.gmra.mrb[12].mxu0 %v15416_v12 }
 0x156   :  { %v11706_v22 = vsub.f32 %v11637_v36, %v15422_v17  ;;  %v11725_v17 = vpack.c.bf16 %v1468_v53, %v1461_v45  ;;  %v1495_v48 = vsub.f32 %v11649_v14, %v15429_v0  ;;  %v15430_v56 = vand.u32 4294901760, %v11653_v33  ;;  %1183 = vmatprep.mubr.f32.mxu0 %v15417_v11 }
 0x157   :  { %v11718_v57 = vpack.c.bf16 %v15426_v30, %v15425_v3  ;;  %1296 = vmatmul.mubr.f32.gmra.mrb[14].mxu1 %v15428_v43  ;;  %v11735_v3 = vpack.c.bf16 %v1594_v35, %v1587_v47  ;;  %v1482_v5 = vand.u32 4294901760, %v1481_v59  ;;  %v15431_v30 = vand.u32 4294901760, %v11662_v27 }
 0x158   :  { %v1400_v1 = vsub.f32 %v11653_v33, %v15430_v56  ;;  %9019 = vmatpush3.bf16.msra.mxu1 %v11616_v60  ;;  %v15432_v13 = vand.u32 4294901760, %v11667_v58  ;;  %v1601_v23 = vand.u32 4294901760, %v1600_v7  ;;  %v1608_v0 = vand.u32 4294901760, %v1607_v20  ;;  %1653 = vmatprep.mubr.f32.mxu1 %v11599_v51  ;;  %v15435_v7 = vld [vmem:[#allocation74_spill] sm:$0xff]  ;;  %v15437_v56 = vld [vmem:[#allocation75_spill] sm:$0xff] }
 0x159   :  { %v1614_v45 = vsub.f32 %v11662_v27, %v15431_v30  ;;  %9021 = vmatprep.subr.bf16.mxu1 %v11673_v50  ;;  %v15433_v35 = vand.u32 4294901760, %v11303_v41  ;;  %v15434_v47 = vand.u32 4294901760, %v11321_v26  ;;  %v1489_v30 = vand.u32 4294901760, %v1488_v29  ;;  %8983 = vmatpush3.bf16.msra.mxu0 %v11718_v57 }
 0x15a   :  { %v1621_v53 = vsub.f32 %v11667_v58, %v15432_v13  ;;  %v1496_v20 = vand.u32 4294901760, %v1495_v48  ;;  %v15436_v13 = vand.u32 4294901760, %v15435_v7  ;;  %v15438_v50 = vand.u32 4294901760, %v15437_v56  ;;  %8985 = vmatprep.subr.bf16.mxu0 %v11712_v18  ;;  %1185 = vmatmul.mubr.f32.gmra.mrb[14].mxu0 %v15428_v43 }
 0x15b   :  { %v11752_v59 = vpack.c.bf16 %v15434_v47, %v15433_v35  ;;  %v1401_v40 = vand.u32 4294901760, %v1400_v1  ;;  %v15439_v41 = vand.u32 4294901760, %v11369_v32  ;;  %v15440_v26 = vand.u32 4294901760, %v11387_v37 }
 0x15c   :  { %v1502_v60 = vsub.f32 %v15435_v7, %v15436_v13  ;;  %v1509_v12 = vsub.f32 %v15437_v56, %v15438_v50  ;;  %9023 = vmatpush3.bf16.msra.mxu1 %v11725_v17  ;;  %v11770_v29 = vpack.c.bf16 %v1482_v5, %v1475_v55  ;;  %v1615_v11 = vand.u32 4294901760, %v1614_v45 }
 0x15d   :  { %v11766_v35 = vpack.c.bf16 %v15440_v26, %v15439_v41  ;;  %v1622_v48 = vand.u32 4294901760, %v1621_v53  ;;  %9025 = vmatprep.subr.bf16.mxu1 %v11735_v3  ;;  %v11773_v47 = vpack.c.bf16 %v1608_v0, %v1601_v23  ;;  %v15441_v50 = vand.u32 4294901760, %v11701_v54  ;;  %8987 = vmatpush3.bf16.msra.mxu0 %v11752_v59 }
 0x15e   :  { %v15442_v37 = vand.u32 4294901760, %v11706_v22  ;;  %v15443_v13 = vand.u32 4294901760, %v11456_v24  ;;  %v15444_v55 = vand.u32 4294901760, %v11458_v63  ;;  %v15445_v45 = vand.u32 4294901760, %v11429_v34  ;;  %1402 = vmatprep.mubr.f32.mxu0 %v1401_v40 }
 0x15f   :  { %v1628_v32 = vsub.f32 %v11701_v54, %v15441_v50  ;;  %v15446_v53 = vand.u32 4294901760, %v11446_v38  ;;  %v11795_v0 = vpack.c.bf16 %v1496_v20, %v1489_v30  ;;  %v1503_v41 = vand.u32 4294901760, %v1502_v60  ;;  %8989 = vmatprep.subr.bf16.mxu0 %v11766_v35  ;;  %v15451_v20 = vld [vmem:[#allocation81_spill] sm:$0xff] }
 0x160   :  { %v1635_v1 = vsub.f32 %v11706_v22, %v15442_v37  ;;  %v11786_v5 = vpack.c.bf16 %v15444_v55, %v15443_v13  ;;  %v1510_v26 = vand.u32 4294901760, %v1509_v12  ;;  %9027 = vmatpush3.bf16.msra.mxu1 %v11770_v29  ;;  %v11799_v24 = vpack.c.bf16 %v1622_v48, %v1615_v11 }
 0x161   :  { %v11793_v23 = vpack.c.bf16 %v15446_v53, %v15445_v45  ;;  %15447 = vst [vmem:[#allocation51_spill] sm:$0xff] %v11795_v0  ;;  %v15449_v63 = vand.u32 4294901760, %v11210_v44  ;;  %v15450_v34 = vand.u32 4294901760, %v11215_v21  ;;  %9029 = vmatprep.subr.bf16.mxu1 %v11773_v47  ;;  %v1629_v30 = vand.u32 4294901760, %v1628_v32 }
 0x162   :  { %15448 = vst [vmem:[#allocation56_spill] sm:$0xff] %v11799_v24  ;;  %v1636_v60 = vand.u32 4294901760, %v1635_v1  ;;  %v15452_v40 = vand.u32 4294901760, %v15451_v20  ;;  %v15453_v50 = vand.u32 4294901760, %v11235_v10  ;;  %v15454_v48 = vand.u32 4294901760, %v11524_v2 }
 0x163   :  { %v1516_v43 = vsub.f32 %v11210_v44, %v15449_v63  ;;  %v1523_v38 = vsub.f32 %v11215_v21, %v15450_v34  ;;  %v15455_v37 = vand.u32 4294901760, %v11539_v9  ;;  %8991 = vmatpush3.bf16.msra.mxu0 %v11793_v23  ;;  %v15456_v55 = vand.u32 4294901760, %v11498_v28  ;;  %v15460_v34 = vld [vmem:[#allocation32_spill] sm:$0xff] }
 0x164   :  { %v1642_v12 = vsub.f32 %v15451_v20, %v15452_v40  ;;  %v1649_v11 = vsub.f32 %v11235_v10, %v15453_v50  ;;  %v15457_v32 = vand.u32 4294901760, %v11522_v8  ;;  %v11827_v45 = vpack.c.bf16 %v1510_v26, %v1503_v41  ;;  %9031 = vmatpush3.bf16.msra.mxu1 %v11795_v0  ;;  %8993 = vmatprep.subr.bf16.mxu0 %v11786_v5  ;;  %v15502_v0 = vld [vmem:[#allocation102_spill] sm:$0xff] }
 0x165   :  { %v11818_v13 = vpack.c.bf16 %v15455_v37, %v15454_v48  ;;  %v1517_v53 = vand.u32 4294901760, %v1516_v43  ;;  %v1524_v2 = vand.u32 4294901760, %v1523_v38  ;;  %v15459_v9 = vand.u32 4294901760, %v11255_v52  ;;  %9033 = vmatprep.subr.bf16.mxu1 %v11799_v24  ;;  %v15499_v24 = vld [vmem:[#allocation93_spill] sm:$0xff] }
 0x166   :  { %v11825_v1 = vpack.c.bf16 %v15457_v32, %v15456_v55  ;;  %15458 = vst [vmem:[#allocation54_spill] sm:$0xff] %v11827_v45  ;;  %v15461_v40 = vand.u32 4294901760, %v15460_v34  ;;  %v11838_v8 = vpack.c.bf16 %v1636_v60, %v1629_v30  ;;  %v1643_v41 = vand.u32 4294901760, %v1642_v12  ;;  %v15467_v32 = vld [vmem:[#allocation59_spill] sm:$0xff]  ;;  %v15469_v60 = vld [vmem:[#allocation64_spill] sm:$0xff] }
 0x167   :  { %v1530_v63 = vsub.f32 %v11255_v52, %v15459_v9  ;;  %v1650_v26 = vand.u32 4294901760, %v1649_v11  ;;  %v15463_v50 = vand.u32 4294901760, %v11580_v16  ;;  %v15464_v48 = vand.u32 4294901760, %v11582_v49 }
 0x168   :  { %v1537_v28 = vsub.f32 %v15460_v34, %v15461_v40  ;;  %15462 = vst [vmem:[#allocation74_spill] sm:$0xff] %v11838_v8  ;;  %8995 = vmatpush3.bf16.msra.mxu0 %v11825_v1  ;;  %v15465_v38 = vand.u32 4294901760, %v11558_v61  ;;  %v15466_v37 = vand.u32 4294901760, %v11572_v31  ;;  %v11854_v9 = vand.u32 4294901760, %v15467_v32  ;;  %9035 = vmatpush3.bf16.msra.mxu1 %v11827_v45  ;;  %v15471_v31 = vld [vmem:[#allocation67_spill] sm:$0xff]  ;;  %v15473_v40 = vld [vmem:[#allocation68_spill] sm:$0xff] }
 0x169   :  { %v11844_v43 = vpack.c.bf16 %v15464_v48, %v15463_v50  ;;  %8997 = vmatprep.subr.bf16.mxu0 %v11818_v13  ;;  %v11858_v16 = vpack.c.bf16 %v1524_v2, %v1517_v53  ;;  %v1531_v49 = vand.u32 4294901760, %v1530_v63  ;;  %v11861_v12 = vand.u32 4294901760, %v15469_v60  ;;  %9037 = vmatprep.subr.bf16.mxu1 %v11838_v8  ;;  %v15475_v2 = vld [vmem:[#allocation62_spill] sm:$0xff]  ;;  %v15495_v8 = vld [vmem:[#allocation88_spill] sm:$0xff] }
 0x16a   :  { %v11851_v55 = vpack.c.bf16 %v15466_v37, %v15465_v38  ;;  %v1538_v30 = vand.u32 4294901760, %v1537_v28  ;;  %v11864_v61 = vpack.c.bf16 %v1650_v26, %v1643_v41  ;;  %v15472_v11 = vand.u32 4294901760, %v15471_v31  ;;  %v15479_v31 = vld [vmem:[#allocation71_spill] sm:$0xff] }
 0x16b   :  { %15468 = vst [vmem:[#allocation75_spill] sm:$0xff] %v11858_v16  ;;  %v15474_v50 = vand.u32 4294901760, %v15473_v40  ;;  %v11875_v53 = vsub.f32 %v15467_v32, %v11854_v9  ;;  %v11878_v63 = vand.u32 4294901760, %v15475_v2  ;;  %v15476_v28 = vand.u32 4294901760, %v11635_v4 }
 0x16c   :  { %15470 = vst [vmem:[#allocation81_spill] sm:$0xff] %v11864_v61  ;;  %8999 = vmatpush3.bf16.msra.mxu0 %v11851_v55  ;;  %v15477_v41 = vand.u32 4294901760, %v11637_v36  ;;  %9039 = vmatpush3.bf16.msra.mxu1 %v11858_v16  ;;  %v11888_v38 = vpack.c.bf16 %v1538_v30, %v1531_v49  ;;  %v11892_v37 = vsub.f32 %v15469_v60, %v11861_v12  ;;  %v15480_v4 = vand.u32 4294901760, %v15479_v31  ;;  %v15483_v30 = vld [vmem:[#allocation76_spill] sm:$0xff]  ;;  %v15501_v60 = vld [vmem:[#allocation99_spill] sm:$0xff] }
 0x16d   :  { %v11871_v48 = vpack.c.bf16 %v15474_v50, %v15472_v11  ;;  %9001 = vmatprep.subr.bf16.mxu0 %v11844_v43  ;;  %9041 = vmatprep.subr.bf16.mxu1 %v11864_v61  ;;  %v15481_v11 = vld [vmem:[#allocation72_spill] sm:$0xff]  ;;  %v11905_v49 = vsub.f32 %v15475_v2, %v11878_v63  ;;  %v11967_v32 = vpack.c.bf16 %v15502_v0, %v15501_v60 }
 0x16e   :  { %v11884_v26 = vpack.c.bf16 %v15477_v41, %v15476_v28  ;;  %15478 = vst [vmem:[#allocation32_spill] sm:$0xff] %v11888_v38  ;;  %v15482_v36 = vand.u32 4294901760, %v15481_v11  ;;  %v15484_v28 = vand.u32 4294901760, %v15483_v30  ;;  %v15485_v41 = vld [vmem:[#allocation77_spill] sm:$0xff]  ;;  %v14785_v31 = vand.u32 4294901760, %v11892_v37 }
 0x16f   :  { %v15486_v61 = vand.u32 4294901760, %v15485_v41  ;;  %v15491_v30 = vand.u32 4294901760, %v11875_v53  ;;  %15503 = vst [vmem:[#allocation76_spill] sm:$0xff] %v11967_v32 }
 0x170   :  { %9003 = vmatpush3.bf16.msra.mxu0 %v11871_v48  ;;  %v11900_v40 = vpack.c.bf16 %v15482_v36, %v15480_v4  ;;  %9043 = vmatpush3.bf16.msra.mxu1 %v11888_v38  ;;  %v15487_v4 = vld [vmem:[#allocation79_spill] sm:$0xff]  ;;  %v15489_v36 = vld [vmem:[#allocation80_spill] sm:$0xff] }
 0x171   :  { %9005 = vmatprep.subr.bf16.mxu0 %v11884_v26  ;;  %v11913_v16 = vpack.c.bf16 %v15486_v61, %v15484_v28  ;;  %9077 = vmatprep.subr.bf16.mxu1 %v11530_v6  ;;  %v15488_v11 = vand.u32 4294901760, %v15487_v4  ;;  %v15490_v50 = vand.u32 4294901760, %v15489_v36  ;;  %v1406_v41 = vsub.f32 %v11875_v53, %v15491_v30 }
 0x172   :  { %v14789_v61 = vand.u32 4294901760, %v11905_v49  ;;  %v11935_v28 = vpack.c.bf16 %v11292_v25, %v11287_v42  ;;  %v11944_v4 = vpack.c.bf16 %v11317_v15, %v11297_v39  ;;  %v15494_v36 = vand.u32 4294901760, %v11653_v33 }
 0x173   :  { %1655 = vmatmul.mubr.f32.vlgmr.msra.gmra.mrb[16].mxu1 %v11854_v9  ;;  %v11923_v38 = vpack.c.bf16 %v15490_v50, %v15488_v11  ;;  %v1415_v50 = vsub.f32 %v11892_v37, %v14785_v31  ;;  %v1407_v11 = vand.u32 4294901760, %v1406_v41  ;;  %v15496_v31 = vld [vmem:[#allocation89_spill] sm:$0xff]  ;;  %v15498_v41 = vld [vmem:[#allocation92_spill] sm:$0xff] }
 0x174   :  { %9007 = vmatpush3.bf16.msra.mxu0 %v11900_v40  ;;  %1660 = vmatprep.mubr.f32.mxu1 %v11861_v12  ;;  %15492 = vst [vmem:[#allocation67_spill] sm:$0xff] %v11935_v28  ;;  %15493 = vst [vmem:[#allocation68_spill] sm:$0xff] %v11944_v4  ;;  %v1421_v30 = vsub.f32 %v11905_v49, %v14789_v61  ;;  %v11954_v45 = vpack.c.bf16 %v15496_v31, %v15495_v8 }
 0x175   :  { %9079 = vmatpush3.bf16.msra.mxu1 %v11718_v57  ;;  %9009 = vmatprep.subr.bf16.mxu0 %v11913_v16  ;;  %v1416_v2 = vand.u32 4294901760, %v1415_v50  ;;  %v15505_v50 = vld [vmem:[#allocation107_spill] sm:$0xff] }
 0x176   :  { %9081 = vmatprep.subr.bf16.mxu1 %v11712_v18  ;;  %15497 = vst [vmem:[#allocation71_spill] sm:$0xff] %v11954_v45  ;;  %v1422_v61 = vand.u32 4294901760, %v1421_v30  ;;  %v15507_v30 = vld [vmem:[#allocation37_spill] sm:$0xff] }
 0x177   :  { %1662 = vmatmul.mubr.f32.gmra.mrb[18].mxu1 %v11878_v63 }
 0x178   :  { %9011 = vmatpush3.bf16.msra.mxu0 %v11923_v38  ;;  %1913 = vmatprep.mubr.f32.mxu1 %v15494_v36  ;;  %v11961_v36 = vpack.c.bf16 %v15499_v24, %v15498_v41 }
 0x179   :  { %9083 = vmatpush3.bf16.msra.mxu1 %v11752_v59  ;;  %9045 = vmatprep.subr.bf16.mxu0 %v11935_v28 }
 0x17a   :  { %9085 = vmatprep.subr.bf16.mxu1 %v11766_v35  ;;  %15500 = vst [vmem:[#allocation72_spill] sm:$0xff] %v11961_v36 }
 0x17b   :  { %1408 = vmatmul.mubr.f32.vlgmr.msra.gmra.mrb[16].mxu0 %v1407_v11 }
 0x17c   :  { %1417 = vmatprep.mubr.f32.mxu0 %v1416_v2  ;;  %9047 = vmatpush3.bf16.msra.mxu0 %v11944_v4  ;;  %v15504_v2 = vld [vmem:[#allocation106_spill] sm:$0xff] }
 0x17d   :  { %9087 = vmatpush3.bf16.msra.mxu1 %v11793_v23  ;;  %9049 = vmatprep.subr.bf16.mxu0 %v11954_v45  ;;  %v11974_v11 = vpack.c.bf16 %v15505_v50, %v15504_v2  ;;  %v15508_v45 = vld [vmem:[#allocation108_spill] sm:$0xff] }
 0x17e   :  { %9089 = vmatprep.subr.bf16.mxu1 %v11786_v5  ;;  %v11980_v4 = vpack.c.bf16 %v15508_v45, %v15507_v30 }
 0x17f   :  { %1423 = vmatmul.mubr.f32.gmra.mrb[18].mxu0 %v1422_v61  ;;  %15506 = vst [vmem:[#allocation77_spill] sm:$0xff] %v11974_v11  ;;  %v11986_v61 = vpack.c.bf16 %v11606_v19, %v11591_v62 }
 0x180   :  { %9051 = vmatpush3.bf16.msra.mxu0 %v11961_v36  ;;  %1797 = vmatprep.mubr.f32.mxu0 %v11653_v33  ;;  %15509 = vst [vmem:[#allocation79_spill] sm:$0xff] %v11980_v4  ;;  %v15511_v33 = vld [vmem:[#allocation39_spill] sm:$0xff] }
 0x181   :  { %9091 = vmatpush3.bf16.msra.mxu1 %v11825_v1  ;;  %9053 = vmatprep.subr.bf16.mxu0 %v11967_v32  ;;  %15510 = vst [vmem:[#allocation80_spill] sm:$0xff] %v11986_v61  ;;  %v15512_v36 = vld [vmem:[#allocation111_spill] sm:$0xff]  ;;  %v11998_v32 = vpack.c.bf16 %v11649_v14, %v11633_v46 }
 0x182   :  { %9093 = vmatprep.subr.bf16.mxu1 %v11818_v13  ;;  %v11992_v28 = vpack.c.bf16 %v15512_v36, %v15511_v33 }
 0x184   :  { %9055 = vmatpush3.bf16.msra.mxu0 %v11974_v11  ;;  %15513 = vst [vmem:[#allocation88_spill] sm:$0xff] %v11992_v28  ;;  %v12004_v11 = vpack.c.bf16 %v11667_v58, %v11662_v27 }
 0x185   :  { %9095 = vmatpush3.bf16.msra.mxu1 %v11851_v55  ;;  %9057 = vmatprep.subr.bf16.mxu0 %v11980_v4  ;;  %v12010_v4 = vpack.c.bf16 %v15437_v56, %v15435_v7  ;;  %v12029_v56 = vpack.c.bf16 %v11235_v10, %v15451_v20  ;;  %v15515_v7 = vand.u32 4294901760, %v11875_v53  ;;  %v15517_v10 = vand.u32 4294901760, %v11287_v42 }
 0x186   :  { %9097 = vmatprep.subr.bf16.mxu1 %v11844_v43  ;;  %v15524_v42 = vand.u32 4294901760, %v15495_v8  ;;  %v15530_v8 = vand.u32 4294901760, %v15501_v60  ;;  %v15537_v60 = vand.u32 4294901760, %v15508_v45  ;;  %v15543_v45 = vand.u32 4294901760, %v15512_v36 }
 0x187   :  { %15514 = vst [vmem:[#allocation89_spill] sm:$0xff] %v12010_v4  ;;  %v15549_v36 = vand.u32 4294901760, %v11667_v58 }
 0x188   :  { %9059 = vmatpush3.bf16.msra.mxu0 %v11986_v61  ;;  %v12016_v61 = vpack.c.bf16 %v11706_v22, %v11701_v54 }
 0x189   :  { %9099 = vmatpush3.bf16.msra.mxu1 %v11871_v48  ;;  %9061 = vmatprep.subr.bf16.mxu0 %v11992_v28  ;;  %v12022_v28 = vpack.c.bf16 %v11215_v21, %v11210_v44  ;;  %v15516_v44 = vand.u32 4294901760, %v11892_v37  ;;  %v15518_v21 = vand.u32 4294901760, %v11292_v25  ;;  %v15525_v25 = vand.u32 4294901760, %v15496_v31 }
 0x18a   :  { %9101 = vmatprep.subr.bf16.mxu1 %v11884_v26  ;;  %v15531_v31 = vand.u32 4294901760, %v15502_v0  ;;  %v15536_v0 = vand.u32 4294901760, %v15507_v30 }
 0x18b   :  { %v12047_v20 = vpack.c.bf16 %v15518_v21, %v15517_v10  ;;  %v12064_v10 = vpack.c.bf16 %v15525_v25, %v15524_v42  ;;  %v15551_v42 = vld [vmem:[#allocation52_spill] sm:$0xff] }
 0x18c   :  { %9063 = vmatpush3.bf16.msra.mxu0 %v11998_v32  ;;  %v2220_v25 = vmul.f32 %v15551_v42, %v15551_v42  ;;  %v15582_v42 = vld [vmem:[#allocation18_spill] sm:$0xff] }
 0x18d   :  { %9103 = vmatpush3.bf16.msra.mxu1 %v11900_v40  ;;  %9065 = vmatprep.subr.bf16.mxu0 %v12004_v11  ;;  %15519 = vst [vmem:[#allocation92_spill] sm:$0xff] %v12047_v20  ;;  %15526 = vst [vmem:[#allocation99_spill] sm:$0xff] %v12064_v10 }
 0x18e   :  { %9105 = vmatprep.subr.bf16.mxu1 %v11913_v16  ;;  %v12148_v58 = vand.u32 4294901760, %v2220_v25 }
 0x190   :  { %9067 = vmatpush3.bf16.msra.mxu0 %v12010_v4  ;;  %v12036_v4 = vpack.c.bf16 %v15460_v34, %v11255_v52  ;;  %v15521_v52 = vand.u32 4294901760, %v11297_v39  ;;  %v15522_v34 = vand.u32 4294901760, %v11317_v15  ;;  %v15527_v15 = vand.u32 4294901760, %v15498_v41 }
 0x191   :  { %9107 = vmatpush3.bf16.msra.mxu1 %v11923_v38  ;;  %9069 = vmatprep.subr.bf16.mxu0 %v12016_v61  ;;  %v15528_v39 = vand.u32 4294901760, %v15499_v24  ;;  %v15533_v24 = vand.u32 4294901760, %v15504_v2  ;;  %v12101_v41 = vpack.c.bf16 %v15537_v60, %v15536_v0  ;;  %v15561_v0 = vld [vmem:[#allocation85_spill] sm:$0xff] }
 0x192   :  { %9141 = vmatprep.subr.bf16.mxu1 %v11530_v6  ;;  %v15562_v60 = vld [vmem:[#allocation13_spill] sm:$0xff] }
 0x193   :  { %v12075_v21 = vpack.c.bf16 %v15528_v39, %v15527_v15  ;;  %15538 = vst [vmem:[#allocation37_spill] sm:$0xff] %v12101_v41  ;;  %v15555_v15 = vld [vmem:[#allocation25_spill] sm:$0xff]  ;;  %v15556_v39 = vld [vmem:[#allocation7_spill] sm:$0xff] }
 0x194   :  { %1917 = vmatmul.mubr.f32.vlgmr.msra.gmra.mrb[20].mxu1 %v15515_v7  ;;  %9071 = vmatpush3.bf16.msra.mxu0 %v12022_v28  ;;  %v15520_v7 = vand.u32 4294901760, %v11905_v49 }
 0x195   :  { %1924 = vmatprep.mubr.f32.mxu1 %v15516_v44  ;;  %9143 = vmatpush3.bf16.msra.mxu1 %v11718_v57  ;;  %v12056_v44 = vpack.c.bf16 %v15522_v34, %v15521_v52  ;;  %15529 = vst [vmem:[#allocation102_spill] sm:$0xff] %v12075_v21 }
 0x196   :  { %9073 = vmatprep.subr.bf16.mxu0 %v12029_v56  ;;  %9145 = vmatprep.subr.bf16.mxu1 %v11712_v18 }
 0x197   :  { %15523 = vst [vmem:[#allocation93_spill] sm:$0xff] %v12056_v44 }
 0x198   :  { %1928 = vmatmul.mubr.f32.gmra.mrb[22].mxu1 %v15520_v7  ;;  %9075 = vmatpush3.bf16.msra.mxu0 %v12036_v4  ;;  %v12083_v7 = vpack.c.bf16 %v15531_v31, %v15530_v8  ;;  %v12155_v8 = vsub.f32 %v2220_v25, %v12148_v58  ;;  %v15559_v31 = vld [vmem:[#allocation84_spill] sm:$0xff]  ;;  %v15569_v25 = vld [vmem:[#allocation11_spill] sm:$0xff] }
 0x199   :  { %9147 = vmatpush3.bf16.msra.mxu1 %v11752_v59  ;;  %2205 = vmatprep.mubr.f32.mxu1 %v11599_v51 }
 0x19a   :  { %9109 = vmatprep.subr.bf16.mxu0 %v12047_v20  ;;  %9149 = vmatprep.subr.bf16.mxu1 %v11766_v35  ;;  %15532 = vst [vmem:[#allocation106_spill] sm:$0xff] %v12083_v7 }
 0x19b   :  { %1800 = vmatmul.mubr.f32.vlgmr.msra.gmra.mrb[20].mxu0 %v11875_v53  ;;  %v15534_v53 = vand.u32 4294901760, %v15505_v50  ;;  %v15542_v50 = vand.u32 4294901760, %v15511_v33  ;;  %v15548_v33 = vand.u32 4294901760, %v11662_v27 }
 0x19c   :  { %1806 = vmatprep.mubr.f32.mxu0 %v11892_v37  ;;  %9111 = vmatpush3.bf16.msra.mxu0 %v12056_v44 }
 0x19d   :  { %9151 = vmatpush3.bf16.msra.mxu1 %v11793_v23  ;;  %9113 = vmatprep.subr.bf16.mxu0 %v12064_v10  ;;  %v12093_v37 = vpack.c.bf16 %v15534_v53, %v15533_v24  ;;  %v12117_v30 = vpack.c.bf16 %v15543_v45, %v15542_v50  ;;  %v12133_v34 = vpack.c.bf16 %v15549_v36, %v15548_v33  ;;  %v15560_v24 = vld [vmem:[#allocation12_spill] sm:$0xff]  ;;  %v2325_v53 = vand.u32 4294901760, %v12155_v8  ;;  %v15565_v45 = vld [vmem:[#allocation9_spill] sm:$0xff]  ;;  %v15596_v10 = vld [vmem:[#allocation58_spill] sm:$0xff] }
 0x19e   :  { %9153 = vmatprep.subr.bf16.mxu1 %v11786_v5  ;;  %v15568_v33 = vld [vmem:[#allocation20_spill] sm:$0xff] }
 0x19f   :  { %1809 = vmatmul.mubr.f32.gmra.mrb[22].mxu0 %v11905_v49  ;;  %15535 = vst [vmem:[#allocation107_spill] sm:$0xff] %v12093_v37  ;;  %v15540_v49 = vand.u32 4294901760, %v11606_v19  ;;  %15544 = vst [vmem:[#allocation39_spill] sm:$0xff] %v12117_v30  ;;  %v15546_v19 = vand.u32 4294901760, %v11649_v14  ;;  %v15552_v14 = vand.u32 4294901760, %v11701_v54  ;;  %v15557_v54 = vld [vmem:[#allocation83_spill] sm:$0xff]  ;;  %v2326_v50 = vsub.f32 %v12155_v8, %v2325_v53 }
 0x1a0   :  { %9115 = vmatpush3.bf16.msra.mxu0 %v12075_v21  ;;  %2094 = vmatprep.mubr.f32.mxu0 %v11599_v51  ;;  %v15539_v51 = vand.u32 4294901760, %v11591_v62  ;;  %v15545_v62 = vand.u32 4294901760, %v11633_v46  ;;  %15550 = vst [vmem:[#allocation113_spill] sm:$0xff] %v12133_v34  ;;  %v15553_v46 = vand.u32 4294901760, %v11706_v22  ;;  %v15558_v22 = vld [vmem:[#allocation8_spill] sm:$0xff] }
 0x1a1   :  { %9155 = vmatpush3.bf16.msra.mxu1 %v11825_v1  ;;  %9117 = vmatprep.subr.bf16.mxu0 %v12083_v7  ;;  %v2327_v36 = vand.u32 4294901760, %v2326_v50  ;;  %v15578_v50 = vld [vmem:[#allocation30_spill] sm:$0xff]  ;;  %v15595_v7 = vld [vmem:[#allocation57_spill] sm:$0xff] }
 0x1a2   :  { %9157 = vmatprep.subr.bf16.mxu1 %v11818_v13  ;;  %v12109_v2 = vpack.c.bf16 %v15540_v49, %v15539_v51  ;;  %v12125_v52 = vpack.c.bf16 %v15546_v19, %v15545_v62  ;;  %v12145_v27 = vpack.c.bf16 %v15553_v46, %v15552_v14  ;;  %v15563_v51 = vld [vmem:[#allocation5_spill] sm:$0xff]  ;;  %v15564_v49 = vld [vmem:[#allocation15_spill] sm:$0xff]  ;;  %v15567_v19 = vld [vmem:[#allocation6_spill] sm:$0xff] }
 0x1a3   :  { %v15566_v62 = vld [vmem:[#allocation17_spill] sm:$0xff]  ;;  %v15571_v46 = vld [vmem:[#allocation10_spill] sm:$0xff] }
 0x1a4   :  { %9119 = vmatpush3.bf16.msra.mxu0 %v12093_v37  ;;  %15541 = vst [vmem:[#allocation108_spill] sm:$0xff] %v12109_v2  ;;  %15547 = vst [vmem:[#allocation111_spill] sm:$0xff] %v12125_v52  ;;  %v15570_v14 = vld [vmem:[#allocation21_spill] sm:$0xff] }
 0x1a5   :  { %9159 = vmatpush3.bf16.msra.mxu1 %v11851_v55  ;;  %9121 = vmatprep.subr.bf16.mxu0 %v12101_v41  ;;  %15554 = vst [vmem:[#allocation114_spill] sm:$0xff] %v12145_v27  ;;  %v15594_v41 = vld [vmem:[#allocation47_spill] sm:$0xff] }
 0x1a6   :  { %9161 = vmatprep.subr.bf16.mxu1 %v11844_v43 }
 0x1a8   :  { %9123 = vmatpush3.bf16.msra.mxu0 %v12109_v2 }
 0x1a9   :  { %9163 = vmatpush3.bf16.msra.mxu1 %v11871_v48  ;;  %9125 = vmatprep.subr.bf16.mxu0 %v12117_v30  ;;  %v15593_v30 = vld [vmem:[#allocation46_spill] sm:$0xff] }
 0x1aa   :  { %9165 = vmatprep.subr.bf16.mxu1 %v11884_v26 }
 0x1ac   :  { %9127 = vmatpush3.bf16.msra.mxu0 %v12125_v52 }
 0x1ad   :  { %9167 = vmatpush3.bf16.msra.mxu1 %v11900_v40  ;;  %9129 = vmatprep.subr.bf16.mxu0 %v12133_v34  ;;  %v15590_v34 = vld [vmem:[#allocation40_spill] sm:$0xff] }
 0x1ae   :  { %9169 = vmatprep.subr.bf16.mxu1 %v11913_v16 }
 0x1b0   :  { %9131 = vmatpush3.bf16.msra.mxu0 %v15555_v15  ;;  %v15589_v15 = vld [vmem:[#allocation43_spill] sm:$0xff] }
 0x1b1   :  { %9171 = vmatpush3.bf16.msra.mxu1 %v11923_v38  ;;  %9133 = vmatprep.subr.bf16.mxu0 %v12145_v27  ;;  %v15588_v27 = vld [vmem:[#allocation42_spill] sm:$0xff] }
 0x1b2   :  { %9205 = vmatprep.subr.bf16.mxu1 %v15556_v39  ;;  %v15574_v39 = vld [vmem:[#allocation50_spill] sm:$0xff] }
 0x1b4   :  { %2207 = vmatmul.mubr.f32.vlgmr.msra.gmra.mrb[24].mxu1 %v11854_v9  ;;  %9135 = vmatpush3.bf16.msra.mxu0 %v15557_v54 }
 0x1b5   :  { %2212 = vmatprep.mubr.f32.mxu1 %v11861_v12  ;;  %9207 = vmatpush3.bf16.msra.mxu1 %v15558_v22  ;;  %v2219_v22 = vmul.f32 %v15574_v39, %v15574_v39  ;;  %v15583_v39 = vld [vmem:[#allocation34_spill] sm:$0xff] }
 0x1b6   :  { %9137 = vmatprep.subr.bf16.mxu0 %v15559_v31  ;;  %9209 = vmatprep.subr.bf16.mxu1 %v15560_v24  ;;  %v15575_v24 = vld [vmem:[#allocation27_spill] sm:$0xff]  ;;  %v15586_v31 = vld [vmem:[#allocation26_spill] sm:$0xff] }
 0x1b8   :  { %2214 = vmatmul.mubr.f32.gmra.mrb[26].mxu1 %v11878_v63  ;;  %9139 = vmatpush3.bf16.msra.mxu0 %v15561_v0  ;;  %v15584_v0 = vld [vmem:[#allocation29_spill] sm:$0xff] }
 0x1b9   :  { %9211 = vmatpush3.bf16.msra.mxu1 %v15562_v60  ;;  %2579 = vmatprep.mubr.f32.mxu1 %v12148_v58  ;;  %v15576_v60 = vld [vmem:[#allocation14_spill] sm:$0xff] }
 0x1ba   :  { %9173 = vmatprep.subr.bf16.mxu0 %v15563_v51  ;;  %9213 = vmatprep.subr.bf16.mxu1 %v15564_v49  ;;  %v15577_v49 = vld [vmem:[#allocation55_spill] sm:$0xff] }
 0x1bb   :  { %2096 = vmatmul.mubr.f32.vlgmr.msra.gmra.mrb[24].mxu0 %v11854_v9  ;;  %v15572_v9 = vld [vmem:[#allocation24_spill] sm:$0xff] }
 0x1bc   :  { %2101 = vmatprep.mubr.f32.mxu0 %v11861_v12  ;;  %9175 = vmatpush3.bf16.msra.mxu0 %v15565_v45  ;;  %v15573_v12 = vld [vmem:[#allocation16_spill] sm:$0xff] }
 0x1bd   :  { %9215 = vmatpush3.bf16.msra.mxu1 %v15566_v62  ;;  %9177 = vmatprep.subr.bf16.mxu0 %v15567_v19  ;;  %v15579_v62 = vld [vmem:[#allocation19_spill] sm:$0xff] }
 0x1be   :  { %9217 = vmatprep.subr.bf16.mxu1 %v15568_v33  ;;  %v12191_v33 = vand.u32 4294901760, %v2219_v22 }
 0x1bf   :  { %2103 = vmatmul.mubr.f32.gmra.mrb[26].mxu0 %v11878_v63  ;;  %v2224_v63 = vmul.f32 %v15577_v49, %v15577_v49 }
 0x1c0   :  { %9179 = vmatpush3.bf16.msra.mxu0 %v15569_v25  ;;  %2328 = vmatprep.mubr.f32.mxu0 %v2327_v36  ;;  %v15580_v36 = vld [vmem:[#allocation53_spill] sm:$0xff]  ;;  %v12202_v49 = vsub.f32 %v2219_v22, %v12191_v33 }
 0x1c1   :  { %9219 = vmatpush3.bf16.msra.mxu1 %v15570_v14  ;;  %9181 = vmatprep.subr.bf16.mxu0 %v15571_v46  ;;  %v2223_v14 = vmul.f32 %v15580_v36, %v15580_v36  ;;  %v15587_v36 = vld [vmem:[#allocation41_spill] sm:$0xff] }
 0x1c2   :  { %9221 = vmatprep.subr.bf16.mxu1 %v15572_v9  ;;  %v15581_v9 = vld [vmem:[#allocation33_spill] sm:$0xff] }
 0x1c3   :  { %v12206_v54 = vand.u32 4294901760, %v2223_v14 }
 0x1c4   :  { %9183 = vmatpush3.bf16.msra.mxu0 %v15573_v12 }
 0x1c5   :  { %9223 = vmatpush3.bf16.msra.mxu1 %v15575_v24  ;;  %9185 = vmatprep.subr.bf16.mxu0 %v15576_v60  ;;  %v12198_v24 = vand.u32 4294901760, %v2224_v63  ;;  %v12217_v22 = vsub.f32 %v2223_v14, %v12206_v54  ;;  %v15592_v14 = vld [vmem:[#allocation45_spill] sm:$0xff] }
 0x1c6   :  { %9225 = vmatprep.subr.bf16.mxu1 %v15578_v50  ;;  %v15585_v50 = vld [vmem:[#allocation35_spill] sm:$0xff] }
 0x1c8   :  { %9187 = vmatpush3.bf16.msra.mxu0 %v15579_v62 }
 0x1c9   :  { %9227 = vmatpush3.bf16.msra.mxu1 %v15581_v9  ;;  %9189 = vmatprep.subr.bf16.mxu0 %v15582_v42  ;;  %v12210_v9 = vsub.f32 %v2224_v63, %v12198_v24 }
 0x1ca   :  { %9229 = vmatprep.subr.bf16.mxu1 %v15583_v39  ;;  %v14807_v39 = vand.u32 4294901760, %v12202_v49 }
 0x1cc   :  { %9191 = vmatpush3.bf16.msra.mxu0 %v15584_v0  ;;  %v2332_v63 = vsub.f32 %v12202_v49, %v14807_v39 }
 0x1cd   :  { %9231 = vmatpush3.bf16.msra.mxu1 %v15585_v50  ;;  %9193 = vmatprep.subr.bf16.mxu0 %v15586_v31  ;;  %v2340_v50 = vand.u32 4294901760, %v12210_v9 }
 0x1ce   :  { %9233 = vmatprep.subr.bf16.mxu1 %v15587_v36  ;;  %v15591_v36 = vld [vmem:[#allocation44_spill] sm:$0xff]  ;;  %v2333_v39 = vand.u32 4294901760, %v2332_v63 }
 0x1cf   :  { %v2341_v52 = vsub.f32 %v12210_v9, %v2340_v50 }
 0x1d0   :  { %9195 = vmatpush3.bf16.msra.mxu0 %v15588_v27 }
 0x1d1   :  { %9235 = vmatpush3.bf16.msra.mxu1 %v15589_v15  ;;  %9197 = vmatprep.subr.bf16.mxu0 %v15590_v34  ;;  %v2346_v15 = vand.u32 4294901760, %v12217_v22  ;;  %v2342_v37 = vand.u32 4294901760, %v2341_v52  ;;  %v15601_v52 = vld [vmem:[#allocation69_spill] sm:$0xff] }
 0x1d2   :  { %9269 = vmatprep.subr.bf16.mxu1 %v15563_v51 }
 0x1d3   :  { %v2347_v2 = vsub.f32 %v12217_v22, %v2346_v15 }
 0x1d4   :  { %2581 = vmatmul.mubr.f32.vlgmr.msra.gmra.mrb[28].mxu1 %v12191_v33  ;;  %9199 = vmatpush3.bf16.msra.mxu0 %v15591_v36 }
 0x1d5   :  { %2586 = vmatprep.mubr.f32.mxu1 %v12198_v24  ;;  %9271 = vmatpush3.bf16.msra.mxu1 %v15565_v45  ;;  %v2348_v21 = vand.u32 4294901760, %v2347_v2 }
 0x1d6   :  { %9201 = vmatprep.subr.bf16.mxu0 %v15592_v14  ;;  %9273 = vmatprep.subr.bf16.mxu1 %v15567_v19 }
 0x1d8   :  { %2588 = vmatmul.mubr.f32.gmra.mrb[30].mxu1 %v12206_v54  ;;  %9203 = vmatpush3.bf16.msra.mxu0 %v15593_v30 }
 0x1d9   :  { %9275 = vmatpush3.bf16.msra.mxu1 %v15569_v25  ;;  %2839 = vmatprep.mubr.f32.mxu1 %v2325_v53  ;;  %v15597_v53 = vld [vmem:[#allocation61_spill] sm:$0xff] }
 0x1da   :  { %9237 = vmatprep.subr.bf16.mxu0 %v15594_v41  ;;  %9277 = vmatprep.subr.bf16.mxu1 %v15571_v46  ;;  %v15598_v41 = vld [vmem:[#allocation63_spill] sm:$0xff] }
 0x1db   :  { %2334 = vmatmul.mubr.f32.vlgmr.msra.gmra.mrb[28].mxu0 %v2333_v39 }
 0x1dc   :  { %2343 = vmatprep.mubr.f32.mxu0 %v2342_v37  ;;  %9239 = vmatpush3.bf16.msra.mxu0 %v15595_v7  ;;  %v15599_v37 = vld [vmem:[#allocation65_spill] sm:$0xff]  ;;  %v15600_v7 = vld [vmem:[#allocation66_spill] sm:$0xff] }
 0x1dd   :  { %9279 = vmatpush3.bf16.msra.mxu1 %v15573_v12  ;;  %9241 = vmatprep.subr.bf16.mxu0 %v15596_v10 }
 0x1de   :  { %9281 = vmatprep.subr.bf16.mxu1 %v15576_v60 }
 0x1df   :  { %2349 = vmatmul.mubr.f32.gmra.mrb[30].mxu0 %v2348_v21  ;;  %v7946_v10 = vpop.f32.mrb[4].mxu1 }
 0x1e0   :  { %9243 = vmatpush3.bf16.msra.mxu0 %v15597_v53  ;;  %2723 = vmatprep.mubr.f32.mxu0 %v12155_v8  ;;  %v7947_v21 = vpop.f32.mrb[5].mxu1  ;;  %v15602_v8 = vld [vmem:[#allocation70_spill] sm:$0xff] }
 0x1e1   :  { %9283 = vmatpush3.bf16.msra.mxu1 %v15579_v62  ;;  %9245 = vmatprep.subr.bf16.mxu0 %v15598_v41  ;;  %v7948_v2 = vadd.f32 %v7947_v21, %v7946_v10  ;;  %v15603_v41 = vld [vmem:[#allocation73_spill] sm:$0xff] }
 0x1e2   :  { %9285 = vmatprep.subr.bf16.mxu1 %v15582_v42 }
 0x1e3   :  { %v7949_v39 = vpop.f32.mrb[6].mxu1 }
 0x1e4   :  { %9247 = vmatpush3.bf16.msra.mxu0 %v15599_v37  ;;  %v7950_v63 = vpop.f32.mrb[7].mxu1  ;;  %v15604_v37 = vld [vmem:[#allocation78_spill] sm:$0xff] }
 0x1e5   :  { %9287 = vmatpush3.bf16.msra.mxu1 %v15584_v0  ;;  %9249 = vmatprep.subr.bf16.mxu0 %v15600_v7  ;;  %v7951_v53 = vadd.f32 %v7950_v63, %v7949_v39  ;;  %v15607_v63 = vand.u32 4294901760, %v12202_v49 }
 0x1e6   :  { %9289 = vmatprep.subr.bf16.mxu1 %v15586_v31 }
 0x1e7   :  { %v7908_v7 = vpop.f32.mrb[4].mxu0 }
 0x1e8   :  { %9251 = vmatpush3.bf16.msra.mxu0 %v15601_v52  ;;  %v7909_v10 = vpop.f32.mrb[5].mxu0  ;;  %v15605_v52 = vld [vmem:[#allocation22_spill] sm:$0xff] }
 0x1e9   :  { %9291 = vmatpush3.bf16.msra.mxu1 %v15588_v27  ;;  %9253 = vmatprep.subr.bf16.mxu0 %v15602_v8  ;;  %v7910_v21 = vadd.f32 %v7909_v10, %v7908_v7  ;;  %v15606_v8 = vld [vmem:[#allocation23_spill] sm:$0xff]  ;;  %v15609_v10 = vld [vmem:[#allocation48_spill] sm:$0xff] }
 0x1ea   :  { %9293 = vmatprep.subr.bf16.mxu1 %v15590_v34 }
 0x1eb   :  { %v739_v44 = vadd.f32 %v7948_v2, %v7910_v21  ;;  %v7911_v20 = vpop.f32.mrb[6].mxu0  ;;  %v15610_v2 = vld [vmem:[#allocation49_spill] sm:$0xff] }
 0x1ec   :  { %9255 = vmatpush3.bf16.msra.mxu0 %v15603_v41  ;;  %v7912_v39 = vpop.f32.mrb[7].mxu0 }
 0x1ed   :  { %9295 = vmatpush3.bf16.msra.mxu1 %v15591_v36  ;;  %9257 = vmatprep.subr.bf16.mxu0 %v15604_v37  ;;  %v7913_v41 = vadd.f32 %v7912_v39, %v7911_v20  ;;  %v15608_v37 = vld [vmem:[#allocation31_spill] sm:$0xff]  ;;  %v15612_v20 = vld [vmem:[#allocation86_spill] sm:$0xff]  ;;  %v15623_v39 = vld [vmem:[#allocation101_spill] sm:$0xff] }
 0x1ee   :  { %9297 = vmatprep.subr.bf16.mxu1 %v15592_v14 }
 0x1ef   :  { %v746_v7 = vadd.f32 %v7951_v53, %v7913_v41  ;;  %v15621_v53 = vld [vmem:[#allocation98_spill] sm:$0xff] }
 0x1f0   :  { %9259 = vmatpush3.bf16.msra.mxu0 %v15605_v52 }
 0x1f1   :  { %9299 = vmatpush3.bf16.msra.mxu1 %v15593_v30  ;;  %9261 = vmatprep.subr.bf16.mxu0 %v15606_v8 }
 0x1f2   :  { %9333 = vmatprep.subr.bf16.mxu1 %v15563_v51  ;;  %v15611_v51 = vld [vmem:[#allocation82_spill] sm:$0xff] }
 0x1f4   :  { %2843 = vmatmul.mubr.f32.vlgmr.msra.gmra.mrb[32].mxu1 %v15607_v63  ;;  %9263 = vmatpush3.bf16.msra.mxu0 %v15608_v37  ;;  %v15625_v37 = vld [vmem:[#allocation103_spill] sm:$0xff] }
 0x1f5   :  { %2850 = vmatprep.mubr.f32.mxu1 %v2340_v50  ;;  %9335 = vmatpush3.bf16.msra.mxu1 %v15565_v45  ;;  %v15613_v45 = vld [vmem:[#allocation87_spill] sm:$0xff] }
 0x1f6   :  { %9265 = vmatprep.subr.bf16.mxu0 %v15609_v10  ;;  %9337 = vmatprep.subr.bf16.mxu1 %v15567_v19  ;;  %v15614_v19 = vld [vmem:[#allocation90_spill] sm:$0xff] }
 0x1f8   :  { %2854 = vmatmul.mubr.f32.gmra.mrb[34].mxu1 %v2346_v15  ;;  %9267 = vmatpush3.bf16.msra.mxu0 %v15610_v2 }
 0x1f9   :  { %9339 = vmatpush3.bf16.msra.mxu1 %v15569_v25  ;;  %3131 = vmatprep.mubr.f32.mxu1 %v12148_v58  ;;  %v15615_v25 = vld [vmem:[#allocation91_spill] sm:$0xff] }
 0x1fa   :  { %9301 = vmatprep.subr.bf16.mxu0 %v15611_v51  ;;  %9341 = vmatprep.subr.bf16.mxu1 %v15571_v46  ;;  %v15616_v46 = vld [vmem:[#allocation94_spill] sm:$0xff] }
 0x1fb   :  { %2726 = vmatmul.mubr.f32.vlgmr.msra.gmra.mrb[32].mxu0 %v12202_v49 }
 0x1fc   :  { %2732 = vmatprep.mubr.f32.mxu0 %v12210_v9  ;;  %9303 = vmatpush3.bf16.msra.mxu0 %v15612_v20  ;;  %v15627_v20 = vld [vmem:[#allocation105_spill] sm:$0xff] }
 0x1fd   :  { %9343 = vmatpush3.bf16.msra.mxu1 %v15573_v12  ;;  %9305 = vmatprep.subr.bf16.mxu0 %v15613_v45  ;;  %v15617_v12 = vld [vmem:[#allocation95_spill] sm:$0xff]  ;;  %v15628_v45 = vld [vmem:[#allocation36_spill] sm:$0xff] }
 0x1fe   :  { %9345 = vmatprep.subr.bf16.mxu1 %v15576_v60 }
 0x1ff   :  { %2735 = vmatmul.mubr.f32.gmra.mrb[34].mxu0 %v12217_v22  ;;  %v8022_v49 = vpop.f32.mrb[8].mxu1  ;;  %v15618_v22 = vld [vmem:[#allocation96_spill] sm:$0xff] }
 0x200   :  { %9307 = vmatpush3.bf16.msra.mxu0 %v15614_v19  ;;  %3020 = vmatprep.mubr.f32.mxu0 %v12148_v58  ;;  %v8023_v60 = vpop.f32.mrb[9].mxu1  ;;  %v15619_v58 = vld [vmem:[#allocation97_spill] sm:$0xff] }
 0x201   :  { %9347 = vmatpush3.bf16.msra.mxu1 %v15579_v62  ;;  %9309 = vmatprep.subr.bf16.mxu0 %v15615_v25  ;;  %v8024_v9 = vadd.f32 %v8023_v60, %v8022_v49  ;;  %v15620_v62 = vld [vmem:[#allocation60_spill] sm:$0xff]  ;;  %v15630_v25 = vld [vmem:[#allocation38_spill] sm:$0xff] }
 0x202   :  { %9349 = vmatprep.subr.bf16.mxu1 %v15582_v42  ;;  %v2222_v42 = vmul.f32 %v15620_v62, %v15620_v62  ;;  %v15632_v49 = vld [vmem:[#allocation112_spill] sm:$0xff]  ;;  %v12831_v62 = vld [vmem:[%s14570_s3 + $0x130] sm:$0xff] }
 0x203   :  { %v8025_v50 = vpop.f32.mrb[10].mxu1  ;;  %15688 = vst [vmem:[#allocation33_spill] sm:$0xff] %v12831_v62 }
 0x204   :  { %9311 = vmatpush3.bf16.msra.mxu0 %v15616_v46 }
 0x205   :  { %9351 = vmatpush3.bf16.msra.mxu1 %v15584_v0  ;;  %9313 = vmatprep.subr.bf16.mxu0 %v15617_v12  ;;  %v8026_v0 = vpop.f32.mrb[11].mxu1  ;;  %v15631_v12 = vld [vmem:[#allocation110_spill] sm:$0xff] }
 0x206   :  { %9353 = vmatprep.subr.bf16.mxu1 %v15586_v31  ;;  %v8027_v15 = vadd.f32 %v8026_v0, %v8025_v50  ;;  %v15622_v31 = vld [vmem:[#allocation100_spill] sm:$0xff]  ;;  %v15638_v0 = vld [vmem:[#allocation54_spill] sm:$0xff] }
 0x207   :  { %v7984_v21 = vpop.f32.mrb[8].mxu0 }
 0x208   :  { %9315 = vmatpush3.bf16.msra.mxu0 %v15618_v22  ;;  %v7985_v52 = vpop.f32.mrb[9].mxu0 }
 0x209   :  { %9355 = vmatpush3.bf16.msra.mxu1 %v15588_v27  ;;  %9317 = vmatprep.subr.bf16.mxu0 %v15619_v58  ;;  %v12300_v27 = vand.u32 4294901760, %v2222_v42  ;;  %v7986_v8 = vadd.f32 %v7985_v52, %v7984_v21 }
 0x20a   :  { %9357 = vmatprep.subr.bf16.mxu1 %v15590_v34  ;;  %v15624_v34 = vld [vmem:[#allocation28_spill] sm:$0xff] }
 0x20b   :  { %v884_v63 = vadd.f32 %v7986_v8, %v739_v44  ;;  %v7987_v41 = vpop.f32.mrb[10].mxu0  ;;  %v15629_v44 = vld [vmem:[#allocation109_spill] sm:$0xff] }
 0x20c   :  { %9319 = vmatpush3.bf16.msra.mxu0 %v15621_v53  ;;  %v7988_v10 = vpop.f32.mrb[11].mxu0 }
 0x20d   :  { %9359 = vmatpush3.bf16.msra.mxu1 %v15591_v36  ;;  %9321 = vmatprep.subr.bf16.mxu0 %v15622_v31  ;;  %v12307_v36 = vsub.f32 %v2222_v42, %v12300_v27  ;;  %v7989_v2 = vadd.f32 %v7988_v10, %v7987_v41  ;;  %v1001_v51 = vadd.f32 %v8024_v9, %v884_v63  ;;  %v15636_v9 = vld [vmem:[#allocation56_spill] sm:$0xff]  ;;  %v15641_v41 = vld [vmem:[#allocation81_spill] sm:$0xff] }
 0x20e   :  { %9361 = vmatprep.subr.bf16.mxu1 %v15592_v14  ;;  %v15626_v14 = vld [vmem:[#allocation104_spill] sm:$0xff] }
 0x20f   :  { %v3243_v19 = vand.u32 4294901760, %v12307_v36 }
 0x210   :  { %9323 = vmatpush3.bf16.msra.mxu0 %v15623_v39  ;;  %v15640_v39 = vld [vmem:[#allocation75_spill] sm:$0xff] }
 0x211   :  { %9363 = vmatpush3.bf16.msra.mxu1 %v15593_v30  ;;  %9325 = vmatprep.subr.bf16.mxu0 %v15624_v34  ;;  %v893_v30 = vadd.f32 %v7989_v2, %v746_v7  ;;  %v3244_v7 = vsub.f32 %v12307_v36, %v3243_v19 }
 0x212   :  { %9397 = vmatprep.subr.bf16.mxu1 %v15625_v37 }
 0x213   :  { %v12318_v46 = vadd.f32 %v8027_v15, %v893_v30  ;;  %v3245_v60 = vand.u32 4294901760, %v3244_v7  ;;  %v15639_v15 = vld [vmem:[#allocation74_spill] sm:$0xff] }
 0x214   :  { %3133 = vmatmul.mubr.f32.vlgmr.msra.gmra.mrb[36].mxu1 %v12191_v33  ;;  %9327 = vmatpush3.bf16.msra.mxu0 %v15626_v14 }
 0x215   :  { %3138 = vmatprep.mubr.f32.mxu1 %v12198_v24  ;;  %9399 = vmatpush3.bf16.msra.mxu1 %v15627_v20  ;;  %v15642_v20 = vld [vmem:[#allocation32_spill] sm:$0xff] }
 0x216   :  { %9329 = vmatprep.subr.bf16.mxu0 %v15628_v45  ;;  %9401 = vmatprep.subr.bf16.mxu1 %v15629_v44 }
 0x218   :  { %3140 = vmatmul.mubr.f32.gmra.mrb[38].mxu1 %v12206_v54  ;;  %9331 = vmatpush3.bf16.msra.mxu0 %v15630_v25 }
 0x219   :  { %9403 = vmatpush3.bf16.msra.mxu1 %v15631_v12  ;;  %3497 = vmatprep.mubr.f32.mxu1 %v12300_v27 }
 0x21a   :  { %9365 = vmatprep.subr.bf16.mxu0 %v11530_v6  ;;  %9405 = vmatprep.subr.bf16.mxu1 %v15632_v49 }
 0x21b   :  { %3022 = vmatmul.mubr.f32.vlgmr.msra.gmra.mrb[36].mxu0 %v12191_v33  ;;  %v15633_v33 = vld [vmem:[#allocation59_spill] sm:$0xff] }
 0x21c   :  { %3027 = vmatprep.mubr.f32.mxu0 %v12198_v24  ;;  %9367 = vmatpush3.bf16.msra.mxu0 %v11718_v57  ;;  %v15634_v24 = vld [vmem:[#allocation51_spill] sm:$0xff] }
 0x21d   :  { %9407 = vmatpush3.bf16.msra.mxu1 %v11725_v17  ;;  %9369 = vmatprep.subr.bf16.mxu0 %v11712_v18  ;;  %v2221_v17 = vmul.f32 %v15633_v33, %v15633_v33 }
 0x21e   :  { %9409 = vmatprep.subr.bf16.mxu1 %v11735_v3  ;;  %v15635_v3 = vld [vmem:[#allocation64_spill] sm:$0xff] }
 0x21f   :  { %3029 = vmatmul.mubr.f32.gmra.mrb[38].mxu0 %v12206_v54  ;;  %v2226_v54 = vmul.f32 %v15635_v3, %v15635_v3  ;;  %v12347_v58 = vand.u32 4294901760, %v2221_v17  ;;  %v12826_v3 = vld [vmem:[%s14570_s3 + $0x110] sm:$0xff] }
 0x220   :  { %9371 = vmatpush3.bf16.msra.mxu0 %v11752_v59  ;;  %3246 = vmatprep.mubr.f32.mxu0 %v3245_v60  ;;  %15687 = vst [vmem:[#allocation19_spill] sm:$0xff] %v12826_v3 }
 0x221   :  { %9411 = vmatpush3.bf16.msra.mxu1 %v11770_v29  ;;  %9373 = vmatprep.subr.bf16.mxu0 %v11766_v35  ;;  %v12354_v53 = vand.u32 4294901760, %v2226_v54  ;;  %v12358_v52 = vsub.f32 %v2221_v17, %v12347_v58 }
 0x222   :  { %9413 = vmatprep.subr.bf16.mxu1 %v11773_v47  ;;  %v15637_v47 = vld [vmem:[#allocation62_spill] sm:$0xff] }
 0x223   :  { %v2225_v42 = vmul.f32 %v15637_v47, %v15637_v47  ;;  %v12366_v37 = vsub.f32 %v2226_v54, %v12354_v53  ;;  %v3249_v14 = vand.u32 4294901760, %v12358_v52  ;;  %v12812_v47 = vld [vmem:[%s14570_s3 + $0x100] sm:$0xff] }
 0x224   :  { %9375 = vmatpush3.bf16.msra.mxu0 %v11793_v23 }
 0x225   :  { %9415 = vmatpush3.bf16.msra.mxu1 %v15634_v24  ;;  %9377 = vmatprep.subr.bf16.mxu0 %v11786_v5  ;;  %v12362_v34 = vand.u32 4294901760, %v2225_v42  ;;  %v3258_v25 = vand.u32 4294901760, %v12366_v37  ;;  %v3250_v60 = vsub.f32 %v12358_v52, %v3249_v14 }
 0x226   :  { %9417 = vmatprep.subr.bf16.mxu1 %v15636_v9  ;;  %v8098_v22 = vpop.f32.mrb[12].mxu1 }
 0x227   :  { %v8099_v29 = vpop.f32.mrb[13].mxu1  ;;  %v12373_v30 = vsub.f32 %v2225_v42, %v12362_v34  ;;  %v3259_v24 = vsub.f32 %v12366_v37, %v3258_v25  ;;  %v3251_v9 = vand.u32 4294901760, %v3250_v60  ;;  %v15644_v42 = vld [vmem:[#allocation68_spill] sm:$0xff] }
 0x228   :  { %9379 = vmatpush3.bf16.msra.mxu0 %v11825_v1  ;;  %v8100_v50 = vadd.f32 %v8099_v29, %v8098_v22  ;;  %v8060_v63 = vpop.f32.mrb[12].mxu0  ;;  %v15643_v22 = vld [vmem:[#allocation67_spill] sm:$0xff] }
 0x229   :  { %9419 = vmatpush3.bf16.msra.mxu1 %v15638_v0  ;;  %9381 = vmatprep.subr.bf16.mxu0 %v11818_v13  ;;  %v8061_v10 = vpop.f32.mrb[13].mxu0  ;;  %v3260_v29 = vand.u32 4294901760, %v3259_v24  ;;  %v15645_v0 = vld [vmem:[#allocation71_spill] sm:$0xff] }
 0x22a   :  { %9421 = vmatprep.subr.bf16.mxu1 %v15639_v15  ;;  %v8101_v31 = vpop.f32.mrb[14].mxu1  ;;  %v8062_v2 = vadd.f32 %v8061_v10, %v8060_v63  ;;  %v15647_v15 = vld [vmem:[#allocation76_spill] sm:$0xff] }
 0x22b   :  { %v8102_v21 = vpop.f32.mrb[15].mxu1  ;;  %v15650_v63 = vld [vmem:[#allocation80_spill] sm:$0xff] }
 0x22c   :  { %9383 = vmatpush3.bf16.msra.mxu0 %v11851_v55  ;;  %v8103_v8 = vadd.f32 %v8102_v21, %v8101_v31  ;;  %v1180_v45 = vadd.f32 %v8062_v2, %v1001_v51  ;;  %v3264_v51 = vand.u32 4294901760, %v12373_v30  ;;  %v15648_v31 = vld [vmem:[#allocation77_spill] sm:$0xff]  ;;  %v15649_v21 = vld [vmem:[#allocation79_spill] sm:$0xff] }
 0x22d   :  { %9423 = vmatpush3.bf16.msra.mxu1 %v15640_v39  ;;  %9385 = vmatprep.subr.bf16.mxu0 %v11844_v43  ;;  %v8063_v44 = vpop.f32.mrb[14].mxu0 }
 0x22e   :  { %9425 = vmatprep.subr.bf16.mxu1 %v15641_v41  ;;  %v8064_v12 = vpop.f32.mrb[15].mxu0  ;;  %v1291_v7 = vadd.f32 %v8100_v50, %v1180_v45 }
 0x22f   :  { %v8065_v49 = vadd.f32 %v8064_v12, %v8063_v44 }
 0x230   :  { %9387 = vmatpush3.bf16.msra.mxu0 %v11871_v48 }
 0x231   :  { %9427 = vmatpush3.bf16.msra.mxu1 %v15642_v20  ;;  %9389 = vmatprep.subr.bf16.mxu0 %v11884_v26  ;;  %v1187_v17 = vadd.f32 %v8065_v49, %v12318_v46  ;;  %v3265_v46 = vsub.f32 %v12373_v30, %v3264_v51  ;;  %v15652_v49 = vld [vmem:[#allocation89_spill] sm:$0xff] }
 0x232   :  { %9461 = vmatprep.subr.bf16.mxu1 %v11530_v6 }
 0x233   :  { %v1298_v54 = vadd.f32 %v8103_v8, %v1187_v17  ;;  %v3266_v50 = vand.u32 4294901760, %v3265_v46 }
 0x234   :  { %3499 = vmatmul.mubr.f32.vlgmr.msra.gmra.mrb[40].mxu1 %v12347_v58  ;;  %9391 = vmatpush3.bf16.msra.mxu0 %v11900_v40 }
 0x235   :  { %3504 = vmatprep.mubr.f32.mxu1 %v12354_v53  ;;  %9463 = vmatpush3.bf16.msra.mxu1 %v11718_v57 }
 0x236   :  { %9393 = vmatprep.subr.bf16.mxu0 %v11913_v16  ;;  %9465 = vmatprep.subr.bf16.mxu1 %v11712_v18 }
 0x238   :  { %3506 = vmatmul.mubr.f32.gmra.mrb[42].mxu1 %v12362_v34  ;;  %9395 = vmatpush3.bf16.msra.mxu0 %v11923_v38 }
 0x239   :  { %9467 = vmatpush3.bf16.msra.mxu1 %v11752_v59  ;;  %3757 = vmatprep.mubr.f32.mxu1 %v3243_v19  ;;  %v15646_v19 = vld [vmem:[#allocation72_spill] sm:$0xff] }
 0x23a   :  { %9429 = vmatprep.subr.bf16.mxu0 %v15643_v22  ;;  %9469 = vmatprep.subr.bf16.mxu1 %v11766_v35 }
 0x23b   :  { %3252 = vmatmul.mubr.f32.vlgmr.msra.gmra.mrb[40].mxu0 %v3251_v9 }
 0x23c   :  { %3261 = vmatprep.mubr.f32.mxu0 %v3260_v29  ;;  %9431 = vmatpush3.bf16.msra.mxu0 %v15644_v42  ;;  %v15668_v42 = vld [vmem:[#allocation85_spill] sm:$0xff] }
 0x23d   :  { %9471 = vmatpush3.bf16.msra.mxu1 %v11793_v23  ;;  %9433 = vmatprep.subr.bf16.mxu0 %v15645_v0 }
 0x23e   :  { %9473 = vmatprep.subr.bf16.mxu1 %v11786_v5 }
 0x23f   :  { %3267 = vmatmul.mubr.f32.gmra.mrb[42].mxu0 %v3266_v50 }
 0x240   :  { %9435 = vmatpush3.bf16.msra.mxu0 %v15646_v19  ;;  %3641 = vmatprep.mubr.f32.mxu0 %v12307_v36  ;;  %v15651_v36 = vld [vmem:[#allocation88_spill] sm:$0xff] }
 0x241   :  { %9475 = vmatpush3.bf16.msra.mxu1 %v11825_v1  ;;  %9437 = vmatprep.subr.bf16.mxu0 %v15647_v15 }
 0x242   :  { %9477 = vmatprep.subr.bf16.mxu1 %v11818_v13 }
 0x244   :  { %9439 = vmatpush3.bf16.msra.mxu0 %v15648_v31 }
 0x245   :  { %9479 = vmatpush3.bf16.msra.mxu1 %v11851_v55  ;;  %9441 = vmatprep.subr.bf16.mxu0 %v15649_v21 }
 0x246   :  { %9481 = vmatprep.subr.bf16.mxu1 %v11844_v43  ;;  %v8174_v8 = vpop.f32.mrb[16].mxu1 }
 0x247   :  { %v8175_v39 = vpop.f32.mrb[17].mxu1 }
 0x248   :  { %9443 = vmatpush3.bf16.msra.mxu0 %v15650_v63  ;;  %v8176_v41 = vadd.f32 %v8175_v39, %v8174_v8 }
 0x249   :  { %9483 = vmatpush3.bf16.msra.mxu1 %v11871_v48  ;;  %9445 = vmatprep.subr.bf16.mxu0 %v15651_v36 }
 0x24a   :  { %9485 = vmatprep.subr.bf16.mxu1 %v11884_v26  ;;  %v8177_v10 = vpop.f32.mrb[18].mxu1 }
 0x24b   :  { %v8178_v2 = vpop.f32.mrb[19].mxu1 }
 0x24c   :  { %9447 = vmatpush3.bf16.msra.mxu0 %v11998_v32  ;;  %v8179_v20 = vadd.f32 %v8178_v2, %v8177_v10 }
 0x24d   :  { %9487 = vmatpush3.bf16.msra.mxu1 %v11900_v40  ;;  %9449 = vmatprep.subr.bf16.mxu0 %v12004_v11 }
 0x24e   :  { %v8136_v45 = vpop.f32.mrb[16].mxu0  ;;  %9489 = vmatprep.subr.bf16.mxu1 %v11913_v16 }
 0x24f   :  { %v8137_v44 = vpop.f32.mrb[17].mxu0 }
 0x250   :  { %v8138_v12 = vadd.f32 %v8137_v44, %v8136_v45  ;;  %9451 = vmatpush3.bf16.msra.mxu0 %v15652_v49 }
 0x251   :  { %9491 = vmatpush3.bf16.msra.mxu1 %v11923_v38  ;;  %9453 = vmatprep.subr.bf16.mxu0 %v12016_v61 }
 0x252   :  { %v1410_v60 = vadd.f32 %v8138_v12, %v1291_v7  ;;  %v8139_v17 = vpop.f32.mrb[18].mxu0  ;;  %9525 = vmatprep.subr.bf16.mxu1 %v11530_v6  ;;  %v15664_v7 = vld [vmem:[#allocation25_spill] sm:$0xff] }
 0x253   :  { %v8140_v32 = vpop.f32.mrb[19].mxu0 }
 0x254   :  { %v8141_v24 = vadd.f32 %v8140_v32, %v8139_v17  ;;  %3761 = vmatmul.mubr.f32.vlgmr.msra.gmra.mrb[44].mxu1 %v3249_v14  ;;  %9455 = vmatpush3.bf16.msra.mxu0 %v12022_v28  ;;  %v1657_v11 = vadd.f32 %v8176_v41, %v1410_v60  ;;  %v15653_v28 = vld [vmem:[#allocation92_spill] sm:$0xff]  ;;  %v15663_v14 = vld [vmem:[#allocation113_spill] sm:$0xff] }
 0x255   :  { %3768 = vmatprep.mubr.f32.mxu1 %v3258_v25  ;;  %9527 = vmatpush3.bf16.msra.mxu1 %v11718_v57  ;;  %v15654_v57 = vld [vmem:[#allocation93_spill] sm:$0xff] }
 0x256   :  { %v1425_v9 = vadd.f32 %v8141_v24, %v1298_v54  ;;  %9457 = vmatprep.subr.bf16.mxu0 %v12029_v56  ;;  %9529 = vmatprep.subr.bf16.mxu1 %v11712_v18  ;;  %v15655_v18 = vld [vmem:[#allocation99_spill] sm:$0xff]  ;;  %v15660_v56 = vld [vmem:[#allocation108_spill] sm:$0xff] }
 0x258   :  { %3772 = vmatmul.mubr.f32.gmra.mrb[46].mxu1 %v3264_v51  ;;  %9459 = vmatpush3.bf16.msra.mxu0 %v12036_v4  ;;  %v1664_v6 = vadd.f32 %v8179_v20, %v1425_v9  ;;  %v15658_v4 = vld [vmem:[#allocation107_spill] sm:$0xff] }
 0x259   :  { %9531 = vmatpush3.bf16.msra.mxu1 %v11752_v59  ;;  %4049 = vmatprep.mubr.f32.mxu1 %v12300_v27  ;;  %v15656_v59 = vld [vmem:[#allocation102_spill] sm:$0xff] }
 0x25a   :  { %9493 = vmatprep.subr.bf16.mxu0 %v15653_v28  ;;  %9533 = vmatprep.subr.bf16.mxu1 %v11766_v35  ;;  %v15657_v35 = vld [vmem:[#allocation106_spill] sm:$0xff] }
 0x25b   :  { %3644 = vmatmul.mubr.f32.vlgmr.msra.gmra.mrb[44].mxu0 %v12358_v52 }
 0x25c   :  { %3650 = vmatprep.mubr.f32.mxu0 %v12366_v37  ;;  %9495 = vmatpush3.bf16.msra.mxu0 %v15654_v57  ;;  %v15662_v37 = vld [vmem:[#allocation111_spill] sm:$0xff] }
 0x25d   :  { %9535 = vmatpush3.bf16.msra.mxu1 %v11793_v23  ;;  %9497 = vmatprep.subr.bf16.mxu0 %v15655_v18  ;;  %v15659_v23 = vld [vmem:[#allocation37_spill] sm:$0xff] }
 0x25e   :  { %9537 = vmatprep.subr.bf16.mxu1 %v11786_v5 }
 0x25f   :  { %3653 = vmatmul.mubr.f32.gmra.mrb[46].mxu0 %v12373_v30 }
 0x260   :  { %9499 = vmatpush3.bf16.msra.mxu0 %v15656_v59  ;;  %3938 = vmatprep.mubr.f32.mxu0 %v12300_v27 }
 0x261   :  { %9539 = vmatpush3.bf16.msra.mxu1 %v11825_v1  ;;  %9501 = vmatprep.subr.bf16.mxu0 %v15657_v35  ;;  %v15661_v1 = vld [vmem:[#allocation39_spill] sm:$0xff] }
 0x262   :  { %9541 = vmatprep.subr.bf16.mxu1 %v11818_v13 }
 0x264   :  { %9503 = vmatpush3.bf16.msra.mxu0 %v15658_v4 }
 0x265   :  { %9543 = vmatpush3.bf16.msra.mxu1 %v11851_v55  ;;  %9505 = vmatprep.subr.bf16.mxu0 %v15659_v23 }
 0x266   :  { %9545 = vmatprep.subr.bf16.mxu1 %v11844_v43 }
 0x267   :  { %v8250_v5 = vpop.f32.mrb[20].mxu1 }
 0x268   :  { %v8251_v61 = vpop.f32.mrb[21].mxu1  ;;  %9507 = vmatpush3.bf16.msra.mxu0 %v15660_v56 }
 0x269   :  { %v8252_v52 = vadd.f32 %v8251_v61, %v8250_v5  ;;  %9547 = vmatpush3.bf16.msra.mxu1 %v11871_v48  ;;  %9509 = vmatprep.subr.bf16.mxu0 %v15661_v1  ;;  %v15665_v48 = vld [vmem:[#allocation114_spill] sm:$0xff] }
 0x26a   :  { %9549 = vmatprep.subr.bf16.mxu1 %v11884_v26  ;;  %v12484_v1 = vld [vmem:[%s14570_s3 + $0x8] sm:$0xff] }
 0x26b   :  { %v8253_v13 = vpop.f32.mrb[22].mxu1 }
 0x26c   :  { %v8254_v27 = vpop.f32.mrb[23].mxu1  ;;  %9511 = vmatpush3.bf16.msra.mxu0 %v15662_v37 }
 0x26d   :  { %v8255_v55 = vadd.f32 %v8254_v27, %v8253_v13  ;;  %9551 = vmatpush3.bf16.msra.mxu1 %v11900_v40  ;;  %9513 = vmatprep.subr.bf16.mxu0 %v15663_v14  ;;  %v15666_v40 = vld [vmem:[#allocation83_spill] sm:$0xff]  ;;  %v12489_v13 = vld [vmem:[%s14570_s3 + $0x28] sm:$0xff]  ;;  %v12494_v27 = vld [vmem:[%s14570_s3 + $0x18] sm:$0xff]  ;;  %v14845_v14 = vand.u32 4294901760, %v12484_v1 }
 0x26e   :  { %v8212_v43 = vpop.f32.mrb[20].mxu0  ;;  %9553 = vmatprep.subr.bf16.mxu1 %v11913_v16  ;;  %v15667_v16 = vld [vmem:[#allocation84_spill] sm:$0xff] }
 0x26f   :  { %v8213_v30 = vpop.f32.mrb[21].mxu0 }
 0x270   :  { %v8214_v25 = vadd.f32 %v8213_v30, %v8212_v43  ;;  %9515 = vmatpush3.bf16.msra.mxu0 %v15664_v7  ;;  %v14838_v43 = vand.u32 4294901760, %v12489_v13  ;;  %v12501_v30 = vld [vmem:[%s14570_s3 + $0x38] sm:$0xff]  ;;  %v12507_v7 = vld [vmem:[%s14570_s3] sm:$0xff] }
 0x271   :  { %9555 = vmatpush3.bf16.msra.mxu1 %v11923_v38  ;;  %9517 = vmatprep.subr.bf16.mxu0 %v15665_v48 }
 0x272   :  { %v1802_v26 = vadd.f32 %v8214_v25, %v1657_v11  ;;  %v8215_v51 = vpop.f32.mrb[22].mxu0  ;;  %v14837_v25 = vand.u32 4294901760, %v12494_v27 }
 0x273   :  { %v8216_v54 = vpop.f32.mrb[23].mxu0 }
 0x274   :  { %v8217_v46 = vadd.f32 %v8216_v54, %v8215_v51  ;;  %4051 = vmatmul.mubr.f32.vlgmr.msra.gmra.mrb[48].mxu1 %v12347_v58  ;;  %9519 = vmatpush3.bf16.msra.mxu0 %v15666_v40  ;;  %v1919_v22 = vadd.f32 %v8252_v52, %v1802_v26  ;;  %v14836_v26 = vand.u32 4294901760, %v12501_v30  ;;  %v12513_v51 = vld [vmem:[%s14570_s3 + $0x20] sm:$0xff]  ;;  %v14835_v54 = vand.u32 4294901760, %v12507_v7  ;;  %v12524_v40 = vld [vmem:[%s14570_s3 + $0x30] sm:$0xff] }
 0x275   :  { %4056 = vmatprep.mubr.f32.mxu1 %v12354_v53  ;;  %9521 = vmatprep.subr.bf16.mxu0 %v15667_v16 }
 0x276   :  { %v1811_v29 = vadd.f32 %v8217_v46, %v1664_v6  ;;  %v12519_v46 = vld [vmem:[%s14570_s3 + $0x10] sm:$0xff] }
 0x278   :  { %4058 = vmatmul.mubr.f32.gmra.mrb[50].mxu1 %v12362_v34  ;;  %9523 = vmatpush3.bf16.msra.mxu0 %v15668_v42  ;;  %v1930_v38 = vadd.f32 %v8255_v55, %v1811_v29  ;;  %v12532_v29 = vpack.c.bf16 %v14838_v43, %v14845_v14  ;;  %v14834_v42 = vand.u32 4294901760, %v12513_v51  ;;  %v12806_v14 = vld [vmem:[%s14570_s3 + $0x138] sm:$0xff] }
 0x27a   :  { %15671 = vst [vmem:[#allocation12_spill] sm:$0xff] %v12532_v29  ;;  %9557 = vmatprep.subr.bf16.mxu0 %v12532_v29 }
 0x27b   :  { %3940 = vmatmul.mubr.f32.vlgmr.msra.gmra.mrb[48].mxu0 %v12347_v58 }
 0x27c   :  { %3945 = vmatprep.mubr.f32.mxu0 %v12354_v53 }
 0x27f   :  { %3947 = vmatmul.mubr.f32.gmra.mrb[50].mxu0 %v12362_v34 }
 0x287   :  { %v8326_v50 = vpop.f32.mrb[24].mxu1 }
 0x288   :  { %v8327_v0 = vpop.f32.mrb[25].mxu1 }
 0x289   :  { %v8328_v19 = vadd.f32 %v8327_v0, %v8326_v50  ;;  %v14833_v50 = vand.u32 4294901760, %v12519_v46  ;;  %v14832_v0 = vand.u32 4294901760, %v12524_v40 }
 0x28b   :  { %v8329_v15 = vpop.f32.mrb[26].mxu1 }
 0x28c   :  { %v8330_v31 = vpop.f32.mrb[27].mxu1 }
 0x28d   :  { %v8331_v21 = vadd.f32 %v8330_v31, %v8329_v15  ;;  %v12551_v15 = vld [vmem:[%s14570_s3 + $0x68] sm:$0xff]  ;;  %v12556_v31 = vld [vmem:[%s14570_s3 + $0x58] sm:$0xff] }
 0x28e   :  { %v8288_v8 = vpop.f32.mrb[24].mxu0 }
 0x28f   :  { %v8289_v39 = vpop.f32.mrb[25].mxu0 }
 0x290   :  { %v8290_v63 = vadd.f32 %v8289_v39, %v8288_v8  ;;  %v12563_v8 = vpack.c.bf16 %v14834_v42, %v14835_v54 }
 0x292   :  { %v2098_v41 = vadd.f32 %v8290_v63, %v1919_v22  ;;  %v8291_v36 = vpop.f32.mrb[26].mxu0  ;;  %15673 = vst [vmem:[#allocation5_spill] sm:$0xff] %v12563_v8  ;;  %v14830_v63 = vand.u32 4294901760, %v12551_v15  ;;  %9559 = vmatpush1.bf16.msra.mxu0 %v12563_v8 }
 0x293   :  { %v8292_v10 = vpop.f32.mrb[27].mxu0 }
 0x294   :  { %v12477_v2 = vadd.f32 %v8328_v19, %v2098_v41  ;;  %v8293_v20 = vadd.f32 %v8292_v10, %v8291_v36  ;;  %v12546_v19 = vld [vmem:[%s14570_s3 + $0x48] sm:$0xff]  ;;  %v12570_v41 = vld [vmem:[%s14570_s3 + $0x78] sm:$0xff]  ;;  %v12575_v36 = vld [vmem:[%s14570_s3 + $0x40] sm:$0xff] }
 0x295   :  { %v14831_v39 = vand.u32 4294901760, %v12546_v19  ;;  %v12580_v10 = vld [vmem:[%s14570_s3 + $0x60] sm:$0xff] }
 0x296   :  { %15669 = vst [vmem:[#allocation7_spill] sm:$0xff] %v12477_v2  ;;  %v2105_v58 = vadd.f32 %v8293_v20, %v1930_v38  ;;  %v12539_v38 = vpack.c.bf16 %v14836_v26, %v14837_v25  ;;  %v12587_v20 = vpack.c.bf16 %v14832_v0, %v14833_v50  ;;  %v12750_v0 = vld [vmem:[%s14570_s3 + $0xd0] sm:$0xff] }
 0x297   :  { %v12755_v50 = vld [vmem:[%s14570_s3 + $0xf0] sm:$0xff]  ;;  %v14847_v54 = vand.u32 4294901760, %v12750_v0 }
 0x298   :  { %v12479_v45 = vadd.f32 %v8331_v21, %v2105_v58  ;;  %15672 = vst [vmem:[#allocation13_spill] sm:$0xff] %v12539_v38  ;;  %9749 = vmatprep.subr.bf16.mxu1 %v12539_v38  ;;  %15674 = vst [vmem:[#allocation15_spill] sm:$0xff] %v12587_v20  ;;  %v14827_v58 = vand.u32 4294901760, %v12556_v31  ;;  %v14846_v26 = vand.u32 4294901760, %v12755_v50 }
 0x299   :  { %9751 = vmatpush1.bf16.msra.mxu1 %v12587_v20 }
 0x29a   :  { %15670 = vst [vmem:[#allocation8_spill] sm:$0xff] %v12479_v45 }
 0x2a7   :  { %v8402_v53 = vpop.f32.mrb[28].mxu1 }
 0x2a8   :  { %v8403_v34 = vpop.f32.mrb[29].mxu1 }
 0x2a9   :  { %v8404_v44 = vadd.f32 %v8403_v34, %v8402_v53  ;;  %v14826_v53 = vand.u32 4294901760, %v12570_v41  ;;  %v14825_v34 = vand.u32 4294901760, %v12575_v36 }
 0x2ab   :  { %v8405_v12 = vpop.f32.mrb[30].mxu1 }
 0x2ac   :  { %v8406_v49 = vpop.f32.mrb[31].mxu1 }
 0x2ad   :  { %v8407_v60 = vadd.f32 %v8406_v49, %v8405_v12  ;;  %v12600_v12 = vld [vmem:[%s14570_s3 + $0x70] sm:$0xff] }
 0x2ae   :  { %v8364_v17 = vpop.f32.mrb[28].mxu0 }
 0x2af   :  { %v8365_v32 = vpop.f32.mrb[29].mxu0 }
 0x2b0   :  { %v8366_v24 = vadd.f32 %v8365_v32, %v8364_v17  ;;  %v14818_v17 = vand.u32 4294901760, %v12580_v10 }
 0x2b2   :  { %v2583_v11 = vadd.f32 %v8404_v44, %v8366_v24  ;;  %v8367_v9 = vpop.f32.mrb[30].mxu0  ;;  %v12595_v44 = vld [vmem:[%s14570_s3 + $0x50] sm:$0xff]  ;;  %v12618_v24 = vpack.c.bf16 %v14826_v53, %v14827_v58  ;;  %v12736_v58 = vld [vmem:[%s14570_s3 + $0xc0] sm:$0xff] }
 0x2b3   :  { %v8368_v6 = vpop.f32.mrb[31].mxu0  ;;  %v14817_v32 = vand.u32 4294901760, %v12595_v44 }
 0x2b4   :  { %v8369_v28 = vadd.f32 %v8368_v6, %v8367_v9  ;;  %15676 = vst [vmem:[#allocation17_spill] sm:$0xff] %v12618_v24  ;;  %v12624_v9 = vld [vmem:[%s14570_s3 + $0x88] sm:$0xff]  ;;  %9753 = vmatprep.subr.bf16.mxu1 %v12618_v24  ;;  %v12907_v24 = vld [vmem:[%s14570_s3 + $0x170] sm:$0xff] }
 0x2b5   :  { %v12629_v6 = vld [vmem:[%s14570_s3 + $0xa8] sm:$0xff]  ;;  %15706 = vst [vmem:[#allocation46_spill] sm:$0xff] %v12907_v24  ;;  %v14894_v20 = vand.u32 4294901760, %v12907_v24 }
 0x2b6   :  { %v2590_v57 = vadd.f32 %v8407_v60, %v8369_v28  ;;  %v12609_v60 = vpack.c.bf16 %v14830_v63, %v14831_v39  ;;  %v12634_v28 = vld [vmem:[%s14570_s3 + $0x98] sm:$0xff]  ;;  %v14843_v63 = vand.u32 4294901760, %v12736_v58 }
 0x2b8   :  { %15675 = vst [vmem:[#allocation9_spill] sm:$0xff] %v12609_v60  ;;  %9561 = vmatprep.subr.bf16.mxu0 %v12609_v60 }
 0x2c7   :  { %v8478_v18 = vpop.f32.mrb[32].mxu1 }
 0x2c8   :  { %v8479_v59 = vpop.f32.mrb[33].mxu1 }
 0x2c9   :  { %v8480_v35 = vadd.f32 %v8479_v59, %v8478_v18  ;;  %v14820_v18 = vand.u32 4294901760, %v12624_v9  ;;  %v14819_v59 = vand.u32 4294901760, %v12629_v6 }
 0x2cb   :  { %v8481_v4 = vpop.f32.mrb[34].mxu1 }
 0x2cc   :  { %v8482_v23 = vpop.f32.mrb[35].mxu1 }
 0x2cd   :  { %v8483_v5 = vadd.f32 %v8482_v23, %v8481_v4  ;;  %v14824_v4 = vand.u32 4294901760, %v12634_v28  ;;  %v12654_v23 = vld [vmem:[%s14570_s3 + $0x80] sm:$0xff] }
 0x2ce   :  { %v8440_v61 = vpop.f32.mrb[32].mxu0 }
 0x2cf   :  { %v8441_v56 = vpop.f32.mrb[33].mxu0 }
 0x2d0   :  { %v8442_v52 = vadd.f32 %v8441_v56, %v8440_v61 }
 0x2d2   :  { %v2728_v37 = vadd.f32 %v8442_v52, %v2583_v11  ;;  %v8443_v55 = vpop.f32.mrb[34].mxu0  ;;  %v14816_v11 = vand.u32 4294901760, %v12600_v12  ;;  %v14823_v52 = vand.u32 4294901760, %v12654_v23 }
 0x2d3   :  { %v8444_v48 = vpop.f32.mrb[35].mxu0 }
 0x2d4   :  { %v8445_v22 = vadd.f32 %v8444_v48, %v8443_v55  ;;  %v12526_v16 = vadd.f32 %v8480_v35, %v2728_v37  ;;  %v12648_v35 = vld [vmem:[%s14570_s3 + $0xb8] sm:$0xff]  ;;  %v12666_v61 = vpack.c.bf16 %v14816_v11, %v14817_v32  ;;  %v12674_v55 = vld [vmem:[%s14570_s3 + $0x90] sm:$0xff] }
 0x2d5   :  { %v14821_v56 = vand.u32 4294901760, %v12648_v35  ;;  %v12679_v48 = vld [vmem:[%s14570_s3 + $0xb0] sm:$0xff] }
 0x2d6   :  { %v2737_v21 = vadd.f32 %v8445_v22, %v2590_v57  ;;  %v12641_v57 = vpack.c.bf16 %v14818_v17, %v14825_v34  ;;  %15678 = vst [vmem:[#allocation20_spill] sm:$0xff] %v12666_v61  ;;  %v12686_v22 = vpack.c.bf16 %v14819_v59, %v14820_v18  ;;  %v14828_v11 = vand.u32 4294901760, %v12679_v48  ;;  %9755 = vmatpush1.bf16.msra.mxu1 %v12666_v61  ;;  %v12706_v59 = vld [vmem:[%s14570_s3 + $0xc8] sm:$0xff]  ;;  %v12730_v34 = vld [vmem:[%s14570_s3 + $0xf8] sm:$0xff]  ;;  %v12902_v61 = vld [vmem:[%s14570_s3 + $0x150] sm:$0xff] }
 0x2d7   :  { %v12695_v32 = vpack.c.bf16 %v14821_v56, %v14824_v4  ;;  %v12711_v18 = vld [vmem:[%s14570_s3 + $0xe8] sm:$0xff]  ;;  %v12716_v56 = vld [vmem:[%s14570_s3 + $0xd8] sm:$0xff]  ;;  %15705 = vst [vmem:[#allocation45_spill] sm:$0xff] %v12902_v61 }
 0x2d8   :  { %v12602_v49 = vadd.f32 %v8483_v5, %v2737_v21  ;;  %15677 = vst [vmem:[#allocation6_spill] sm:$0xff] %v12641_v57  ;;  %v12659_v5 = vld [vmem:[%s14570_s3 + $0xa0] sm:$0xff]  ;;  %9563 = vmatpush1.bf16.msra.mxu0 %v12641_v57  ;;  %15679 = vst [vmem:[#allocation11_spill] sm:$0xff] %v12686_v22  ;;  %v14829_v21 = vand.u32 4294901760, %v12674_v55  ;;  %v14839_v4 = vand.u32 4294901760, %v12711_v18  ;;  %v14844_v53 = vand.u32 4294901760, %v12716_v56 }
 0x2d9   :  { %v14822_v37 = vand.u32 4294901760, %v12659_v5  ;;  %15680 = vst [vmem:[#allocation21_spill] sm:$0xff] %v12695_v32  ;;  %9565 = vmatprep.subr.bf16.mxu0 %v12686_v22  ;;  %9757 = vmatprep.subr.bf16.mxu1 %v12695_v32  ;;  %v14895_v57 = vand.u32 4294901760, %v12902_v61  ;;  %v12985_v61 = vld [vmem:[%s14570_s3 + $0x1b0] sm:$0xff] }
 0x2da   :  { %15724 = vst [vmem:[#allocation22_spill] sm:$0xff] %v12985_v61 }
 0x2db   :  { %v12701_v17 = vpack.c.bf16 %v14822_v37, %v14823_v52  ;;  %v12723_v37 = vpack.c.bf16 %v14828_v11, %v14829_v21  ;;  %v14840_v52 = vand.u32 4294901760, %v12706_v59  ;;  %v12741_v11 = vld [vmem:[%s14570_s3 + $0xe0] sm:$0xff]  ;;  %v14841_v21 = vand.u32 4294901760, %v12730_v34 }
 0x2dc   :  { %v14842_v39 = vand.u32 4294901760, %v12741_v11 }
 0x2dd   :  { %15681 = vst [vmem:[#allocation10_spill] sm:$0xff] %v12701_v17  ;;  %15682 = vst [vmem:[#allocation24_spill] sm:$0xff] %v12723_v37  ;;  %9567 = vmatpush1.bf16.msra.mxu0 %v12701_v17  ;;  %v12762_v42 = vpack.c.bf16 %v14839_v4, %v14840_v52  ;;  %9759 = vmatpush1.bf16.msra.mxu1 %v12723_v37  ;;  %v12771_v25 = vpack.c.bf16 %v14841_v21, %v14844_v53  ;;  %v12782_v4 = vld [vmem:[%s14570_s3 + $0x108] sm:$0xff]  ;;  %v12792_v21 = vld [vmem:[%s14570_s3 + $0x118] sm:$0xff]  ;;  %v14868_v53 = vand.u32 4294901760, %v12831_v62 }
 0x2de   :  { %v12777_v43 = vpack.c.bf16 %v14842_v39, %v14843_v63  ;;  %v12787_v52 = vld [vmem:[%s14570_s3 + $0x128] sm:$0xff]  ;;  %v12799_v39 = vpack.c.bf16 %v14846_v26, %v14847_v54  ;;  %v12817_v26 = vld [vmem:[%s14570_s3 + $0x120] sm:$0xff]  ;;  %v15689_v33 = vand.u32 4294901760, %v12782_v4  ;;  %v14869_v63 = vand.u32 4294901760, %v12826_v3 }
 0x2df   :  { %15683 = vst [vmem:[#allocation16_spill] sm:$0xff] %v12762_v42  ;;  %15684 = vst [vmem:[#allocation27_spill] sm:$0xff] %v12771_v25  ;;  %9569 = vmatprep.subr.bf16.mxu0 %v12762_v42  ;;  %9761 = vmatprep.subr.bf16.mxu1 %v12771_v25  ;;  %v15690_v54 = vand.u32 4294901760, %v12787_v52  ;;  %v15692_v42 = vand.u32 4294901760, %v12792_v21  ;;  %v15693_v37 = vand.u32 4294901760, %v12806_v14  ;;  %v15696_v32 = vand.u32 4294901760, %v12817_v26 }
 0x2e0   :  { %15685 = vst [vmem:[#allocation14_spill] sm:$0xff] %v12777_v43  ;;  %15686 = vst [vmem:[#allocation30_spill] sm:$0xff] %v12799_v39 }
 0x2e1   :  { %9571 = vmatpush1.bf16.msra.mxu0 %v12777_v43  ;;  %v12838_v25 = vpack.c.bf16 %v15690_v54, %v15689_v33  ;;  %9763 = vmatpush1.bf16.msra.mxu1 %v12799_v39  ;;  %v12847_v17 = vpack.c.bf16 %v15693_v37, %v15692_v42  ;;  %v15695_v43 = vand.u32 4294901760, %v12812_v47  ;;  %v12858_v33 = vld [vmem:[%s14570_s3 + $0x148] sm:$0xff]  ;;  %v12868_v42 = vld [vmem:[%s14570_s3 + $0x158] sm:$0xff] }
 0x2e2   :  { %15698 = vst [vmem:[#allocation35_spill] sm:$0xff] %v12858_v33  ;;  %v12863_v54 = vld [vmem:[%s14570_s3 + $0x168] sm:$0xff]  ;;  %15700 = vst [vmem:[#allocation41_spill] sm:$0xff] %v12868_v42  ;;  %v12882_v39 = vld [vmem:[%s14570_s3 + $0x178] sm:$0xff]  ;;  %v15710_v38 = vand.u32 4294901760, %v12868_v42 }
 0x2e3   :  { %15691 = vst [vmem:[#allocation18_spill] sm:$0xff] %v12838_v25  ;;  %15694 = vst [vmem:[#allocation34_spill] sm:$0xff] %v12847_v17  ;;  %v12853_v22 = vpack.c.bf16 %v15696_v32, %v15695_v43  ;;  %9573 = vmatprep.subr.bf16.mxu0 %v12838_v25  ;;  %v12875_v43 = vpack.c.bf16 %v14868_v53, %v14869_v63  ;;  %v12888_v25 = vld [vmem:[%s14570_s3 + $0x140] sm:$0xff]  ;;  %9765 = vmatprep.subr.bf16.mxu1 %v12847_v17  ;;  %v15707_v17 = vand.u32 4294901760, %v12858_v33 }
 0x2e4   :  { %15699 = vst [vmem:[#allocation26_spill] sm:$0xff] %v12863_v54  ;;  %15702 = vst [vmem:[#allocation43_spill] sm:$0xff] %v12882_v39  ;;  %v12893_v53 = vld [vmem:[%s14570_s3 + $0x160] sm:$0xff]  ;;  %v15708_v37 = vand.u32 4294901760, %v12863_v54  ;;  %v15711_v29 = vand.u32 4294901760, %v12882_v39  ;;  %v13004_v54 = vld [vmem:[%s14570_s3 + $0x1c8] sm:$0xff] }
 0x2e5   :  { %15697 = vst [vmem:[#allocation29_spill] sm:$0xff] %v12853_v22  ;;  %15701 = vst [vmem:[#allocation42_spill] sm:$0xff] %v12875_v43  ;;  %9575 = vmatpush1.bf16.msra.mxu0 %v12853_v22  ;;  %9767 = vmatpush1.bf16.msra.mxu1 %v12875_v43  ;;  %v15713_v22 = vand.u32 4294901760, %v12888_v25  ;;  %v15714_v2 = vand.u32 4294901760, %v12893_v53  ;;  %v12980_v43 = vld [vmem:[%s14570_s3 + $0x190] sm:$0xff] }
 0x2e6   :  { %15703 = vst [vmem:[#allocation40_spill] sm:$0xff] %v12888_v25  ;;  %15704 = vst [vmem:[#allocation44_spill] sm:$0xff] %v12893_v53  ;;  %v12914_v32 = vpack.c.bf16 %v15708_v37, %v15707_v17  ;;  %v12925_v45 = vpack.c.bf16 %v15711_v29, %v15710_v38  ;;  %v12936_v37 = vld [vmem:[%s14570_s3 + $0x188] sm:$0xff]  ;;  %v12946_v29 = vld [vmem:[%s14570_s3 + $0x198] sm:$0xff]  ;;  %v15725_v53 = vand.u32 4294901760, %v12484_v1 }
 0x2e7   :  { %v8554_v63 = vpop.f32.mrb[36].mxu1  ;;  %v12931_v17 = vpack.c.bf16 %v15714_v2, %v15713_v22  ;;  %15716 = vst [vmem:[#allocation61_spill] sm:$0xff] %v12936_v37  ;;  %15718 = vst [vmem:[#allocation65_spill] sm:$0xff] %v12946_v29  ;;  %v12953_v2 = vpack.c.bf16 %v14894_v20, %v14895_v57  ;;  %v12960_v22 = vld [vmem:[%s14570_s3 + $0x1b8] sm:$0xff]  ;;  %v12971_v20 = vld [vmem:[%s14570_s3 + $0x1a0] sm:$0xff]  ;;  %v15727_v24 = vand.u32 4294901760, %v12936_v37 }
 0x2e8   :  { %v8555_v60 = vpop.f32.mrb[37].mxu1  ;;  %15709 = vst [vmem:[#allocation47_spill] sm:$0xff] %v12914_v32  ;;  %15712 = vst [vmem:[#allocation57_spill] sm:$0xff] %v12925_v45  ;;  %9577 = vmatprep.subr.bf16.mxu0 %v12914_v32  ;;  %v12966_v32 = vld [vmem:[%s14570_s3 + $0x180] sm:$0xff]  ;;  %9769 = vmatprep.subr.bf16.mxu1 %v12925_v45  ;;  %v12990_v45 = vsub.f32 %v12484_v1, %v15725_v53  ;;  %v13009_v1 = vld [vmem:[%s14570_s3 + $0x1e8] sm:$0xff]  ;;  %v15735_v39 = vand.u32 4294901760, %v12946_v29 }
 0x2e9   :  { %v12918_v8 = vadd.f32 %v8555_v60, %v8554_v63  ;;  %15715 = vst [vmem:[#allocation58_spill] sm:$0xff] %v12931_v17  ;;  %v12941_v63 = vld [vmem:[%s14570_s3 + $0x1a8] sm:$0xff]  ;;  %15719 = vst [vmem:[#allocation66_spill] sm:$0xff] %v12953_v2  ;;  %9579 = vmatpush1.bf16.msra.mxu0 %v12931_v17  ;;  %v13014_v53 = vld [vmem:[%s14570_s3 + $0x1d8] sm:$0xff]  ;;  %9771 = vmatpush1.bf16.msra.mxu1 %v12953_v2  ;;  %v15736_v17 = vand.u32 4294901760, %v12960_v22  ;;  %v15738_v37 = vand.u32 4294901760, %v12966_v32 }
 0x2ea   :  { %15717 = vst [vmem:[#allocation63_spill] sm:$0xff] %v12941_v63  ;;  %15720 = vst [vmem:[#allocation69_spill] sm:$0xff] %v12960_v22  ;;  %v15728_v38 = vand.u32 4294901760, %v12941_v63  ;;  %v15739_v33 = vand.u32 4294901760, %v12971_v20  ;;  %v15752_v29 = vand.u32 4294901760, %v13014_v53 }
 0x2eb   :  { %15721 = vst [vmem:[#allocation70_spill] sm:$0xff] %v12966_v32  ;;  %15722 = vst [vmem:[#allocation73_spill] sm:$0xff] %v12971_v20  ;;  %v8557_v57 = vpop.f32.mrb[38].mxu1  ;;  %v13028_v63 = vpack.c.bf16 %v15736_v17, %v15735_v39  ;;  %v13050_v39 = vld [vmem:[%s14570_s3 + $0x1e0] sm:$0xff]  ;;  %v13065_v20 = vld [vmem:[%s14570_s3 + $0x1d0] sm:$0xff]  ;;  %v15750_v32 = vand.u32 4294901760, %v13009_v1 }
 0x2ec   :  { %15723 = vst [vmem:[#allocation78_spill] sm:$0xff] %v12980_v43  ;;  %15726 = vst [vmem:[#allocation23_spill] sm:$0xff] %v12990_v45  ;;  %v8558_v60 = vpop.f32.mrb[39].mxu1  ;;  %v12997_v25 = vpack.c.bf16 %v15728_v38, %v15727_v24  ;;  %v15733_v24 = vand.u32 4294901760, %v12489_v13  ;;  %v13034_v62 = vpack.c.bf16 %v15739_v33, %v15738_v37  ;;  %v15744_v33 = vand.u32 4294901760, %v12980_v43 }
 0x2ed   :  { %15730 = vst [vmem:[#allocation48_spill] sm:$0xff] %v13004_v54  ;;  %15731 = vst [vmem:[#allocation49_spill] sm:$0xff] %v13009_v1  ;;  %v13021_v42 = vadd.f32 %v8558_v60, %v8557_v57  ;;  %v13045_v57 = vld [vmem:[%s14570_s3 + $0x1c0] sm:$0xff]  ;;  %v15745_v37 = vand.u32 4294901760, %v12985_v61  ;;  %9773 = vmatprep.subr.bf16.mxu1 %v13028_v63  ;;  %v15749_v61 = vand.u32 4294901760, %v13004_v54 }
 0x2ee   :  { %15729 = vst [vmem:[#allocation31_spill] sm:$0xff] %v12997_v25  ;;  %15732 = vst [vmem:[#allocation82_spill] sm:$0xff] %v13014_v53  ;;  %v13019_v38 = vsub.f32 %v12489_v13, %v15733_v24  ;;  %v13040_v13 = vld [vmem:[%s14570_s3 + $0x1f8] sm:$0xff]  ;;  %v8516_v17 = vpop.f32.mrb[36].mxu0  ;;  %9581 = vmatprep.subr.bf16.mxu0 %v12997_v25  ;;  %v13070_v25 = vld [vmem:[%s14570_s3 + $0x1f0] sm:$0xff]  ;;  %v15755_v3 = vand.u32 4294901760, %v13045_v57 }
 0x2ef   :  { %15737 = vst [vmem:[#allocation87_spill] sm:$0xff] %v13028_v63  ;;  %15740 = vst [vmem:[#allocation90_spill] sm:$0xff] %v13034_v62  ;;  %v13057_v60 = vpack.c.bf16 %v15745_v37, %v15744_v33  ;;  %v8517_v43 = vpop.f32.mrb[37].mxu0  ;;  %v14946_v37 = vand.u32 4294901760, %v13050_v39  ;;  %v14947_v2 = vand.u32 4294901760, %v13070_v25  ;;  %9583 = vmatpush1.bf16.msra.mxu0 %v13034_v62  ;;  %v13082_v22 = vpack.c.bf16 %v15750_v32, %v15749_v61 }
 0x2f0   :  { %15734 = vst [vmem:[#allocation86_spill] sm:$0xff] %v13019_v38  ;;  %15741 = vst [vmem:[#allocation91_spill] sm:$0xff] %v13040_v13  ;;  %v8518_v24 = vadd.f32 %v8517_v43, %v8516_v17  ;;  %v15753_v63 = vand.u32 4294901760, %v13040_v13  ;;  %v15757_v17 = vand.u32 4294901760, %v13065_v20  ;;  %v14948_v32 = vmov 0.0  }
 0x2f1   :  { %15742 = vst [vmem:[#allocation94_spill] sm:$0xff] %v13045_v57  ;;  %15743 = vst [vmem:[#allocation95_spill] sm:$0xff] %v13050_v39  ;;  %9775 = vmatpush1.bf16.msra.mxu1 %v13057_v60  ;;  %v13095_v43 = vpack.c.bf16 %v14946_v37, %v15755_v3  ;;  %4233 = vmatprep.mubr.f32.mxu0 %v14948_v32  ;;  %v15759_v3 = vand.u32 4294901760, %v12494_v27 }
 0x2f2   :  { %15746 = vst [vmem:[#allocation96_spill] sm:$0xff] %v13057_v60  ;;  %15747 = vst [vmem:[#allocation97_spill] sm:$0xff] %v13065_v20  ;;  %v13088_v33 = vpack.c.bf16 %v15753_v63, %v15752_v29  ;;  %v13101_v61 = vpack.c.bf16 %v14947_v2, %v15757_v17  ;;  %v14957_v63 = vand.u32 4294901760, %v12990_v45  ;;  %v14956_v29 = vand.u32 4294901760, %v13019_v38  ;;  %v8519_v62 = vpop.f32.mrb[38].mxu0  ;;  %9585 = vmatprep.subr.bf16.mxu0 %v13082_v22 }
 0x2f3   :  { %15748 = vst [vmem:[#allocation98_spill] sm:$0xff] %v13070_v25  ;;  %15751 = vst [vmem:[#allocation100_spill] sm:$0xff] %v13082_v22  ;;  %v3024_v60 = vadd.f32 %v8518_v24, %v12526_v16  ;;  %v13112_v37 = vsub.f32 %v12494_v27, %v15759_v3  ;;  %v15761_v17 = vand.u32 4294901760, %v12501_v30  ;;  %v8520_v32 = vpop.f32.mrb[39].mxu0  ;;  %v15764_v22 = vand.u32 4294901760, %v12507_v7  ;;  %9587 = vmatpush1.bf16.msra.mxu0 %v13095_v43 }
 0x2f4   :  { %15754 = vst [vmem:[#allocation101_spill] sm:$0xff] %v13088_v33  ;;  %15756 = vst [vmem:[#allocation28_spill] sm:$0xff] %v13095_v43  ;;  %9777 = vmatprep.subr.bf16.mxu1 %v13088_v33  ;;  %v4259_v16 = vsub.f32 %v12990_v45, %v14957_v63  ;;  %v4271_v24 = vsub.f32 %v13019_v38, %v14956_v29  ;;  %v15763_v33 = vmov 0.0   ;;  %v15766_v3 = vand.u32 4294901760, %v12513_v51 }
 0x2f5   :  { %15758 = vst [vmem:[#allocation103_spill] sm:$0xff] %v13101_v61  ;;  %15760 = vst [vmem:[#allocation104_spill] sm:$0xff] %v13112_v37  ;;  %v13117_v2 = vsub.f32 %v12501_v30, %v15761_v17  ;;  %5137 = vmatprep.mubr.f32.mxu1 %v15763_v33  ;;  %v13129_v27 = vsub.f32 %v12507_v7, %v15764_v22  ;;  %v8521_v17 = vadd.f32 %v8520_v32, %v8519_v62 }
 0x2f6   :  { %v13134_v30 = vsub.f32 %v12513_v51, %v15766_v3  ;;  %v13137_v25 = vadd.f32 %v12918_v8, %v3024_v60  ;;  %v14964_v29 = vand.u32 4294901760, %v13112_v37  ;;  %9779 = vmatpush1.bf16.msra.mxu1 %v13101_v61  ;;  %v4260_v38 = vand.u32 4294901760, %v4259_v16 }
 0x2f7   :  { %15762 = vst [vmem:[#allocation105_spill] sm:$0xff] %v13117_v2  ;;  %15765 = vst [vmem:[#allocation36_spill] sm:$0xff] %v13129_v27  ;;  %v14962_v63 = vand.u32 4294901760, %v13117_v2  ;;  %v4272_v7 = vand.u32 4294901760, %v4271_v24  ;;  %v14963_v22 = vand.u32 4294901760, %v13129_v27  ;;  %v3031_v51 = vadd.f32 %v8521_v17, %v12602_v49 }
 0x2f8   :  { %15767 = vst [vmem:[#allocation109_spill] sm:$0xff] %v13134_v30  ;;  %v14965_v45 = vand.u32 4294901760, %v13134_v30  ;;  %v5163_v62 = vsub.f32 %v13112_v37, %v14964_v29  ;;  %v15768_v60 = vand.u32 4294901760, %v12519_v46  ;;  %v15771_v3 = vand.u32 4294901760, %v12524_v40 }
 0x2f9   :  { %v5175_v8 = vsub.f32 %v13117_v2, %v14962_v63  ;;  %v13157_v16 = vpack.c.bf16 %v4272_v7, %v4260_v38  ;;  %v4265_v24 = vsub.f32 %v13129_v27, %v14963_v22  ;;  %v13171_v63 = vadd.f32 %v13021_v42, %v3031_v51 }
 0x2fa   :  { %v13155_v32 = vsub.f32 %v12519_v46, %v15768_v60  ;;  %v4277_v49 = vsub.f32 %v13134_v30, %v14965_v45  ;;  %v13168_v17 = vsub.f32 %v12524_v40, %v15771_v3  ;;  %v5164_v46 = vand.u32 4294901760, %v5163_v62 }
 0x2fb   :  { %15770 = vst [vmem:[#allocation110_spill] sm:$0xff] %v13157_v16  ;;  %v5176_v60 = vand.u32 4294901760, %v5175_v8  ;;  %9589 = vmatprep.subr.bf16.mxu0 %v13157_v16  ;;  %v4266_v7 = vand.u32 4294901760, %v4265_v24  ;;  %v15773_v45 = vand.u32 4294901760, %v12546_v19  ;;  %v15776_v51 = vand.u32 4294901760, %v12551_v15 }
 0x2fc   :  { %15769 = vst [vmem:[#allocation38_spill] sm:$0xff] %v13155_v32  ;;  %15772 = vst [vmem:[#allocation112_spill] sm:$0xff] %v13168_v17  ;;  %v14970_v38 = vand.u32 4294901760, %v13155_v32  ;;  %v4278_v22 = vand.u32 4294901760, %v4277_v49  ;;  %v14968_v29 = vand.u32 4294901760, %v13168_v17  ;;  %v15778_v8 = vand.u32 4294901760, %v12556_v31 }
 0x2fd   :  { %v13179_v61 = vsub.f32 %v12546_v19, %v15773_v45  ;;  %v13181_v40 = vpack.c.bf16 %v5176_v60, %v5164_v46  ;;  %v13189_v62 = vsub.f32 %v12551_v15, %v15776_v51  ;;  %v15781_v3 = vand.u32 4294901760, %v12570_v41 }
 0x2fe   :  { %v5169_v42 = vsub.f32 %v13155_v32, %v14970_v38  ;;  %v13194_v24 = vsub.f32 %v12556_v31, %v15778_v8  ;;  %v13196_v49 = vpack.c.bf16 %v4278_v22, %v4266_v7  ;;  %v5181_v45 = vsub.f32 %v13168_v17, %v14968_v29 }
 0x2ff   :  { %15774 = vst [vmem:[#allocation51_spill] sm:$0xff] %v13179_v61  ;;  %15775 = vst [vmem:[#allocation56_spill] sm:$0xff] %v13181_v40  ;;  %v14969_v19 = vand.u32 4294901760, %v13179_v61  ;;  %v13205_v46 = vsub.f32 %v12570_v41, %v15781_v3  ;;  %9781 = vmatprep.subr.bf16.mxu1 %v13181_v40  ;;  %v14971_v60 = vand.u32 4294901760, %v13189_v62  ;;  %v15783_v22 = vand.u32 4294901760, %v12575_v36 }
 0x300   :  { %15777 = vst [vmem:[#allocation54_spill] sm:$0xff] %v13189_v62  ;;  %15779 = vst [vmem:[#allocation74_spill] sm:$0xff] %v13194_v24  ;;  %v5170_v15 = vand.u32 4294901760, %v5169_v42  ;;  %v14974_v31 = vand.u32 4294901760, %v13194_v24  ;;  %v5182_v51 = vand.u32 4294901760, %v5181_v45  ;;  %v15785_v3 = vand.u32 4294901760, %v12580_v10 }
 0x301   :  { %15780 = vst [vmem:[#allocation75_spill] sm:$0xff] %v13196_v49  ;;  %15782 = vst [vmem:[#allocation81_spill] sm:$0xff] %v13205_v46  ;;  %v13213_v7 = vsub.f32 %v12575_v36, %v15783_v22  ;;  %v4283_v8 = vsub.f32 %v13179_v61, %v14969_v19  ;;  %v4295_v29 = vsub.f32 %v13189_v62, %v14971_v60  ;;  %v15787_v22 = vand.u32 4294901760, %v12595_v44 }
 0x302   :  { %v13222_v42 = vsub.f32 %v12580_v10, %v15785_v3  ;;  %v5187_v36 = vsub.f32 %v13194_v24, %v14974_v31  ;;  %v13236_v38 = vpack.c.bf16 %v5182_v51, %v5170_v15  ;;  %v15790_v10 = vand.u32 4294901760, %v13205_v46 }
 0x303   :  { %15784 = vst [vmem:[#allocation32_spill] sm:$0xff] %v13213_v7  ;;  %v14980_v45 = vand.u32 4294901760, %v13213_v7  ;;  %v13234_v19 = vsub.f32 %v12595_v44, %v15787_v22  ;;  %v4284_v41 = vand.u32 4294901760, %v4283_v8  ;;  %v4296_v40 = vand.u32 4294901760, %v4295_v29 }
 0x304   :  { %15786 = vst [vmem:[#allocation67_spill] sm:$0xff] %v13222_v42  ;;  %15789 = vst [vmem:[#allocation71_spill] sm:$0xff] %v13236_v38  ;;  %v5199_v3 = vsub.f32 %v13205_v46, %v15790_v10  ;;  %v14979_v60 = vand.u32 4294901760, %v13222_v42  ;;  %v5188_v16 = vand.u32 4294901760, %v5187_v36  ;;  %v15791_v15 = vand.u32 4294901760, %v12600_v12 }
 0x305   :  { %15788 = vst [vmem:[#allocation68_spill] sm:$0xff] %v13234_v19  ;;  %v4289_v31 = vsub.f32 %v13213_v7, %v14980_v45  ;;  %v14981_v43 = vand.u32 4294901760, %v13234_v19  ;;  %v15793_v8 = vand.u32 4294901760, %v12624_v9  ;;  %v13259_v36 = vpack.c.bf16 %v4296_v40, %v4284_v41 }
 0x306   :  { %v5200_v2 = vand.u32 4294901760, %v5199_v3  ;;  %v4301_v44 = vsub.f32 %v13222_v42, %v14979_v60  ;;  %v13252_v51 = vsub.f32 %v12600_v12, %v15791_v15  ;;  %v15796_v3 = vand.u32 4294901760, %v12629_v6 }
 0x307   :  { %v13257_v29 = vsub.f32 %v12624_v9, %v15793_v8  ;;  %15795 = vst [vmem:[#allocation77_spill] sm:$0xff] %v13259_v36  ;;  %v4290_v22 = vand.u32 4294901760, %v4289_v31  ;;  %v5193_v10 = vsub.f32 %v13234_v19, %v14981_v43  ;;  %v15799_v31 = vand.u32 4294901760, %v12634_v28 }
 0x308   :  { %15792 = vst [vmem:[#allocation72_spill] sm:$0xff] %v13252_v51  ;;  %v13267_v60 = vsub.f32 %v12629_v6, %v15796_v3  ;;  %v13269_v45 = vpack.c.bf16 %v5200_v2, %v5188_v16  ;;  %v4302_v12 = vand.u32 4294901760, %v4301_v44  ;;  %v14983_v15 = vand.u32 4294901760, %v13252_v51 }
 0x309   :  { %15794 = vst [vmem:[#allocation76_spill] sm:$0xff] %v13257_v29  ;;  %v14982_v9 = vand.u32 4294901760, %v13257_v29  ;;  %v5194_v8 = vand.u32 4294901760, %v5193_v10  ;;  %v13277_v41 = vsub.f32 %v12634_v28, %v15799_v31  ;;  %v15801_v43 = vand.u32 4294901760, %v12648_v35  ;;  %v8630_v31 = vpop.f32.mrb[40].mxu1 }
 0x30a   :  { %15797 = vst [vmem:[#allocation79_spill] sm:$0xff] %v13267_v60  ;;  %15798 = vst [vmem:[#allocation80_spill] sm:$0xff] %v13269_v45  ;;  %v14986_v40 = vand.u32 4294901760, %v13267_v60  ;;  %v13284_v2 = vpack.c.bf16 %v4302_v12, %v4290_v22  ;;  %v5205_v16 = vsub.f32 %v13252_v51, %v14983_v15  ;;  %v15804_v10 = vand.u32 4294901760, %v12654_v23 }
 0x30b   :  { %15800 = vst [vmem:[#allocation88_spill] sm:$0xff] %v13277_v41  ;;  %v13282_v6 = vsub.f32 %v12648_v35, %v15801_v43  ;;  %v4307_v44 = vsub.f32 %v13257_v29, %v14982_v9  ;;  %v14990_v43 = vand.u32 4294901760, %v13277_v41  ;;  %v15806_v3 = vand.u32 4294901760, %v12659_v5 }
 0x30c   :  { %15803 = vst [vmem:[#allocation92_spill] sm:$0xff] %v13284_v2  ;;  %v13295_v28 = vsub.f32 %v12654_v23, %v15804_v10  ;;  %v4319_v35 = vsub.f32 %v13267_v60, %v14986_v40  ;;  %v5206_v9 = vand.u32 4294901760, %v5205_v16  ;;  %v15808_v23 = vand.u32 4294901760, %v12674_v55  ;;  %v8631_v40 = vpop.f32.mrb[41].mxu1 }
 0x30d   :  { %15802 = vst [vmem:[#allocation89_spill] sm:$0xff] %v13282_v6  ;;  %v13305_v12 = vsub.f32 %v12659_v5, %v15806_v3  ;;  %v4308_v15 = vand.u32 4294901760, %v4307_v44  ;;  %v5211_v22 = vsub.f32 %v13277_v41, %v14990_v43  ;;  %v15810_v45 = vand.u32 4294901760, %v13282_v6 }
 0x30e   :  { %15805 = vst [vmem:[#allocation93_spill] sm:$0xff] %v13295_v28  ;;  %v14994_v37 = vand.u32 4294901760, %v13295_v28  ;;  %v13311_v10 = vsub.f32 %v12674_v55, %v15808_v23  ;;  %v4320_v2 = vand.u32 4294901760, %v4319_v35  ;;  %v8632_v44 = vadd.f32 %v8631_v40, %v8630_v31 }
 0x30f   :  { %15807 = vst [vmem:[#allocation99_spill] sm:$0xff] %v13305_v12  ;;  %v5223_v5 = vsub.f32 %v13282_v6, %v15810_v45  ;;  %v14992_v16 = vand.u32 4294901760, %v13305_v12  ;;  %v13320_v3 = vpack.c.bf16 %v5206_v9, %v5194_v8  ;;  %v5212_v36 = vand.u32 4294901760, %v5211_v22  ;;  %v8633_v45 = vpop.f32.mrb[42].mxu1 }
 0x310   :  { %15809 = vst [vmem:[#allocation102_spill] sm:$0xff] %v13311_v10  ;;  %v4313_v55 = vsub.f32 %v13295_v28, %v14994_v37  ;;  %v14993_v23 = vand.u32 4294901760, %v13311_v10  ;;  %v13326_v35 = vpack.c.bf16 %v4320_v2, %v4308_v15  ;;  %v15813_v8 = vand.u32 4294901760, %v12679_v48  ;;  %v8634_v22 = vpop.f32.mrb[43].mxu1 }
 0x311   :  { %15811 = vst [vmem:[#allocation106_spill] sm:$0xff] %v13320_v3  ;;  %v5224_v33 = vand.u32 4294901760, %v5223_v5  ;;  %v4325_v43 = vsub.f32 %v13305_v12, %v14992_v16  ;;  %v15815_v15 = vand.u32 4294901760, %v12706_v59 }
 0x312   :  { %15812 = vst [vmem:[#allocation107_spill] sm:$0xff] %v13326_v35  ;;  %v4314_v38 = vand.u32 4294901760, %v4313_v55  ;;  %v5217_v9 = vsub.f32 %v13311_v10, %v14993_v23  ;;  %v13337_v40 = vsub.f32 %v12679_v48, %v15813_v8  ;;  %v15818_v55 = vand.u32 4294901760, %v12711_v18 }
 0x313   :  { %v13342_v2 = vsub.f32 %v12706_v59, %v15815_v15  ;;  %v13344_v31 = vpack.c.bf16 %v5224_v33, %v5212_v36  ;;  %v4326_v5 = vand.u32 4294901760, %v4325_v43  ;;  %v15820_v23 = vand.u32 4294901760, %v12716_v56  ;;  %v8592_v15 = vpop.f32.mrb[40].mxu0 }
 0x314   :  { %15814 = vst [vmem:[#allocation37_spill] sm:$0xff] %v13337_v40  ;;  %v13349_v16 = vsub.f32 %v12711_v18, %v15818_v55  ;;  %v8635_v48 = vadd.f32 %v8634_v22, %v8633_v45  ;;  %v5218_v8 = vand.u32 4294901760, %v5217_v9  ;;  %v14996_v35 = vand.u32 4294901760, %v13337_v40 }
 0x315   :  { %15816 = vst [vmem:[#allocation108_spill] sm:$0xff] %v13342_v2  ;;  %15817 = vst [vmem:[#allocation39_spill] sm:$0xff] %v13344_v31  ;;  %v13354_v37 = vsub.f32 %v12716_v56, %v15820_v23  ;;  %v14997_v59 = vand.u32 4294901760, %v13342_v2  ;;  %v13358_v33 = vpack.c.bf16 %v4326_v5, %v4314_v38  ;;  %v15823_v18 = vand.u32 4294901760, %v12730_v34  ;;  %v8593_v56 = vpop.f32.mrb[41].mxu0 }
 0x316   :  { %15819 = vst [vmem:[#allocation111_spill] sm:$0xff] %v13349_v16  ;;  %v15000_v36 = vand.u32 4294901760, %v13349_v16  ;;  %v5229_v23 = vsub.f32 %v13337_v40, %v14996_v35  ;;  %v15825_v38 = vand.u32 4294901760, %v12736_v58  ;;  %v15827_v22 = vand.u32 4294901760, %v12741_v11 }
 0x317   :  { %15821 = vst [vmem:[#allocation113_spill] sm:$0xff] %v13354_v37  ;;  %15822 = vst [vmem:[#allocation25_spill] sm:$0xff] %v13358_v33  ;;  %v15004_v43 = vand.u32 4294901760, %v13354_v37  ;;  %v13365_v55 = vsub.f32 %v12730_v34, %v15823_v18  ;;  %v4331_v45 = vsub.f32 %v13342_v2, %v14997_v59  ;;  %v8594_v34 = vadd.f32 %v8593_v56, %v8592_v15 }
 0x318   :  { %v13376_v9 = vsub.f32 %v12736_v58, %v15825_v38  ;;  %v13381_v5 = vsub.f32 %v12741_v11, %v15827_v22  ;;  %v4343_v18 = vsub.f32 %v13349_v16, %v15000_v36  ;;  %v5230_v33 = vand.u32 4294901760, %v5229_v23  ;;  %v8595_v22 = vpop.f32.mrb[42].mxu0 }
 0x319   :  { %15824 = vst [vmem:[#allocation114_spill] sm:$0xff] %v13365_v55  ;;  %v5235_v35 = vsub.f32 %v13354_v37, %v15004_v43  ;;  %v15003_v59 = vand.u32 4294901760, %v13365_v55  ;;  %v4332_v31 = vand.u32 4294901760, %v4331_v45  ;;  %v3254_v11 = vadd.f32 %v8594_v34, %v13137_v25  ;;  %v8596_v3 = vpop.f32.mrb[43].mxu0 }
 0x31a   :  { %15826 = vst [vmem:[#allocation83_spill] sm:$0xff] %v13376_v9  ;;  %15828 = vst [vmem:[#allocation84_spill] sm:$0xff] %v13381_v5  ;;  %v15006_v58 = vand.u32 4294901760, %v13376_v9  ;;  %v15009_v38 = vand.u32 4294901760, %v13381_v5  ;;  %v4344_v15 = vand.u32 4294901760, %v4343_v18  ;;  %v13396_v49 = vpack.c.bf16 %v5230_v33, %v5218_v8 }
 0x31b   :  { %v5236_v56 = vand.u32 4294901760, %v5235_v35  ;;  %v5247_v36 = vsub.f32 %v13365_v55, %v15003_v59  ;;  %v15830_v25 = vand.u32 4294901760, %v12750_v0  ;;  %v8597_v35 = vadd.f32 %v8596_v3, %v8595_v22 }
 0x31c   :  { %15829 = vst [vmem:[#allocation85_spill] sm:$0xff] %v13396_v49  ;;  %v4337_v23 = vsub.f32 %v13376_v9, %v15006_v58  ;;  %v4349_v45 = vsub.f32 %v13381_v5, %v15009_v38  ;;  %v13409_v18 = vadd.f32 %v8632_v44, %v3254_v11  ;;  %v13411_v59 = vpack.c.bf16 %v4344_v15, %v4332_v31 }
 0x31d   :  { %v13407_v34 = vsub.f32 %v12750_v0, %v15830_v25  ;;  %v5248_v8 = vand.u32 4294901760, %v5247_v36  ;;  %v15833_v58 = vand.u32 4294901760, %v12755_v50  ;;  %v3269_v38 = vadd.f32 %v8597_v35, %v13171_v63 }
 0x31e   :  { %15832 = vst [vmem:[#allocation116_spill] sm:$0xff] %v13411_v59  ;;  %v4338_v33 = vand.u32 4294901760, %v4337_v23  ;;  %v4350_v43 = vand.u32 4294901760, %v4349_v45  ;;  %v15836_v0 = vand.u32 4294901760, %v12782_v4  ;;  %v15838_v3 = vand.u32 4294901760, %v12787_v52 }
 0x31f   :  { %15831 = vst [vmem:[#allocation115_spill] sm:$0xff] %v13407_v34  ;;  %v15018_v49 = vand.u32 4294901760, %v13407_v34  ;;  %v13417_v20 = vsub.f32 %v12755_v50, %v15833_v58  ;;  %v13420_v39 = vpack.c.bf16 %v5248_v8, %v5236_v56  ;;  %v15841_v58 = vand.u32 4294901760, %v12792_v21 }
 0x320   :  { %v13425_v44 = vsub.f32 %v12782_v4, %v15836_v0  ;;  %v13430_v31 = vsub.f32 %v12787_v52, %v15838_v3  ;;  %v13432_v36 = vpack.c.bf16 %v4350_v43, %v4338_v33  ;;  %v13443_v4 = vadd.f32 %v8635_v48, %v3269_v38  ;;  %v15849_v3 = vld [vmem:[#allocation19_spill] sm:$0xff] }
 0x321   :  { %15834 = vst [vmem:[#allocation117_spill] sm:$0xff] %v13417_v20  ;;  %15835 = vst [vmem:[#allocation118_spill] sm:$0xff] %v13420_v39  ;;  %v5241_v50 = vsub.f32 %v13407_v34, %v15018_v49  ;;  %v15015_v63 = vand.u32 4294901760, %v13417_v20  ;;  %v13441_v11 = vsub.f32 %v12792_v21, %v15841_v58  ;;  %v15843_v43 = vand.u32 4294901760, %v12806_v14 }
 0x322   :  { %15837 = vst [vmem:[#allocation119_spill] sm:$0xff] %v13425_v44  ;;  %15839 = vst [vmem:[#allocation120_spill] sm:$0xff] %v13430_v31  ;;  %v15014_v22 = vand.u32 4294901760, %v13425_v44  ;;  %v15012_v52 = vand.u32 4294901760, %v13430_v31  ;;  %v15845_v21 = vand.u32 4294901760, %v12812_v47  ;;  %v15847_v35 = vand.u32 4294901760, %v12817_v26 }
 0x323   :  { %15840 = vst [vmem:[#allocation121_spill] sm:$0xff] %v13432_v36  ;;  %15842 = vst [vmem:[#allocation122_spill] sm:$0xff] %v13441_v11  ;;  %v13450_v15 = vsub.f32 %v12806_v14, %v15843_v43  ;;  %v5242_v56 = vand.u32 4294901760, %v5241_v50  ;;  %v5253_v23 = vsub.f32 %v13417_v20, %v15015_v63  ;;  %v15013_v45 = vand.u32 4294901760, %v13441_v11 }
 0x324   :  { %v13459_v48 = vsub.f32 %v12812_v47, %v15845_v21  ;;  %v4355_v38 = vsub.f32 %v13425_v44, %v15014_v22  ;;  %v4367_v14 = vsub.f32 %v13430_v31, %v15012_v52  ;;  %v13471_v8 = vsub.f32 %v12817_v26, %v15847_v35 }
 0x325   :  { %15844 = vst [vmem:[#allocation123_spill] sm:$0xff] %v13450_v15  ;;  %v15016_v25 = vand.u32 4294901760, %v13450_v15  ;;  %v5254_v33 = vand.u32 4294901760, %v5253_v23  ;;  %v5259_v47 = vsub.f32 %v13441_v11, %v15013_v45  ;;  %v15850_v50 = vand.u32 4294901760, %v15849_v3 }
 0x326   :  { %15846 = vst [vmem:[#allocation124_spill] sm:$0xff] %v13459_v48  ;;  %15848 = vst [vmem:[#allocation125_spill] sm:$0xff] %v13471_v8  ;;  %v15017_v0 = vand.u32 4294901760, %v13459_v48  ;;  %v4356_v43 = vand.u32 4294901760, %v4355_v38  ;;  %v4368_v21 = vand.u32 4294901760, %v4367_v14  ;;  %v15019_v26 = vand.u32 4294901760, %v13471_v8 }
 0x327   :  { %v13480_v58 = vsub.f32 %v15849_v3, %v15850_v50  ;;  %v5271_v52 = vsub.f32 %v13450_v15, %v15016_v25  ;;  %v13486_v23 = vpack.c.bf16 %v5254_v33, %v5242_v56  ;;  %v5260_v35 = vand.u32 4294901760, %v5259_v47  ;;  %v15854_v14 = vld [vmem:[#allocation33_spill] sm:$0xff]  ;;  %v15857_v47 = vld [vmem:[#allocation35_spill] sm:$0xff]  ;;  %v8706_v1 = vpop.f32.mrb[44].mxu1 }
 0x328   :  { %v4361_v45 = vsub.f32 %v13459_v48, %v15017_v0  ;;  %v13492_v63 = vpack.c.bf16 %v4368_v21, %v4356_v43  ;;  %v4373_v38 = vsub.f32 %v13471_v8, %v15019_v26  ;;  %v15855_v50 = vand.u32 4294901760, %v15854_v14 }
 0x329   :  { %15851 = vst [vmem:[#allocation19_spill] sm:$0xff] %v13480_v58  ;;  %15852 = vst [vmem:[#allocation126_spill] sm:$0xff] %v13486_v23  ;;  %v15022_v22 = vand.u32 4294901760, %v13480_v58  ;;  %v5272_v3 = vand.u32 4294901760, %v5271_v52  ;;  %v15858_v0 = vand.u32 4294901760, %v15857_v47  ;;  %v15860_v52 = vld [vmem:[#allocation26_spill] sm:$0xff] }
 0x32a   :  { %15853 = vst [vmem:[#allocation127_spill] sm:$0xff] %v13492_v63  ;;  %v13500_v25 = vsub.f32 %v15854_v14, %v15855_v50  ;;  %v4362_v56 = vand.u32 4294901760, %v4361_v45  ;;  %v15861_v21 = vand.u32 4294901760, %v15860_v52  ;;  %v4374_v63 = vand.u32 4294901760, %v4373_v38  ;;  %v15864_v45 = vld [vmem:[#allocation41_spill] sm:$0xff] }
 0x32b   :  { %v5265_v33 = vsub.f32 %v13480_v58, %v15022_v22  ;;  %v13508_v43 = vsub.f32 %v15857_v47, %v15858_v0  ;;  %v13515_v26 = vpack.c.bf16 %v5272_v3, %v5260_v35  ;;  %v15865_v50 = vand.u32 4294901760, %v15864_v45  ;;  %v15867_v47 = vld [vmem:[#allocation43_spill] sm:$0xff] }
 0x32c   :  { %15856 = vst [vmem:[#allocation33_spill] sm:$0xff] %v13500_v25  ;;  %v13513_v49 = vsub.f32 %v15860_v52, %v15861_v21  ;;  %v15025_v14 = vand.u32 4294901760, %v13500_v25  ;;  %v15868_v39 = vand.u32 4294901760, %v15867_v47  ;;  %v13530_v35 = vpack.c.bf16 %v4374_v63, %v4362_v56  ;;  %v15871_v21 = vld [vmem:[#allocation40_spill] sm:$0xff] }
 0x32d   :  { %15859 = vst [vmem:[#allocation35_spill] sm:$0xff] %v13508_v43  ;;  %15863 = vst [vmem:[#allocation128_spill] sm:$0xff] %v13515_v26  ;;  %v13521_v23 = vsub.f32 %v15864_v45, %v15865_v50  ;;  %v5266_v22 = vand.u32 4294901760, %v5265_v33  ;;  %v15028_v36 = vand.u32 4294901760, %v13508_v43  ;;  %v15872_v45 = vand.u32 4294901760, %v15871_v21  ;;  %v15874_v56 = vld [vmem:[#allocation44_spill] sm:$0xff] }
 0x32e   :  { %15862 = vst [vmem:[#allocation26_spill] sm:$0xff] %v13513_v49  ;;  %v15030_v0 = vand.u32 4294901760, %v13513_v49  ;;  %v13528_v52 = vsub.f32 %v15867_v47, %v15868_v39  ;;  %15870 = vst [vmem:[#allocation129_spill] sm:$0xff] %v13530_v35  ;;  %v5277_v3 = vsub.f32 %v13500_v25, %v15025_v14  ;;  %v15875_v47 = vand.u32 4294901760, %v15874_v56  ;;  %v15878_v26 = vld [vmem:[#allocation45_spill] sm:$0xff] }
 0x32f   :  { %15866 = vst [vmem:[#allocation41_spill] sm:$0xff] %v13521_v23  ;;  %v13539_v33 = vsub.f32 %v15871_v21, %v15872_v45  ;;  %v4379_v50 = vsub.f32 %v13508_v43, %v15028_v36  ;;  %v15877_v35 = vand.u32 4294901760, %v13521_v23  ;;  %v15879_v36 = vand.u32 4294901760, %v15878_v26 }
 0x330   :  { %15869 = vst [vmem:[#allocation43_spill] sm:$0xff] %v13528_v52  ;;  %v4391_v39 = vsub.f32 %v13513_v49, %v15030_v0  ;;  %v15039_v63 = vand.u32 4294901760, %v13528_v52  ;;  %v13551_v14 = vsub.f32 %v15874_v56, %v15875_v47  ;;  %v5278_v38 = vand.u32 4294901760, %v5277_v3 }
 0x331   :  { %15873 = vst [vmem:[#allocation40_spill] sm:$0xff] %v13539_v33  ;;  %v5283_v21 = vsub.f32 %v13521_v23, %v15877_v35  ;;  %v15040_v45 = vand.u32 4294901760, %v13539_v33  ;;  %v13560_v59 = vsub.f32 %v15878_v26, %v15879_v36  ;;  %v4380_v0 = vand.u32 4294901760, %v4379_v50 }
 0x332   :  { %15876 = vst [vmem:[#allocation44_spill] sm:$0xff] %v13551_v14  ;;  %v4392_v57 = vand.u32 4294901760, %v4391_v39  ;;  %v5295_v13 = vsub.f32 %v13528_v52, %v15039_v63  ;;  %v15044_v56 = vand.u32 4294901760, %v13551_v14  ;;  %v13566_v3 = vpack.c.bf16 %v5278_v38, %v5266_v22  ;;  %v15883_v39 = vld [vmem:[#allocation46_spill] sm:$0xff]  ;;  %v8707_v38 = vpop.f32.mrb[45].mxu1 }
 0x333   :  { %15880 = vst [vmem:[#allocation45_spill] sm:$0xff] %v13560_v59  ;;  %v5284_v47 = vand.u32 4294901760, %v5283_v21  ;;  %v4385_v35 = vsub.f32 %v13539_v33, %v15040_v45  ;;  %v15050_v53 = vand.u32 4294901760, %v13560_v59  ;;  %v15884_v63 = vand.u32 4294901760, %v15883_v39 }
 0x334   :  { %15881 = vst [vmem:[#allocation130_spill] sm:$0xff] %v13566_v3  ;;  %v13572_v36 = vpack.c.bf16 %v4392_v57, %v4380_v0  ;;  %v5296_v26 = vand.u32 4294901760, %v5295_v13  ;;  %v4397_v50 = vsub.f32 %v13551_v14, %v15044_v56  ;;  %v15886_v3 = vld [vmem:[#allocation61_spill] sm:$0xff]  ;;  %v15889_v13 = vld [vmem:[#allocation63_spill] sm:$0xff] }
 0x335   :  { %v13580_v22 = vsub.f32 %v15883_v39, %v15884_v63  ;;  %v4386_v21 = vand.u32 4294901760, %v4385_v35  ;;  %v5289_v45 = vsub.f32 %v13560_v59, %v15050_v53  ;;  %v15887_v54 = vand.u32 4294901760, %v15886_v3  ;;  %v15893_v59 = vld [vmem:[#allocation65_spill] sm:$0xff] }
 0x336   :  { %15882 = vst [vmem:[#allocation131_spill] sm:$0xff] %v13572_v36  ;;  %v15890_v0 = vand.u32 4294901760, %v15889_v13  ;;  %v8708_v36 = vadd.f32 %v8707_v38, %v8706_v1  ;;  %v13595_v14 = vpack.c.bf16 %v5296_v26, %v5284_v47  ;;  %v4398_v63 = vand.u32 4294901760, %v4397_v50  ;;  %v15897_v47 = vld [vmem:[#allocation69_spill] sm:$0xff]  ;;  %v15900_v50 = vld [vmem:[#allocation70_spill] sm:$0xff] }
 0x337   :  { %15885 = vst [vmem:[#allocation46_spill] sm:$0xff] %v13580_v22  ;;  %v13588_v57 = vsub.f32 %v15886_v3, %v15887_v54  ;;  %v15057_v35 = vand.u32 4294901760, %v13580_v22  ;;  %v5290_v39 = vand.u32 4294901760, %v5289_v45  ;;  %v15894_v52 = vand.u32 4294901760, %v15893_v59  ;;  %v8709_v3 = vpop.f32.mrb[46].mxu1 }
 0x338   :  { %v13593_v56 = vsub.f32 %v15889_v13, %v15890_v0  ;;  %15892 = vst [vmem:[#allocation132_spill] sm:$0xff] %v13595_v14  ;;  %v13605_v23 = vpack.c.bf16 %v4398_v63, %v4386_v21  ;;  %v15898_v26 = vand.u32 4294901760, %v15897_v47  ;;  %v15901_v38 = vand.u32 4294901760, %v15900_v50  ;;  %v8710_v0 = vpop.f32.mrb[47].mxu1  ;;  %v15902_v63 = vld [vmem:[#allocation73_spill] sm:$0xff]  ;;  %v8668_v14 = vpop.f32.mrb[44].mxu0 }
 0x339   :  { %15888 = vst [vmem:[#allocation61_spill] sm:$0xff] %v13588_v57  ;;  %v15062_v33 = vand.u32 4294901760, %v13588_v57  ;;  %v13603_v54 = vsub.f32 %v15893_v59, %v15894_v52  ;;  %v5301_v1 = vsub.f32 %v13580_v22, %v15057_v35  ;;  %v15903_v35 = vand.u32 4294901760, %v15902_v63 }
 0x33a   :  { %15891 = vst [vmem:[#allocation63_spill] sm:$0xff] %v13593_v56  ;;  %v15063_v53 = vand.u32 4294901760, %v13593_v56  ;;  %15896 = vst [vmem:[#allocation133_spill] sm:$0xff] %v13605_v23  ;;  %v13613_v45 = vsub.f32 %v15897_v47, %v15898_v26  ;;  %v13618_v13 = vsub.f32 %v15900_v50, %v15901_v38  ;;  %v8711_v26 = vadd.f32 %v8710_v0, %v8709_v3 }
 0x33b   :  { %15895 = vst [vmem:[#allocation65_spill] sm:$0xff] %v13603_v54  ;;  %v4403_v59 = vsub.f32 %v13588_v57, %v15062_v33  ;;  %v15070_v21 = vand.u32 4294901760, %v13603_v54  ;;  %v13630_v47 = vsub.f32 %v15902_v63, %v15903_v35  ;;  %v5302_v23 = vand.u32 4294901760, %v5301_v1  ;;  %v8669_v57 = vpop.f32.mrb[45].mxu0 }
 0x33c   :  { %15899 = vst [vmem:[#allocation69_spill] sm:$0xff] %v13613_v45  ;;  %v4415_v52 = vsub.f32 %v13593_v56, %v15063_v53  ;;  %v15074_v50 = vand.u32 4294901760, %v13613_v45  ;;  %v15079_v38 = vand.u32 4294901760, %v13618_v13  ;;  %v8670_v1 = vadd.f32 %v8669_v57, %v8668_v14 }
 0x33d   :  { %v4404_v22 = vand.u32 4294901760, %v4403_v59  ;;  %v5307_v53 = vsub.f32 %v13603_v54, %v15070_v21  ;;  %v15080_v56 = vand.u32 4294901760, %v13630_v47  ;;  %v13638_v49 = vpack.c.bf16 %v5302_v23, %v5290_v39  ;;  %v8671_v39 = vpop.f32.mrb[46].mxu0 }
 0x33e   :  { %v4416_v33 = vand.u32 4294901760, %v4415_v52  ;;  %v5319_v35 = vsub.f32 %v13613_v45, %v15074_v50  ;;  %v4409_v3 = vsub.f32 %v13618_v13, %v15079_v38  ;;  %v3646_v23 = vadd.f32 %v8670_v1, %v13409_v18  ;;  %v8672_v54 = vpop.f32.mrb[47].mxu0 }
 0x33f   :  { %15904 = vst [vmem:[#allocation70_spill] sm:$0xff] %v13638_v49  ;;  %v5308_v59 = vand.u32 4294901760, %v5307_v53  ;;  %v4421_v52 = vsub.f32 %v13630_v47, %v15080_v56  ;;  %v8673_v45 = vadd.f32 %v8672_v54, %v8671_v39  ;;  %v13667_v18 = vpack.c.bf16 %v13189_v62, %v13179_v61  ;;  %v15923_v39 = vld [vmem:[#allocation35_spill] sm:$0xff] }
 0x340   :  { %v13646_v0 = vpack.c.bf16 %v4416_v33, %v4404_v22  ;;  %v5320_v63 = vand.u32 4294901760, %v5319_v35  ;;  %v4410_v21 = vand.u32 4294901760, %v4409_v3  ;;  %v3763_v43 = vadd.f32 %v8708_v36, %v3646_v23 }
 0x341   :  { %v4422_v49 = vand.u32 4294901760, %v4421_v52  ;;  %v3655_v14 = vadd.f32 %v8673_v45, %v13443_v4  ;;  %v13659_v33 = vpack.c.bf16 %v13134_v30, %v13129_v27  ;;  %v13663_v22 = vpack.c.bf16 %v13168_v17, %v13155_v32  ;;  %15907 = vst [vmem:[#allocation135_spill] sm:$0xff] %v13667_v18  ;;  %v15943_v30 = vld [vmem:[#allocation8_spill] sm:$0xff] }
 0x342   :  { %v13652_v50 = vpack.c.bf16 %v5320_v63, %v5308_v59  ;;  %v13671_v36 = vpack.c.bf16 %v13205_v46, %v13194_v24  ;;  %v13679_v4 = vpack.c.bf16 %v13252_v51, %v13234_v19  ;;  %v13683_v57 = vpack.c.bf16 %v13267_v60, %v13257_v29  ;;  %v15942_v46 = vld [vmem:[#allocation7_spill] sm:$0xff] }
 0x343   :  { %v13654_v38 = vpack.c.bf16 %v4422_v49, %v4410_v21  ;;  %v3774_v53 = vadd.f32 %v8711_v26, %v3655_v14  ;;  %15905 = vst [vmem:[#allocation73_spill] sm:$0xff] %v13659_v33  ;;  %15906 = vst [vmem:[#allocation134_spill] sm:$0xff] %v13663_v22  ;;  %v13675_v49 = vpack.c.bf16 %v13222_v42, %v13213_v7  ;;  %v15924_v14 = vld [vmem:[#allocation26_spill] sm:$0xff] }
 0x344   :  { %15908 = vst [vmem:[#allocation136_spill] sm:$0xff] %v13671_v36  ;;  %15910 = vst [vmem:[#allocation138_spill] sm:$0xff] %v13679_v4  ;;  %v13687_v54 = vpack.c.bf16 %v13282_v6, %v13277_v41  ;;  %v13691_v45 = vpack.c.bf16 %v13305_v12, %v13295_v28  ;;  %v13695_v21 = vpack.c.bf16 %v13337_v40, %v13311_v10 }
 0x345   :  { %15909 = vst [vmem:[#allocation137_spill] sm:$0xff] %v13675_v49  ;;  %15911 = vst [vmem:[#allocation139_spill] sm:$0xff] %v13683_v57  ;;  %v13699_v26 = vpack.c.bf16 %v13349_v16, %v13342_v2  ;;  %v13703_v35 = vpack.c.bf16 %v13365_v55, %v13354_v37  ;;  %v13707_v3 = vpack.c.bf16 %v13381_v5, %v13376_v9  ;;  %v15930_v5 = vld [vmem:[#allocation44_spill] sm:$0xff]  ;;  %v15933_v9 = vld [vmem:[#allocation46_spill] sm:$0xff] }
 0x346   :  { %15912 = vst [vmem:[#allocation140_spill] sm:$0xff] %v13687_v54  ;;  %15913 = vst [vmem:[#allocation141_spill] sm:$0xff] %v13691_v45  ;;  %v13711_v1 = vpack.c.bf16 %v13417_v20, %v13407_v34  ;;  %v13715_v59 = vpack.c.bf16 %v13430_v31, %v13425_v44  ;;  %v13719_v52 = vpack.c.bf16 %v13450_v15, %v13441_v11  ;;  %v15926_v20 = vld [vmem:[#allocation41_spill] sm:$0xff]  ;;  %v15927_v34 = vld [vmem:[#allocation43_spill] sm:$0xff] }
 0x347   :  { %15914 = vst [vmem:[#allocation142_spill] sm:$0xff] %v13695_v21  ;;  %15915 = vst [vmem:[#allocation143_spill] sm:$0xff] %v13699_v26  ;;  %v13723_v63 = vpack.c.bf16 %v13471_v8, %v13459_v48  ;;  %v13727_v23 = vpack.c.bf16 %v13500_v25, %v13480_v58  ;;  %v13731_v56 = vpack.c.bf16 %v15924_v14, %v15923_v39  ;;  %v15929_v44 = vld [vmem:[#allocation40_spill] sm:$0xff]  ;;  %v15932_v11 = vld [vmem:[#allocation45_spill] sm:$0xff]  ;;  %v8782_v40 = vpop.f32.mrb[48].mxu1 }
 0x348   :  { %15916 = vst [vmem:[#allocation144_spill] sm:$0xff] %v13703_v35  ;;  %15917 = vst [vmem:[#allocation145_spill] sm:$0xff] %v13707_v3  ;;  %v13735_v31 = vpack.c.bf16 %v15927_v34, %v15926_v20  ;;  %v13739_v15 = vpack.c.bf16 %v15930_v5, %v15929_v44  ;;  %v13743_v8 = vpack.c.bf16 %v15933_v9, %v15932_v11  ;;  %v15935_v48 = vld [vmem:[#allocation61_spill] sm:$0xff]  ;;  %v15936_v55 = vld [vmem:[#allocation63_spill] sm:$0xff]  ;;  %v8783_v10 = vpop.f32.mrb[49].mxu1 }
 0x349   :  { %15918 = vst [vmem:[#allocation146_spill] sm:$0xff] %v13711_v1  ;;  %15919 = vst [vmem:[#allocation147_spill] sm:$0xff] %v13715_v59  ;;  %v13747_v25 = vpack.c.bf16 %v15936_v55, %v15935_v48  ;;  %v15938_v58 = vld [vmem:[#allocation65_spill] sm:$0xff]  ;;  %v13755_v2 = vpack.c.bf16 %v13630_v47, %v13618_v13  ;;  %v8784_v12 = vadd.f32 %v8783_v10, %v8782_v40 }
 0x34a   :  { %15920 = vst [vmem:[#allocation148_spill] sm:$0xff] %v13719_v52  ;;  %15921 = vst [vmem:[#allocation149_spill] sm:$0xff] %v13723_v63  ;;  %v15939_v37 = vld [vmem:[#allocation69_spill] sm:$0xff]  ;;  %v4063_v24 = vmul.f32 %v15942_v46, %v15942_v46  ;;  %v4064_v27 = vmul.f32 %v15943_v30, %v15943_v30 }
 0x34b   :  { %15922 = vst [vmem:[#allocation150_spill] sm:$0xff] %v13727_v23  ;;  %15925 = vst [vmem:[#allocation35_spill] sm:$0xff] %v13731_v56  ;;  %v13751_v16 = vpack.c.bf16 %v15939_v37, %v15938_v58  ;;  %v8785_v28 = vpop.f32.mrb[50].mxu1 }
 0x34c   :  { %15928 = vst [vmem:[#allocation26_spill] sm:$0xff] %v13735_v31  ;;  %15931 = vst [vmem:[#allocation41_spill] sm:$0xff] %v13739_v15  ;;  %v8786_v6 = vpop.f32.mrb[51].mxu1 }
 0x34d   :  { %15934 = vst [vmem:[#allocation43_spill] sm:$0xff] %v13743_v8  ;;  %15937 = vst [vmem:[#allocation40_spill] sm:$0xff] %v13747_v25  ;;  %v8787_v41 = vadd.f32 %v8786_v6, %v8785_v28 }
 0x34e   :  { %15940 = vst [vmem:[#allocation44_spill] sm:$0xff] %v13751_v16  ;;  %15941 = vst [vmem:[#allocation45_spill] sm:$0xff] %v13755_v2  ;;  %v8744_v60 = vpop.f32.mrb[48].mxu0 }
 0x34f   :  { %v8745_v29 = vpop.f32.mrb[49].mxu0 }
 0x350   :  { %v8746_v51 = vadd.f32 %v8745_v29, %v8744_v60 }
 0x352   :  { %v3942_v19 = vadd.f32 %v8746_v51, %v3763_v43  ;;  %v8747_v42 = vpop.f32.mrb[50].mxu0  ;;  %v15944_v51 = vld [vmem:[#allocation78_spill] sm:$0xff] }
 0x353   :  { %v8748_v7 = vpop.f32.mrb[51].mxu0  ;;  %v15945_v29 = vand.u32 4294901760, %v15944_v51 }
 0x354   :  { %v4053_v62 = vadd.f32 %v8784_v12, %v3942_v19  ;;  %v8749_v61 = vadd.f32 %v8748_v7, %v8747_v42  ;;  %v15946_v19 = vld [vmem:[#allocation22_spill] sm:$0xff]  ;;  %v15954_v12 = vand.u32 4294901760, %v15927_v34 }
 0x355   :  { %v13764_v43 = vsub.f32 %v15944_v51, %v15945_v29  ;;  %v15947_v7 = vand.u32 4294901760, %v15946_v19 }
 0x356   :  { %v4065_v17 = vsub.f32 %v4053_v62, %v4063_v24  ;;  %v3949_v32 = vadd.f32 %v8749_v61, %v3774_v53  ;;  %v15948_v62 = vand.u32 4294901760, %v15923_v39  ;;  %v15956_v53 = vand.u32 4294901760, %v15929_v44  ;;  %v15965_v44 = vld [vmem:[#allocation94_spill] sm:$0xff] }
 0x357   :  { %v13769_v61 = vsub.f32 %v15946_v19, %v15947_v7  ;;  %v15966_v19 = vand.u32 4294901760, %v15965_v44  ;;  %v15967_v7 = vld [vmem:[#allocation95_spill] sm:$0xff] }
 0x358   :  { %v4067_v10 = vmax.f32 %v4065_v17, 0.0  ;;  %v4060_v40 = vadd.f32 %v8787_v41, %v3949_v32  ;;  %v15949_v32 = vand.u32 4294901760, %v15924_v14  ;;  %v15953_v41 = vand.u32 4294901760, %v15926_v20  ;;  %v15959_v14 = vld [vmem:[#allocation49_spill] sm:$0xff]  ;;  %v15963_v20 = vld [vmem:[#allocation91_spill] sm:$0xff] }
 0x359   :  { %v15964_v34 = vand.u32 4294901760, %v15963_v20 }
 0x35a   :  { %v4069_v2 = vadd.f32 1e-05, %v4067_v10  ;;  %v4066_v6 = vsub.f32 %v4060_v40, %v4064_v27  ;;  %v13775_v17 = vpack.c.bf16 %v15949_v32, %v15948_v62  ;;  %v15951_v27 = vld [vmem:[#allocation48_spill] sm:$0xff]  ;;  %v15957_v10 = vand.u32 4294901760, %v15930_v5 }
 0x35b   :  { %v15952_v24 = vand.u32 4294901760, %v15951_v27  ;;  %v15960_v40 = vand.u32 4294901760, %v15959_v14  ;;  %v13807_v29 = vsub.f32 %v15963_v20, %v15964_v34  ;;  %v13812_v5 = vsub.f32 %v15965_v44, %v15966_v19 }
 0x35c   :  { %10457 = vrsqrt.f32 %v4069_v2  ;;  %v4068_v28 = vmax.f32 %v4066_v6, 0.0  ;;  %15950 = vst [vmem:[#allocation46_spill] sm:$0xff] %v13775_v17  ;;  %v13786_v2 = vpack.c.bf16 %v15954_v12, %v15953_v41  ;;  %v13792_v39 = vpack.c.bf16 %v15957_v10, %v15956_v53  ;;  %v16011_v17 = vld [vmem:[#allocation127_spill] sm:$0xff] }
 0x35d   :  { %v13780_v42 = vsub.f32 %v15951_v27, %v15952_v24  ;;  %v13797_v6 = vsub.f32 %v15959_v14, %v15960_v40  ;;  %v15968_v62 = vand.u32 4294901760, %v15967_v7  ;;  %v5312_v24 = vand.u32 4294901760, %v13764_v43 }
 0x35e   :  { %v4070_v60 = vadd.f32 1e-05, %v4068_v28  ;;  %15955 = vst [vmem:[#allocation61_spill] sm:$0xff] %v13786_v2  ;;  %15958 = vst [vmem:[#allocation63_spill] sm:$0xff] %v13792_v39  ;;  %v15961_v28 = vld [vmem:[#allocation82_spill] sm:$0xff]  ;;  %v5324_v41 = vand.u32 4294901760, %v13769_v61 }
 0x35f   :  { %v13817_v32 = vsub.f32 %v15967_v7, %v15968_v62  ;;  %v15970_v12 = vand.u32 4294901760, %v15932_v11  ;;  %v15971_v53 = vand.u32 4294901760, %v15933_v9  ;;  %v15973_v14 = vand.u32 4294901760, %v15935_v48  ;;  %v15982_v62 = vld [vmem:[#allocation97_spill] sm:$0xff]  ;;  %v16003_v2 = vld [vmem:[#allocation107_spill] sm:$0xff] }
 0x360   :  { %10459 = vrsqrt.f32 %v4070_v60  ;;  %v15962_v60 = vand.u32 4294901760, %v15961_v28  ;;  %v15974_v40 = vand.u32 4294901760, %v15936_v55  ;;  %v4426_v20 = vand.u32 4294901760, %v13780_v42  ;;  %v15999_v39 = vld [vmem:[#allocation77_spill] sm:$0xff] }
 0x361   :  { %v13827_v10 = vpack.c.bf16 %v15971_v53, %v15970_v12  ;;  %v15976_v34 = vand.u32 4294901760, %v15938_v58  ;;  %v15977_v44 = vand.u32 4294901760, %v15939_v37  ;;  %v15979_v9 = vand.u32 4294901760, %v13618_v13  ;;  %v15984_v58 = vld [vmem:[#allocation98_spill] sm:$0xff] }
 0x362   :  { %v13802_v51 = vsub.f32 %v15961_v28, %v15962_v60  ;;  %v13833_v28 = vpack.c.bf16 %v15974_v40, %v15973_v14  ;;  %v15980_v19 = vand.u32 4294901760, %v13630_v47  ;;  %v4438_v55 = vand.u32 4294901760, %v13797_v6 }
 0x363   :  { %15972 = vst [vmem:[#allocation69_spill] sm:$0xff] %v13827_v10  ;;  %v13843_v11 = vpack.c.bf16 %v15977_v44, %v15976_v34  ;;  %v15983_v12 = vand.u32 4294901760, %v15982_v62  ;;  %v15985_v14 = vand.u32 4294901760, %v15984_v58  ;;  %v5342_v47 = vand.u32 4294901760, %v13807_v29 }
 0x364   :  { %15975 = vst [vmem:[#allocation78_spill] sm:$0xff] %v13833_v28  ;;  %v13849_v48 = vpack.c.bf16 %v15980_v19, %v15979_v9  ;;  %v5330_v7 = vand.u32 4294901760, %v13802_v51  ;;  %v4432_v40 = vand.u32 4294901760, %v13812_v5  ;;  %v4444_v34 = vand.u32 4294901760, %v13817_v32  ;;  %v15997_v28 = vld [vmem:[#allocation71_spill] sm:$0xff] }
 0x365   :  { %15978 = vst [vmem:[#allocation22_spill] sm:$0xff] %v13843_v11  ;;  %v13856_v53 = vsub.f32 %v15982_v62, %v15983_v12  ;;  %v13861_v37 = vsub.f32 %v15984_v58, %v15985_v14  ;;  %v13872_v9 = vpack.c.bf16 %v5324_v41, %v5312_v24  ;;  %v13874_v19 = vpack.c.bf16 %v4438_v55, %v4426_v20 }
 0x366   :  { %v13819_v27 = vpop.eup %10457  ;;  %15981 = vst [vmem:[#allocation48_spill] sm:$0xff] %v13849_v48  ;;  %v13882_v58 = vpack.c.bf16 %v5342_v47, %v5330_v7  ;;  %v13884_v14 = vpack.c.bf16 %v4444_v34, %v4432_v40  ;;  %v15998_v10 = vmov 0.0  }
 0x367   :  { %15969 = vst [vmem:[#allocation65_spill] sm:$0xff] %v13819_v27  ;;  %v13836_v60 = vand.u32 4294901760, %v13819_v27  ;;  %15988 = vst [vmem:[#allocation91_spill] sm:$0xff] %v13872_v9  ;;  %v5336_v30 = vand.u32 4294901760, %v13856_v53 }
 0x368   :  { %15989 = vst [vmem:[#allocation94_spill] sm:$0xff] %v13874_v19  ;;  %15991 = vst [vmem:[#allocation97_spill] sm:$0xff] %v13882_v58  ;;  %v15996_v58 = vld [vmem:[#allocation75_spill] sm:$0xff] }
 0x369   :  { %v13865_v13 = vsub.f32 %v13819_v27, %v13836_v60  ;;  %15992 = vst [vmem:[#allocation98_spill] sm:$0xff] %v13884_v14  ;;  %v5348_v27 = vand.u32 4294901760, %v13861_v37 }
 0x36a   :  { %v13870_v44 = vpop.eup %10459 }
 0x36b   :  { %15986 = vst [vmem:[#allocation49_spill] sm:$0xff] %v13865_v13  ;;  %15987 = vst [vmem:[#allocation82_spill] sm:$0xff] %v13870_v44  ;;  %v13877_v62 = vand.u32 4294901760, %v13870_v44  ;;  %v13880_v12 = vand.u32 4294901760, %v13865_v13  ;;  %v13894_v9 = vpack.c.bf16 %v5348_v27, %v5336_v30 }
 0x36d   :  { %15990 = vst [vmem:[#allocation95_spill] sm:$0xff] %v13880_v12  ;;  %v4237_v46 = vsub.f32 %v13865_v13, %v13880_v12  ;;  %v13892_v19 = vsub.f32 %v13870_v44, %v13877_v62  ;;  %15994 = vst [vmem:[#allocation152_spill] sm:$0xff] %v13894_v9  ;;  %v16001_v9 = vld [vmem:[#allocation92_spill] sm:$0xff]  ;;  %v16013_v12 = vld [vmem:[#allocation129_spill] sm:$0xff] }
 0x36f   :  { %15993 = vst [vmem:[#allocation151_spill] sm:$0xff] %v13892_v19  ;;  %v4238_v48 = vand.u32 4294901760, %v4237_v46  ;;  %v13897_v11 = vand.u32 4294901760, %v13892_v19  ;;  %v16000_v46 = vld [vmem:[#allocation80_spill] sm:$0xff] }
 0x371   :  { %15995 = vst [vmem:[#allocation153_spill] sm:$0xff] %v13897_v11  ;;  %4239 = vmatmul.mubr.f32.vlgmr.msra.gmra.mrb[52].mxu0 %v4238_v48  ;;  %5143 = vmatmul.mubr.f32.vlgmr.msra.gmra.mrb[52].mxu1 %v4238_v48  ;;  %v4248_v14 = vsub.f32 %v13892_v19, %v13897_v11  ;;  %v16002_v48 = vld [vmem:[#allocation106_spill] sm:$0xff]  ;;  %v16012_v11 = vld [vmem:[#allocation128_spill] sm:$0xff] }
 0x372   :  { %9591 = vmatpush1.bf16.msra.mxu0 %v15996_v58  ;;  %9783 = vmatpush1.bf16.msra.mxu1 %v15997_v28  ;;  %v16004_v58 = vld [vmem:[#allocation39_spill] sm:$0xff]  ;;  %v16007_v28 = vld [vmem:[#allocation116_spill] sm:$0xff] }
 0x373   :  { %4244 = vmatprep.mubr.f32.mxu0 %v15998_v10  ;;  %9593 = vmatprep.subr.bf16.mxu0 %v15999_v39  ;;  %v4249_v44 = vand.u32 4294901760, %v4248_v14  ;;  %v16005_v39 = vld [vmem:[#allocation25_spill] sm:$0xff] }
 0x374   :  { %5148 = vmatprep.mubr.f32.mxu1 %v15998_v10  ;;  %9785 = vmatprep.subr.bf16.mxu1 %v16000_v46  ;;  %v16006_v14 = vld [vmem:[#allocation85_spill] sm:$0xff]  ;;  %v16008_v46 = vld [vmem:[#allocation118_spill] sm:$0xff] }
 0x375   :  { %4250 = vmatmul.mubr.f32.gmra.mrb[54].mxu0 %v4249_v44  ;;  %5154 = vmatmul.mubr.f32.gmra.mrb[54].mxu1 %v4249_v44  ;;  %v5313_v44 = vsub.f32 %v13764_v43, %v5312_v24 }
 0x376   :  { %9595 = vmatpush1.bf16.msra.mxu0 %v16001_v9  ;;  %9787 = vmatpush1.bf16.msra.mxu1 %v16002_v48  ;;  %v5325_v48 = vsub.f32 %v13769_v61, %v5324_v41  ;;  %v16009_v9 = vld [vmem:[#allocation121_spill] sm:$0xff]  ;;  %v4433_v41 = vsub.f32 %v13812_v5, %v4432_v40 }
 0x377   :  { %9597 = vmatprep.subr.bf16.mxu0 %v16003_v2  ;;  %9789 = vmatprep.subr.bf16.mxu1 %v16004_v58  ;;  %v16010_v2 = vld [vmem:[#allocation126_spill] sm:$0xff]  ;;  %v4427_v58 = vsub.f32 %v13780_v42, %v4426_v20  ;;  %v4445_v20 = vsub.f32 %v13817_v32, %v4444_v34  ;;  %v16017_v40 = vld [vmem:[#allocation133_spill] sm:$0xff] }
 0x378   :  { %4480 = vmatprep.mubr.f32.mxu0 %v15998_v10  ;;  %5384 = vmatprep.mubr.f32.mxu1 %v15998_v10  ;;  %v5326_v24 = vand.u32 4294901760, %v5325_v48 }
 0x379   :  { %v4446_v34 = vand.u32 4294901760, %v4445_v20  ;;  %v14007_v20 = vpack.c.bf16 %v13807_v29, %v13802_v51 }
 0x37a   :  { %9599 = vmatpush1.bf16.msra.mxu0 %v16005_v39  ;;  %9791 = vmatpush1.bf16.msra.mxu1 %v16006_v14  ;;  %v4439_v14 = vsub.f32 %v13797_v6, %v4438_v55  ;;  %v5314_v39 = vand.u32 4294901760, %v5313_v44  ;;  %v16016_v55 = vld [vmem:[#allocation132_spill] sm:$0xff] }
 0x37b   :  { %9601 = vmatprep.subr.bf16.mxu0 %v16007_v28  ;;  %9793 = vmatprep.subr.bf16.mxu1 %v16008_v46  ;;  %v5331_v28 = vsub.f32 %v13802_v51, %v5330_v7  ;;  %v5343_v46 = vsub.f32 %v13807_v29, %v5342_v47  ;;  %v4428_v7 = vand.u32 4294901760, %v4427_v58  ;;  %v16034_v51 = vld [vmem:[#allocation49_spill] sm:$0xff] }
 0x37c   :  { %v4440_v47 = vand.u32 4294901760, %v4439_v14  ;;  %v13935_v19 = vpack.c.bf16 %v5326_v24, %v5314_v39  ;;  %v16023_v14 = vld [vmem:[#allocation104_spill] sm:$0xff]  ;;  %v16024_v24 = vld [vmem:[#allocation105_spill] sm:$0xff] }
 0x37d   :  { %v5332_v44 = vand.u32 4294901760, %v5331_v28  ;;  %v5344_v48 = vand.u32 4294901760, %v5343_v46  ;;  %v16035_v29 = vld [vmem:[#allocation5_spill] sm:$0xff] }
 0x37e   :  { %9603 = vmatpush1.bf16.msra.mxu0 %v16009_v9  ;;  %9795 = vmatpush1.bf16.msra.mxu1 %v16010_v2  ;;  %v16014_v9 = vld [vmem:[#allocation130_spill] sm:$0xff]  ;;  %v16015_v2 = vld [vmem:[#allocation131_spill] sm:$0xff] }
 0x37f   :  { %9605 = vmatprep.subr.bf16.mxu0 %v16011_v17  ;;  %9797 = vmatprep.subr.bf16.mxu1 %v16012_v11  ;;  %v5337_v17 = vsub.f32 %v13856_v53, %v5336_v30  ;;  %v5349_v11 = vsub.f32 %v13861_v37, %v5348_v27  ;;  %v13941_v27 = vpack.c.bf16 %v4440_v47, %v4428_v7  ;;  %v16029_v7 = vld [vmem:[#allocation45_spill] sm:$0xff]  ;;  %v16040_v47 = vld [vmem:[#allocation6_spill] sm:$0xff] }
 0x380   :  { %v13943_v58 = vpack.c.bf16 %v5344_v48, %v5332_v44  ;;  %v16041_v44 = vld [vmem:[#allocation20_spill] sm:$0xff]  ;;  %v16042_v48 = vld [vmem:[#allocation11_spill] sm:$0xff] }
 0x381   :  { %v5338_v13 = vand.u32 4294901760, %v5337_v17  ;;  %v5350_v30 = vand.u32 4294901760, %v5349_v11  ;;  %v16020_v17 = vld [vmem:[#allocation23_spill] sm:$0xff]  ;;  %v16021_v11 = vld [vmem:[#allocation86_spill] sm:$0xff] }
 0x382   :  { %9607 = vmatpush1.bf16.msra.mxu0 %v16013_v12  ;;  %9799 = vmatpush1.bf16.msra.mxu1 %v16014_v9  ;;  %v16018_v12 = vld [vmem:[#allocation70_spill] sm:$0xff]  ;;  %v4434_v9 = vand.u32 4294901760, %v4433_v41  ;;  %v13955_v46 = vpack.c.bf16 %v16021_v11, %v16020_v17  ;;  %v13959_v41 = vpack.c.bf16 %v16024_v24, %v16023_v14  ;;  %16028 = vst [vmem:[#allocation86_spill] sm:$0xff] %v14007_v20 }
 0x383   :  { %9609 = vmatprep.subr.bf16.mxu0 %v16015_v2  ;;  %9801 = vmatprep.subr.bf16.mxu1 %v16016_v55  ;;  %v13949_v28 = vpack.c.bf16 %v5350_v30, %v5338_v13  ;;  %v13997_v13 = vpack.c.bf16 %v13769_v61, %v13764_v43  ;;  %v14013_v43 = vpack.c.bf16 %v13817_v32, %v13812_v5  ;;  %v16036_v5 = vld [vmem:[#allocation15_spill] sm:$0xff]  ;;  %v16037_v32 = vld [vmem:[#allocation9_spill] sm:$0xff]  ;;  %v16044_v30 = vld [vmem:[#allocation10_spill] sm:$0xff] }
 0x384   :  { %v13947_v39 = vpack.c.bf16 %v4446_v34, %v4434_v9  ;;  %16022 = vst [vmem:[#allocation132_spill] sm:$0xff] %v13955_v46  ;;  %16025 = vst [vmem:[#allocation133_spill] sm:$0xff] %v13959_v41  ;;  %v14003_v9 = vpack.c.bf16 %v13797_v6, %v13780_v42  ;;  %v14017_v61 = vpack.c.bf16 %v13861_v37, %v13856_v53  ;;  %v16032_v42 = vld [vmem:[#allocation12_spill] sm:$0xff]  ;;  %v16033_v6 = vld [vmem:[#allocation13_spill] sm:$0xff] }
 0x385   :  { %16019 = vst [vmem:[#allocation131_spill] sm:$0xff] %v13949_v28  ;;  %16026 = vst [vmem:[#allocation70_spill] sm:$0xff] %v13997_v13  ;;  %v16038_v53 = vld [vmem:[#allocation17_spill] sm:$0xff]  ;;  %v16039_v37 = vld [vmem:[#allocation151_spill] sm:$0xff] }
 0x386   :  { %9611 = vmatpush1.bf16.msra.mxu0 %v16017_v40  ;;  %9803 = vmatpush1.bf16.msra.mxu1 %v16018_v12  ;;  %16027 = vst [vmem:[#allocation23_spill] sm:$0xff] %v14003_v9  ;;  %16030 = vst [vmem:[#allocation104_spill] sm:$0xff] %v14013_v43  ;;  %v16043_v34 = vld [vmem:[#allocation21_spill] sm:$0xff] }
 0x387   :  { %9613 = vmatprep.subr.bf16.mxu0 %v13646_v0  ;;  %9805 = vmatprep.subr.bf16.mxu1 %v13652_v50  ;;  %16031 = vst [vmem:[#allocation105_spill] sm:$0xff] %v14017_v61 }
 0x38a   :  { %9615 = vmatpush1.bf16.msra.mxu0 %v13654_v38  ;;  %9807 = vmatpush1.bf16.msra.mxu1 %v13935_v19 }
 0x38b   :  { %9617 = vmatprep.subr.bf16.mxu0 %v13941_v27  ;;  %9809 = vmatprep.subr.bf16.mxu1 %v13943_v58 }
 0x38e   :  { %9619 = vmatpush1.bf16.msra.mxu0 %v13947_v39  ;;  %9811 = vmatpush1.bf16.msra.mxu1 %v13949_v28 }
 0x38f   :  { %9621 = vmatprep.subr.bf16.mxu0 %v13955_v46  ;;  %9813 = vmatprep.subr.bf16.mxu1 %v13959_v41 }
 0x391   :  { %4482 = vmatmul.mubr.f32.vlgmr.msra.gmra.mrb[52].mxu0 %v13836_v60  ;;  %5386 = vmatmul.mubr.f32.vlgmr.msra.gmra.mrb[52].mxu1 %v13836_v60 }
 0x392   :  { %9623 = vmatpush1.bf16.msra.mxu0 %v13659_v33  ;;  %9815 = vmatpush1.bf16.msra.mxu1 %v13663_v22 }
 0x393   :  { %4487 = vmatprep.mubr.f32.mxu0 %v15998_v10  ;;  %5391 = vmatprep.mubr.f32.mxu1 %v15998_v10 }
 0x394   :  { %9625 = vmatprep.subr.bf16.mxu0 %v13667_v18  ;;  %9817 = vmatprep.subr.bf16.mxu1 %v13671_v36  ;;  %v16074_v18 = vld [vmem:[#allocation109_spill] sm:$0xff] }
 0x395   :  { %4489 = vmatmul.mubr.f32.gmra.mrb[54].mxu0 %v13877_v62  ;;  %5393 = vmatmul.mubr.f32.gmra.mrb[54].mxu1 %v13877_v62  ;;  %v16075_v22 = vand.u32 4294901760, %v16074_v18 }
 0x396   :  { %9627 = vmatpush1.bf16.msra.mxu0 %v13675_v49  ;;  %9819 = vmatpush1.bf16.msra.mxu1 %v13679_v4  ;;  %v16071_v4 = vld [vmem:[#allocation103_spill] sm:$0xff]  ;;  %v16072_v49 = vld [vmem:[#allocation36_spill] sm:$0xff] }
 0x397   :  { %9629 = vmatprep.subr.bf16.mxu0 %v13683_v57  ;;  %9821 = vmatprep.subr.bf16.mxu1 %v13687_v54  ;;  %v16070_v57 = vld [vmem:[#allocation28_spill] sm:$0xff]  ;;  %v16073_v36 = vand.u32 4294901760, %v16072_v49  ;;  %v16087_v49 = vld [vmem:[#allocation74_spill] sm:$0xff] }
 0x398   :  { %4623 = vmatprep.mubr.f32.mxu0 %v15998_v10  ;;  %5527 = vmatprep.mubr.f32.mxu1 %v15998_v10  ;;  %v16088_v18 = vand.u32 4294901760, %v16087_v49  ;;  %v16100_v49 = vld [vmem:[#allocation72_spill] sm:$0xff] }
 0x399   :  { %v14079_v33 = vpack.c.bf16 %v16075_v22, %v16073_v36  ;;  %v16089_v22 = vld [vmem:[#allocation81_spill] sm:$0xff] }
 0x39a   :  { %9631 = vmatpush1.bf16.msra.mxu0 %v13691_v45  ;;  %9823 = vmatpush1.bf16.msra.mxu1 %v13695_v21  ;;  %v16067_v21 = vand.u32 4294901760, %v16023_v14  ;;  %v16068_v45 = vand.u32 4294901760, %v16024_v24  ;;  %v16084_v14 = vld [vmem:[#allocation54_spill] sm:$0xff]  ;;  %v16090_v36 = vand.u32 4294901760, %v16089_v22  ;;  %v16101_v22 = vand.u32 4294901760, %v16100_v49 }
 0x39b   :  { %9633 = vmatprep.subr.bf16.mxu0 %v13699_v26  ;;  %9825 = vmatprep.subr.bf16.mxu1 %v13703_v35  ;;  %v16065_v35 = vand.u32 4294901760, %v16021_v11  ;;  %16076 = vst [vmem:[#allocation49_spill] sm:$0xff] %v14079_v33  ;;  %v16085_v24 = vand.u32 4294901760, %v16084_v14  ;;  %v16098_v14 = vld [vmem:[#allocation68_spill] sm:$0xff] }
 0x39c   :  { %v14071_v54 = vpack.c.bf16 %v16068_v45, %v16067_v21  ;;  %v16082_v45 = vld [vmem:[#allocation51_spill] sm:$0xff]  ;;  %v14099_v28 = vpack.c.bf16 %v16090_v36, %v16088_v18  ;;  %v16103_v36 = vld [vmem:[#allocation76_spill] sm:$0xff] }
 0x39d   :  { %v16083_v21 = vand.u32 4294901760, %v16082_v45 }
 0x39e   :  { %9635 = vmatpush1.bf16.msra.mxu0 %v13707_v3  ;;  %9827 = vmatpush1.bf16.msra.mxu1 %v13711_v1  ;;  %v16063_v1 = vld [vmem:[#allocation101_spill] sm:$0xff]  ;;  %v16064_v3 = vand.u32 4294901760, %v16020_v17  ;;  %16069 = vst [vmem:[#allocation13_spill] sm:$0xff] %v14071_v54  ;;  %v16077_v17 = vld [vmem:[#allocation38_spill] sm:$0xff]  ;;  %16091 = vst [vmem:[#allocation9_spill] sm:$0xff] %v14099_v28 }
 0x39f   :  { %9637 = vmatprep.subr.bf16.mxu0 %v13715_v59  ;;  %9829 = vmatprep.subr.bf16.mxu1 %v13719_v52  ;;  %v16061_v52 = vld [vmem:[#allocation96_spill] sm:$0xff]  ;;  %v16078_v11 = vand.u32 4294901760, %v16077_v17  ;;  %v14093_v46 = vpack.c.bf16 %v16085_v24, %v16083_v21  ;;  %v16092_v17 = vld [vmem:[#allocation95_spill] sm:$0xff]  ;;  %v16099_v24 = vand.u32 4294901760, %v16098_v14  ;;  %v16113_v14 = vld [vmem:[#allocation153_spill] sm:$0xff] }
 0x3a0   :  { %v16062_v59 = vld [vmem:[#allocation100_spill] sm:$0xff]  ;;  %v14065_v26 = vpack.c.bf16 %v16065_v35, %v16064_v3 }
 0x3a1   :  { %v16079_v35 = vld [vmem:[#allocation112_spill] sm:$0xff]  ;;  %16086 = vst [vmem:[#allocation15_spill] sm:$0xff] %v14093_v46  ;;  %v14115_v18 = vpack.c.bf16 %v16101_v22, %v16099_v24  ;;  %v16116_v24 = vld [vmem:[#allocation99_spill] sm:$0xff] }
 0x3a2   :  { %9639 = vmatpush1.bf16.msra.mxu0 %v13723_v63  ;;  %9831 = vmatpush1.bf16.msra.mxu1 %v13727_v23  ;;  %v16059_v23 = vld [vmem:[#allocation87_spill] sm:$0xff]  ;;  %v16060_v63 = vld [vmem:[#allocation90_spill] sm:$0xff]  ;;  %16066 = vst [vmem:[#allocation12_spill] sm:$0xff] %v14065_v26  ;;  %v16080_v3 = vand.u32 4294901760, %v16079_v35  ;;  %v16117_v49 = vand.u32 4294901760, %v16116_v24 }
 0x3a3   :  { %9641 = vmatprep.subr.bf16.mxu0 %v13731_v56  ;;  %9833 = vmatprep.subr.bf16.mxu1 %v13735_v31  ;;  %v16057_v31 = vld [vmem:[#allocation66_spill] sm:$0xff]  ;;  %v16058_v56 = vld [vmem:[#allocation31_spill] sm:$0xff]  ;;  %16102 = vst [vmem:[#allocation151_spill] sm:$0xff] %v14115_v18 }
 0x3a4   :  { %v14085_v41 = vpack.c.bf16 %v16080_v3, %v16078_v11  ;;  %v16093_v11 = vld [vmem:[#allocation32_spill] sm:$0xff]  ;;  %v16095_v3 = vld [vmem:[#allocation67_spill] sm:$0xff] }
 0x3a5   :  { %v16094_v35 = vand.u32 4294901760, %v16093_v11  ;;  %v16096_v45 = vand.u32 4294901760, %v16095_v3  ;;  %v16108_v11 = vld [vmem:[#allocation88_spill] sm:$0xff] }
 0x3a6   :  { %9643 = vmatpush1.bf16.msra.mxu0 %v13739_v15  ;;  %9835 = vmatpush1.bf16.msra.mxu1 %v13743_v8  ;;  %v16055_v8 = vld [vmem:[#allocation57_spill] sm:$0xff]  ;;  %v16056_v15 = vld [vmem:[#allocation58_spill] sm:$0xff]  ;;  %16081 = vst [vmem:[#allocation5_spill] sm:$0xff] %v14085_v41  ;;  %v16109_v3 = vand.u32 4294901760, %v16108_v11 }
 0x3a7   :  { %9645 = vmatprep.subr.bf16.mxu0 %v13747_v25  ;;  %9837 = vmatprep.subr.bf16.mxu1 %v13751_v16  ;;  %v16053_v16 = vld [vmem:[#allocation42_spill] sm:$0xff]  ;;  %v16054_v25 = vld [vmem:[#allocation47_spill] sm:$0xff]  ;;  %v14109_v21 = vpack.c.bf16 %v16096_v45, %v16094_v35  ;;  %v16110_v35 = vld [vmem:[#allocation89_spill] sm:$0xff] }
 0x3a8   :  { %v16111_v45 = vand.u32 4294901760, %v16110_v35  ;;  %v16121_v11 = vld [vmem:[#allocation37_spill] sm:$0xff] }
 0x3a9   :  { %16097 = vst [vmem:[#allocation17_spill] sm:$0xff] %v14109_v21 }
 0x3aa   :  { %9647 = vmatpush1.bf16.msra.mxu0 %v16029_v7  ;;  %9839 = vmatpush1.bf16.msra.mxu1 %v13997_v13  ;;  %v16051_v13 = vld [vmem:[#allocation34_spill] sm:$0xff]  ;;  %v16052_v7 = vld [vmem:[#allocation29_spill] sm:$0xff] }
 0x3ab   :  { %9649 = vmatprep.subr.bf16.mxu0 %v14003_v9  ;;  %9841 = vmatprep.subr.bf16.mxu1 %v14007_v20  ;;  %v16049_v20 = vld [vmem:[#allocation30_spill] sm:$0xff] }
 0x3ac   :  { %v16050_v9 = vld [vmem:[#allocation18_spill] sm:$0xff] }
 0x3ae   :  { %9651 = vmatpush1.bf16.msra.mxu0 %v14013_v43  ;;  %9843 = vmatpush1.bf16.msra.mxu1 %v14017_v61  ;;  %v16046_v61 = vld [vmem:[#allocation16_spill] sm:$0xff]  ;;  %v16047_v43 = vld [vmem:[#allocation27_spill] sm:$0xff] }
 0x3af   :  { %9653 = vmatprep.subr.bf16.mxu0 %v16032_v42  ;;  %9845 = vmatprep.subr.bf16.mxu1 %v16033_v6 }
 0x3b1   :  { %4626 = vmatmul.mubr.f32.vlgmr.msra.gmra.mrb[52].mxu0 %v16034_v51  ;;  %5530 = vmatmul.mubr.f32.vlgmr.msra.gmra.mrb[52].mxu1 %v16034_v51  ;;  %v16045_v51 = vld [vmem:[#allocation24_spill] sm:$0xff] }
 0x3b2   :  { %9655 = vmatpush1.bf16.msra.mxu0 %v16035_v29  ;;  %9847 = vmatpush1.bf16.msra.mxu1 %v16036_v5 }
 0x3b3   :  { %4631 = vmatprep.mubr.f32.mxu0 %v15998_v10  ;;  %5535 = vmatprep.mubr.f32.mxu1 %v15998_v10 }
 0x3b4   :  { %9657 = vmatprep.subr.bf16.mxu0 %v16037_v32  ;;  %9849 = vmatprep.subr.bf16.mxu1 %v16038_v53 }
 0x3b5   :  { %4634 = vmatmul.mubr.f32.gmra.mrb[54].mxu0 %v16039_v37  ;;  %5538 = vmatmul.mubr.f32.gmra.mrb[54].mxu1 %v16039_v37  ;;  %v16048_v37 = vld [vmem:[#allocation14_spill] sm:$0xff] }
 0x3b6   :  { %9659 = vmatpush1.bf16.msra.mxu0 %v16040_v47  ;;  %9851 = vmatpush1.bf16.msra.mxu1 %v16041_v44 }
 0x3b7   :  { %9661 = vmatprep.subr.bf16.mxu0 %v16042_v48  ;;  %9853 = vmatprep.subr.bf16.mxu1 %v16043_v34 }
 0x3b8   :  { %4736 = vmatprep.mubr.f32.mxu0 %v15998_v10  ;;  %5640 = vmatprep.mubr.f32.mxu1 %v15998_v10 }
 0x3ba   :  { %9663 = vmatpush1.bf16.msra.mxu0 %v16044_v30  ;;  %9855 = vmatpush1.bf16.msra.mxu1 %v16045_v51 }
 0x3bb   :  { %9665 = vmatprep.subr.bf16.mxu0 %v16046_v61  ;;  %9857 = vmatprep.subr.bf16.mxu1 %v16047_v43 }
 0x3be   :  { %9667 = vmatpush1.bf16.msra.mxu0 %v16048_v37  ;;  %9859 = vmatpush1.bf16.msra.mxu1 %v16049_v20 }
 0x3bf   :  { %9669 = vmatprep.subr.bf16.mxu0 %v16050_v9  ;;  %9861 = vmatprep.subr.bf16.mxu1 %v16051_v13 }
 0x3c2   :  { %9671 = vmatpush1.bf16.msra.mxu0 %v16052_v7  ;;  %9863 = vmatpush1.bf16.msra.mxu1 %v16053_v16 }
 0x3c3   :  { %9673 = vmatprep.subr.bf16.mxu0 %v16054_v25  ;;  %9865 = vmatprep.subr.bf16.mxu1 %v16055_v8 }
 0x3c6   :  { %9675 = vmatpush1.bf16.msra.mxu0 %v16056_v15  ;;  %9867 = vmatpush1.bf16.msra.mxu1 %v16057_v31 }
 0x3c7   :  { %9677 = vmatprep.subr.bf16.mxu0 %v16058_v56  ;;  %9869 = vmatprep.subr.bf16.mxu1 %v16059_v23 }
 0x3ca   :  { %9679 = vmatpush1.bf16.msra.mxu0 %v16060_v63  ;;  %9871 = vmatpush1.bf16.msra.mxu1 %v16061_v52 }
 0x3cb   :  { %9681 = vmatprep.subr.bf16.mxu0 %v16062_v59  ;;  %9873 = vmatprep.subr.bf16.mxu1 %v16063_v1 }
 0x3ce   :  { %9683 = vmatpush1.bf16.msra.mxu0 %v16070_v57  ;;  %9875 = vmatpush1.bf16.msra.mxu1 %v16071_v4 }
 0x3cf   :  { %9685 = vmatprep.subr.bf16.mxu0 %v14065_v26  ;;  %9877 = vmatprep.subr.bf16.mxu1 %v14071_v54  ;;  %v14129_v26 = vpack.c.bf16 %v16111_v45, %v16109_v3  ;;  %v16122_v3 = vand.u32 4294901760, %v16121_v11  ;;  %v16124_v45 = vld [vmem:[#allocation108_spill] sm:$0xff] }
 0x3d0   :  { %v16136_v11 = vld [vmem:[#allocation84_spill] sm:$0xff] }
 0x3d1   :  { %4740 = vmatmul.mubr.f32.vlgmr.msra.gmra.mrb[52].mxu0 %v16092_v17  ;;  %5644 = vmatmul.mubr.f32.vlgmr.msra.gmra.mrb[52].mxu1 %v16092_v17  ;;  %v16104_v17 = vand.u32 4294901760, %v16103_v36  ;;  %16112 = vst [vmem:[#allocation20_spill] sm:$0xff] %v14129_v26  ;;  %v16119_v36 = vld [vmem:[#allocation102_spill] sm:$0xff] }
 0x3d2   :  { %9687 = vmatpush1.bf16.msra.mxu0 %v14079_v33  ;;  %9879 = vmatpush1.bf16.msra.mxu1 %v14085_v41  ;;  %v16105_v33 = vld [vmem:[#allocation79_spill] sm:$0xff] }
 0x3d3   :  { %4745 = vmatprep.mubr.f32.mxu0 %v15998_v10  ;;  %5649 = vmatprep.mubr.f32.mxu1 %v15998_v10  ;;  %v16106_v41 = vand.u32 4294901760, %v16105_v33  ;;  %v16114_v33 = vld [vmem:[#allocation93_spill] sm:$0xff] }
 0x3d4   :  { %9689 = vmatprep.subr.bf16.mxu0 %v14093_v46  ;;  %9881 = vmatprep.subr.bf16.mxu1 %v14099_v28 }
 0x3d5   :  { %v14123_v54 = vpack.c.bf16 %v16106_v41, %v16104_v17  ;;  %4749 = vmatmul.mubr.f32.gmra.mrb[54].mxu0 %v16113_v14  ;;  %5653 = vmatmul.mubr.f32.gmra.mrb[54].mxu1 %v16113_v14  ;;  %v16115_v41 = vand.u32 4294901760, %v16114_v33  ;;  %v16120_v17 = vand.u32 4294901760, %v16119_v36  ;;  %v16125_v14 = vand.u32 4294901760, %v16124_v45  ;;  %v16129_v33 = vld [vmem:[#allocation113_spill] sm:$0xff]  ;;  %v16134_v36 = vld [vmem:[#allocation83_spill] sm:$0xff] }
 0x3d6   :  { %9691 = vmatpush1.bf16.msra.mxu0 %v14109_v21  ;;  %9883 = vmatpush1.bf16.msra.mxu1 %v14115_v18  ;;  %v16126_v21 = vld [vmem:[#allocation111_spill] sm:$0xff]  ;;  %v16130_v24 = vand.u32 4294901760, %v16129_v33 }
 0x3d7   :  { %16107 = vst [vmem:[#allocation6_spill] sm:$0xff] %v14123_v54  ;;  %v14141_v22 = vpack.c.bf16 %v16117_v49, %v16115_v41  ;;  %v14147_v35 = vpack.c.bf16 %v16122_v3, %v16120_v17  ;;  %9693 = vmatprep.subr.bf16.mxu0 %v14123_v54  ;;  %9885 = vmatprep.subr.bf16.mxu1 %v14129_v26  ;;  %v16127_v18 = vand.u32 4294901760, %v16126_v21  ;;  %v16131_v41 = vld [vmem:[#allocation114_spill] sm:$0xff]  ;;  %v16135_v17 = vand.u32 4294901760, %v16134_v36  ;;  %v16138_v3 = vld [vmem:[#allocation115_spill] sm:$0xff] }
 0x3d8   :  { %v16132_v49 = vand.u32 4294901760, %v16131_v41  ;;  %4915 = vmatprep.mubr.f32.mxu0 %v15998_v10  ;;  %5819 = vmatprep.mubr.f32.mxu1 %v15998_v10  ;;  %v16137_v21 = vand.u32 4294901760, %v16136_v11  ;;  %v16139_v45 = vand.u32 4294901760, %v16138_v3  ;;  %v16142_v41 = vld [vmem:[#allocation119_spill] sm:$0xff]  ;;  %v16146_v36 = vld [vmem:[#allocation122_spill] sm:$0xff]  ;;  %v16150_v3 = vld [vmem:[#allocation124_spill] sm:$0xff] }
 0x3d9   :  { %16118 = vst [vmem:[#allocation11_spill] sm:$0xff] %v14141_v22  ;;  %16123 = vst [vmem:[#allocation21_spill] sm:$0xff] %v14147_v35  ;;  %v14155_v28 = vpack.c.bf16 %v16127_v18, %v16125_v14  ;;  %v16140_v14 = vld [vmem:[#allocation117_spill] sm:$0xff]  ;;  %v16147_v11 = vand.u32 4294901760, %v16146_v36  ;;  %v16160_v36 = vld [vmem:[#allocation46_spill] sm:$0xff] }
 0x3da   :  { %v14161_v46 = vpack.c.bf16 %v16132_v49, %v16130_v24  ;;  %9695 = vmatpush1.bf16.msra.mxu0 %v14141_v22  ;;  %9887 = vmatpush1.bf16.msra.mxu1 %v14147_v35  ;;  %v14171_v18 = vpack.c.bf16 %v16137_v21, %v16135_v17  ;;  %v16141_v33 = vand.u32 4294901760, %v16140_v14  ;;  %v16143_v49 = vand.u32 4294901760, %v16142_v41  ;;  %v16144_v22 = vld [vmem:[#allocation120_spill] sm:$0xff]  ;;  %v16148_v17 = vld [vmem:[#allocation123_spill] sm:$0xff]  ;;  %v16152_v14 = vld [vmem:[#allocation125_spill] sm:$0xff] }
 0x3db   :  { %16128 = vst [vmem:[#allocation10_spill] sm:$0xff] %v14155_v28  ;;  %9697 = vmatprep.subr.bf16.mxu0 %v14155_v28  ;;  %v16145_v35 = vand.u32 4294901760, %v16144_v22  ;;  %v16149_v21 = vand.u32 4294901760, %v16148_v17  ;;  %v16155_v41 = vld [vmem:[#allocation19_spill] sm:$0xff] }
 0x3dc   :  { %16133 = vst [vmem:[#allocation24_spill] sm:$0xff] %v14161_v46  ;;  %v14177_v24 = vpack.c.bf16 %v16141_v33, %v16139_v45  ;;  %9889 = vmatprep.subr.bf16.mxu1 %v14161_v46  ;;  %v16151_v45 = vand.u32 4294901760, %v16150_v3  ;;  %v16153_v33 = vand.u32 4294901760, %v16152_v14  ;;  %v16156_v22 = vand.u32 4294901760, %v16155_v41  ;;  %v16162_v17 = vld [vmem:[#allocation63_spill] sm:$0xff]  ;;  %v16164_v3 = vld [vmem:[#allocation78_spill] sm:$0xff] }
 0x3dd   :  { %v14185_v26 = vpack.c.bf16 %v16145_v35, %v16143_v49  ;;  %v14191_v54 = vpack.c.bf16 %v16149_v21, %v16147_v11  ;;  %v16157_v35 = vld [vmem:[#allocation33_spill] sm:$0xff]  ;;  %v16166_v14 = vld [vmem:[#allocation48_spill] sm:$0xff]  ;;  %v16168_v41 = vld [vmem:[#allocation94_spill] sm:$0xff] }
 0x3de   :  { %9699 = vmatpush1.bf16.msra.mxu0 %v14171_v18  ;;  %9891 = vmatpush1.bf16.msra.mxu1 %v14177_v24  ;;  %v14199_v46 = vpack.c.bf16 %v16153_v33, %v16151_v45  ;;  %v16158_v49 = vand.u32 4294901760, %v16157_v35  ;;  %v16161_v11 = vld [vmem:[#allocation61_spill] sm:$0xff]  ;;  %v16165_v45 = vld [vmem:[#allocation22_spill] sm:$0xff]  ;;  %v16167_v33 = vld [vmem:[#allocation91_spill] sm:$0xff] }
 0x3df   :  { %9701 = vmatprep.subr.bf16.mxu0 %v14185_v26  ;;  %9893 = vmatprep.subr.bf16.mxu1 %v14191_v54  ;;  %v16163_v21 = vld [vmem:[#allocation69_spill] sm:$0xff]  ;;  %v16170_v35 = vld [vmem:[#allocation98_spill] sm:$0xff] }
 0x3e0   :  { %16154 = vst [vmem:[#allocation16_spill] sm:$0xff] %v14199_v46  ;;  %v14205_v28 = vpack.c.bf16 %v16158_v49, %v16156_v22  ;;  %v16169_v22 = vld [vmem:[#allocation97_spill] sm:$0xff]  ;;  %v16171_v49 = vld [vmem:[#allocation152_spill] sm:$0xff] }
 0x3e2   :  { %16159 = vst [vmem:[#allocation27_spill] sm:$0xff] %v14205_v28  ;;  %9703 = vmatpush1.bf16.msra.mxu0 %v14199_v46  ;;  %9895 = vmatpush1.bf16.msra.mxu1 %v14205_v28  ;;  %v16180_v28 = vld [vmem:[#allocation77_spill] sm:$0xff]  ;;  %v16195_v46 = vld [vmem:[#allocation130_spill] sm:$0xff] }
 0x3e3   :  { %9705 = vmatprep.subr.bf16.mxu0 %v16160_v36  ;;  %9897 = vmatprep.subr.bf16.mxu1 %v16161_v11  ;;  %v16179_v11 = vld [vmem:[#allocation71_spill] sm:$0xff] }
 0x3e6   :  { %9707 = vmatpush1.bf16.msra.mxu0 %v16162_v17  ;;  %9899 = vmatpush1.bf16.msra.mxu1 %v16163_v21  ;;  %v16178_v17 = vld [vmem:[#allocation75_spill] sm:$0xff] }
 0x3e7   :  { %9709 = vmatprep.subr.bf16.mxu0 %v16164_v3  ;;  %9901 = vmatprep.subr.bf16.mxu1 %v16165_v45  ;;  %v16176_v45 = vld [vmem:[#allocation110_spill] sm:$0xff]  ;;  %v16177_v3 = vld [vmem:[#allocation56_spill] sm:$0xff] }
 0x3ea   :  { %9711 = vmatpush1.bf16.msra.mxu0 %v16166_v14  ;;  %9903 = vmatpush1.bf16.msra.mxu1 %v16167_v33 }
 0x3eb   :  { %9713 = vmatprep.subr.bf16.mxu0 %v16168_v41  ;;  %9905 = vmatprep.subr.bf16.mxu1 %v16169_v22  ;;  %v16174_v22 = vld [vmem:[#allocation8_spill] sm:$0xff]  ;;  %v16175_v41 = vld [vmem:[#allocation82_spill] sm:$0xff] }
 0x3ec   :  { %v5946_v33 = vmul.f32 %v16175_v41, %v16174_v22 }
 0x3ee   :  { %9715 = vmatpush1.bf16.msra.mxu0 %v16170_v35  ;;  %9907 = vmatpush1.bf16.msra.mxu1 %v16171_v49 }
 0x3ef   :  { %9717 = vmatprep.subr.bf16.mxu0 %v16032_v42  ;;  %9909 = vmatprep.subr.bf16.mxu1 %v16033_v6 }
 0x3f1   :  { %4917 = vmatmul.mubr.f32.vlgmr.msra.gmra.mrb[52].mxu0 %v13836_v60  ;;  %5821 = vmatmul.mubr.f32.vlgmr.msra.gmra.mrb[52].mxu1 %v13836_v60 }
 0x3f2   :  { %9719 = vmatpush1.bf16.msra.mxu0 %v16035_v29  ;;  %9911 = vmatpush1.bf16.msra.mxu1 %v16036_v5 }
 0x3f3   :  { %4922 = vmatprep.mubr.f32.mxu0 %v15998_v10  ;;  %5826 = vmatprep.mubr.f32.mxu1 %v15998_v10 }
 0x3f4   :  { %9721 = vmatprep.subr.bf16.mxu0 %v16037_v32  ;;  %9913 = vmatprep.subr.bf16.mxu1 %v16038_v53 }
 0x3f5   :  { %4924 = vmatmul.mubr.f32.gmra.mrb[54].mxu0 %v13877_v62  ;;  %5828 = vmatmul.mubr.f32.gmra.mrb[54].mxu1 %v13877_v62 }
 0x3f6   :  { %9723 = vmatpush1.bf16.msra.mxu0 %v16040_v47  ;;  %9915 = vmatpush1.bf16.msra.mxu1 %v16041_v44 }
 0x3f7   :  { %9725 = vmatprep.subr.bf16.mxu0 %v16042_v48  ;;  %9917 = vmatprep.subr.bf16.mxu1 %v16043_v34 }
 0x3f8   :  { %5026 = vmatprep.mubr.f32.mxu0 %v15998_v10  ;;  %5930 = vmatprep.mubr.f32.mxu1 %v15998_v10 }
 0x3fa   :  { %9727 = vmatpush1.bf16.msra.mxu0 %v16044_v30  ;;  %9919 = vmatpush1.bf16.msra.mxu1 %v16045_v51 }
 0x3fb   :  { %9729 = vmatprep.subr.bf16.mxu0 %v16046_v61  ;;  %9921 = vmatprep.subr.bf16.mxu1 %v16047_v43 }
 0x3fe   :  { %9731 = vmatpush1.bf16.msra.mxu0 %v16048_v37  ;;  %9923 = vmatpush1.bf16.msra.mxu1 %v16049_v20 }
 0x3ff   :  { %9733 = vmatprep.subr.bf16.mxu0 %v16050_v9  ;;  %9925 = vmatprep.subr.bf16.mxu1 %v16051_v13 }
 0x402   :  { %9735 = vmatpush1.bf16.msra.mxu0 %v16052_v7  ;;  %9927 = vmatpush1.bf16.msra.mxu1 %v16053_v16 }
 0x403   :  { %9737 = vmatprep.subr.bf16.mxu0 %v16054_v25  ;;  %9929 = vmatprep.subr.bf16.mxu1 %v16055_v8 }
 0x406   :  { %9739 = vmatpush1.bf16.msra.mxu0 %v16056_v15  ;;  %9931 = vmatpush1.bf16.msra.mxu1 %v16057_v31 }
 0x407   :  { %9741 = vmatprep.subr.bf16.mxu0 %v16058_v56  ;;  %9933 = vmatprep.subr.bf16.mxu1 %v16059_v23 }
 0x40a   :  { %9743 = vmatpush1.bf16.msra.mxu0 %v16060_v63  ;;  %9935 = vmatpush1.bf16.msra.mxu1 %v16061_v52 }
 0x40b   :  { %9745 = vmatprep.subr.bf16.mxu0 %v16062_v59  ;;  %9937 = vmatprep.subr.bf16.mxu1 %v16063_v1 }
 0x40e   :  { %9747 = vmatpush1.bf16.msra.mxu0 %v16070_v57  ;;  %9939 = vmatpush1.bf16.msra.mxu1 %v16071_v4 }
 0x40f   :  { %9941 = vmatprep.subr.bf16.mxu0 %v16032_v42  ;;  %10133 = vmatprep.subr.bf16.mxu1 %v16033_v6 }
 0x411   :  { %5028 = vmatmul.mubr.f32.vlgmr.msra.gmra.mrb[52].mxu0 %v13836_v60  ;;  %5932 = vmatmul.mubr.f32.vlgmr.msra.gmra.mrb[52].mxu1 %v13836_v60  ;;  %v16172_v60 = vld [vmem:[#allocation7_spill] sm:$0xff] }
 0x412   :  { %9943 = vmatpush1.bf16.msra.mxu0 %v16035_v29  ;;  %10135 = vmatpush1.bf16.msra.mxu1 %v16036_v5 }
 0x413   :  { %5033 = vmatprep.mubr.f32.mxu0 %v15998_v10  ;;  %5937 = vmatprep.mubr.f32.mxu1 %v15998_v10 }
 0x414   :  { %9945 = vmatprep.subr.bf16.mxu0 %v16037_v32  ;;  %10137 = vmatprep.subr.bf16.mxu1 %v16038_v53 }
 0x415   :  { %5035 = vmatmul.mubr.f32.gmra.mrb[54].mxu0 %v13877_v62  ;;  %5939 = vmatmul.mubr.f32.gmra.mrb[54].mxu1 %v13877_v62  ;;  %v16173_v62 = vld [vmem:[#allocation65_spill] sm:$0xff] }
 0x416   :  { %9947 = vmatpush1.bf16.msra.mxu0 %v16040_v47  ;;  %10139 = vmatpush1.bf16.msra.mxu1 %v16041_v44  ;;  %v5945_v49 = vmul.f32 %v16173_v62, %v16172_v60  ;;  %v14302_v62 = vand.u32 4294901760, %v5946_v33 }
 0x417   :  { %9949 = vmatprep.subr.bf16.mxu0 %v16042_v48  ;;  %10141 = vmatprep.subr.bf16.mxu1 %v16043_v34 }
 0x418   :  { %6043 = vmatprep.mubr.f32.mxu0 %v15998_v10  ;;  %6947 = vmatprep.mubr.f32.mxu1 %v15998_v10  ;;  %v14291_v35 = vand.u32 4294901760, %v5945_v49  ;;  %v14312_v22 = vsub.f32 %v5946_v33, %v14302_v62 }
 0x41a   :  { %9951 = vmatpush1.bf16.msra.mxu0 %v16044_v30  ;;  %10143 = vmatpush1.bf16.msra.mxu1 %v16045_v51  ;;  %v14300_v60 = vsub.f32 %v5945_v49, %v14291_v35  ;;  %v14321_v14 = vand.u32 4294901760, %v14312_v22 }
 0x41b   :  { %9953 = vmatprep.subr.bf16.mxu0 %v16046_v61  ;;  %10145 = vmatprep.subr.bf16.mxu1 %v16047_v43 }
 0x41c   :  { %v14309_v41 = vand.u32 4294901760, %v14300_v60  ;;  %v6058_v21 = vsub.f32 %v14312_v22, %v14321_v14 }
 0x41e   :  { %9955 = vmatpush1.bf16.msra.mxu0 %v16048_v37  ;;  %10147 = vmatpush1.bf16.msra.mxu1 %v16049_v20  ;;  %v6047_v49 = vsub.f32 %v14300_v60, %v14309_v41  ;;  %v6059_v36 = vand.u32 4294901760, %v6058_v21  ;;  %v16187_v21 = vld [vmem:[#allocation85_spill] sm:$0xff] }
 0x41f   :  { %9957 = vmatprep.subr.bf16.mxu0 %v16050_v9  ;;  %10149 = vmatprep.subr.bf16.mxu1 %v16051_v13 }
 0x420   :  { %v6048_v33 = vand.u32 4294901760, %v6047_v49  ;;  %v16181_v49 = vld [vmem:[#allocation80_spill] sm:$0xff] }
 0x422   :  { %9959 = vmatpush1.bf16.msra.mxu0 %v16052_v7  ;;  %10151 = vmatpush1.bf16.msra.mxu1 %v16053_v16 }
 0x423   :  { %9961 = vmatprep.subr.bf16.mxu0 %v16054_v25  ;;  %10153 = vmatprep.subr.bf16.mxu1 %v16055_v8 }
 0x426   :  { %9963 = vmatpush1.bf16.msra.mxu0 %v16056_v15  ;;  %10155 = vmatpush1.bf16.msra.mxu1 %v16057_v31 }
 0x427   :  { %9965 = vmatprep.subr.bf16.mxu0 %v16058_v56  ;;  %10157 = vmatprep.subr.bf16.mxu1 %v16059_v23 }
 0x42a   :  { %9967 = vmatpush1.bf16.msra.mxu0 %v16060_v63  ;;  %10159 = vmatpush1.bf16.msra.mxu1 %v16061_v52 }
 0x42b   :  { %9969 = vmatprep.subr.bf16.mxu0 %v16062_v59  ;;  %10161 = vmatprep.subr.bf16.mxu1 %v16063_v1 }
 0x42e   :  { %9971 = vmatpush1.bf16.msra.mxu0 %v16070_v57  ;;  %10163 = vmatpush1.bf16.msra.mxu1 %v16071_v4 }
 0x42f   :  { %9973 = vmatprep.subr.bf16.mxu0 %v16176_v45  ;;  %10165 = vmatprep.subr.bf16.mxu1 %v16177_v3  ;;  %v16182_v3 = vld [vmem:[#allocation92_spill] sm:$0xff]  ;;  %v16183_v45 = vld [vmem:[#allocation106_spill] sm:$0xff] }
 0x431   :  { %6049 = vmatmul.mubr.f32.vlgmr.msra.gmra.mrb[56].mxu0 %v6048_v33  ;;  %6953 = vmatmul.mubr.f32.vlgmr.msra.gmra.mrb[56].mxu1 %v6048_v33  ;;  %v16184_v33 = vld [vmem:[#allocation107_spill] sm:$0xff] }
 0x432   :  { %9975 = vmatpush1.bf16.msra.mxu0 %v16178_v17  ;;  %10167 = vmatpush1.bf16.msra.mxu1 %v16179_v11  ;;  %v16185_v17 = vld [vmem:[#allocation39_spill] sm:$0xff]  ;;  %v16186_v11 = vld [vmem:[#allocation25_spill] sm:$0xff] }
 0x433   :  { %6054 = vmatprep.mubr.f32.mxu0 %v15998_v10  ;;  %6958 = vmatprep.mubr.f32.mxu1 %v15998_v10 }
 0x434   :  { %9977 = vmatprep.subr.bf16.mxu0 %v16180_v28  ;;  %10169 = vmatprep.subr.bf16.mxu1 %v16181_v49  ;;  %v16188_v28 = vld [vmem:[#allocation116_spill] sm:$0xff]  ;;  %v16189_v49 = vld [vmem:[#allocation118_spill] sm:$0xff] }
 0x435   :  { %6060 = vmatmul.mubr.f32.gmra.mrb[58].mxu0 %v6059_v36  ;;  %6964 = vmatmul.mubr.f32.gmra.mrb[58].mxu1 %v6059_v36  ;;  %v16190_v36 = vld [vmem:[#allocation121_spill] sm:$0xff] }
 0x436   :  { %9979 = vmatpush1.bf16.msra.mxu0 %v16182_v3  ;;  %10171 = vmatpush1.bf16.msra.mxu1 %v16183_v45  ;;  %v16191_v3 = vld [vmem:[#allocation126_spill] sm:$0xff]  ;;  %v16192_v45 = vld [vmem:[#allocation127_spill] sm:$0xff] }
 0x437   :  { %9981 = vmatprep.subr.bf16.mxu0 %v16184_v33  ;;  %10173 = vmatprep.subr.bf16.mxu1 %v16185_v17  ;;  %v16193_v33 = vld [vmem:[#allocation128_spill] sm:$0xff]  ;;  %v16194_v17 = vld [vmem:[#allocation129_spill] sm:$0xff] }
 0x438   :  { %6290 = vmatprep.mubr.f32.mxu0 %v15998_v10  ;;  %7194 = vmatprep.mubr.f32.mxu1 %v15998_v10 }
 0x43a   :  { %9983 = vmatpush1.bf16.msra.mxu0 %v16186_v11  ;;  %10175 = vmatpush1.bf16.msra.mxu1 %v16187_v21  ;;  %v16208_v11 = vld [vmem:[#allocation142_spill] sm:$0xff]  ;;  %v16209_v21 = vld [vmem:[#allocation143_spill] sm:$0xff] }
 0x43b   :  { %9985 = vmatprep.subr.bf16.mxu0 %v16188_v28  ;;  %10177 = vmatprep.subr.bf16.mxu1 %v16189_v49  ;;  %v16210_v28 = vld [vmem:[#allocation144_spill] sm:$0xff]  ;;  %v16211_v49 = vld [vmem:[#allocation145_spill] sm:$0xff] }
 0x43e   :  { %9987 = vmatpush1.bf16.msra.mxu0 %v16190_v36  ;;  %10179 = vmatpush1.bf16.msra.mxu1 %v16191_v3  ;;  %v16212_v36 = vld [vmem:[#allocation146_spill] sm:$0xff]  ;;  %v16213_v3 = vld [vmem:[#allocation147_spill] sm:$0xff] }
 0x43f   :  { %9989 = vmatprep.subr.bf16.mxu0 %v16192_v45  ;;  %10181 = vmatprep.subr.bf16.mxu1 %v16193_v33  ;;  %v16214_v45 = vld [vmem:[#allocation148_spill] sm:$0xff]  ;;  %v16215_v33 = vld [vmem:[#allocation149_spill] sm:$0xff] }
 0x442   :  { %9991 = vmatpush1.bf16.msra.mxu0 %v16194_v17  ;;  %10183 = vmatpush1.bf16.msra.mxu1 %v16195_v46  ;;  %v16207_v46 = vld [vmem:[#allocation141_spill] sm:$0xff]  ;;  %v16216_v17 = vld [vmem:[#allocation150_spill] sm:$0xff] }
 0x443   :  { %9993 = vmatprep.subr.bf16.mxu0 %v16015_v2  ;;  %10185 = vmatprep.subr.bf16.mxu1 %v16016_v55  ;;  %v16196_v2 = vld [vmem:[#allocation131_spill] sm:$0xff]  ;;  %v16197_v55 = vld [vmem:[#allocation132_spill] sm:$0xff] }
 0x446   :  { %9995 = vmatpush1.bf16.msra.mxu0 %v16017_v40  ;;  %10187 = vmatpush1.bf16.msra.mxu1 %v16018_v12  ;;  %v16198_v40 = vld [vmem:[#allocation133_spill] sm:$0xff] }
 0x447   :  { %9997 = vmatprep.subr.bf16.mxu0 %v13646_v0  ;;  %10189 = vmatprep.subr.bf16.mxu1 %v13652_v50  ;;  %v16199_v50 = vld [vmem:[#allocation73_spill] sm:$0xff]  ;;  %v16201_v0 = vld [vmem:[#allocation135_spill] sm:$0xff] }
 0x448   :  { %v16203_v12 = vld [vmem:[#allocation137_spill] sm:$0xff] }
 0x44a   :  { %9999 = vmatpush1.bf16.msra.mxu0 %v13654_v38  ;;  %10191 = vmatpush1.bf16.msra.mxu1 %v13935_v19  ;;  %v16200_v38 = vld [vmem:[#allocation134_spill] sm:$0xff]  ;;  %v16202_v19 = vld [vmem:[#allocation136_spill] sm:$0xff] }
 0x44b   :  { %10001 = vmatprep.subr.bf16.mxu0 %v13941_v27  ;;  %10193 = vmatprep.subr.bf16.mxu1 %v13943_v58  ;;  %v16204_v27 = vld [vmem:[#allocation138_spill] sm:$0xff]  ;;  %v16205_v58 = vld [vmem:[#allocation139_spill] sm:$0xff] }
 0x44e   :  { %10003 = vmatpush1.bf16.msra.mxu0 %v13947_v39  ;;  %10195 = vmatpush1.bf16.msra.mxu1 %v16196_v2  ;;  %v16206_v39 = vld [vmem:[#allocation140_spill] sm:$0xff]  ;;  %v16217_v2 = vld [vmem:[#allocation35_spill] sm:$0xff] }
 0x44f   :  { %10005 = vmatprep.subr.bf16.mxu0 %v16197_v55  ;;  %10197 = vmatprep.subr.bf16.mxu1 %v16198_v40  ;;  %v16218_v55 = vld [vmem:[#allocation26_spill] sm:$0xff]  ;;  %v16219_v40 = vld [vmem:[#allocation41_spill] sm:$0xff] }
 0x451   :  { %6292 = vmatmul.mubr.f32.vlgmr.msra.gmra.mrb[56].mxu0 %v14291_v35  ;;  %7196 = vmatmul.mubr.f32.vlgmr.msra.gmra.mrb[56].mxu1 %v14291_v35 }
 0x452   :  { %10007 = vmatpush1.bf16.msra.mxu0 %v16199_v50  ;;  %10199 = vmatpush1.bf16.msra.mxu1 %v16200_v38  ;;  %v16220_v50 = vld [vmem:[#allocation43_spill] sm:$0xff]  ;;  %v16221_v38 = vld [vmem:[#allocation40_spill] sm:$0xff] }
 0x453   :  { %6297 = vmatprep.mubr.f32.mxu0 %v15998_v10  ;;  %7201 = vmatprep.mubr.f32.mxu1 %v15998_v10 }
 0x454   :  { %10009 = vmatprep.subr.bf16.mxu0 %v16201_v0  ;;  %10201 = vmatprep.subr.bf16.mxu1 %v16202_v19  ;;  %v16222_v0 = vld [vmem:[#allocation44_spill] sm:$0xff]  ;;  %v16223_v19 = vld [vmem:[#allocation45_spill] sm:$0xff] }
 0x455   :  { %6299 = vmatmul.mubr.f32.gmra.mrb[58].mxu0 %v14302_v62  ;;  %7203 = vmatmul.mubr.f32.gmra.mrb[58].mxu1 %v14302_v62 }
 0x456   :  { %10011 = vmatpush1.bf16.msra.mxu0 %v16203_v12  ;;  %10203 = vmatpush1.bf16.msra.mxu1 %v16204_v27  ;;  %v16224_v12 = vld [vmem:[#allocation70_spill] sm:$0xff]  ;;  %v16225_v27 = vld [vmem:[#allocation23_spill] sm:$0xff] }
 0x457   :  { %10013 = vmatprep.subr.bf16.mxu0 %v16205_v58  ;;  %10205 = vmatprep.subr.bf16.mxu1 %v16206_v39  ;;  %v16226_v58 = vld [vmem:[#allocation86_spill] sm:$0xff]  ;;  %v16227_v39 = vld [vmem:[#allocation104_spill] sm:$0xff] }
 0x458   :  { %6433 = vmatprep.mubr.f32.mxu0 %v15998_v10  ;;  %7337 = vmatprep.mubr.f32.mxu1 %v15998_v10 }
 0x45a   :  { %10015 = vmatpush1.bf16.msra.mxu0 %v16207_v46  ;;  %10207 = vmatpush1.bf16.msra.mxu1 %v16208_v11  ;;  %v16228_v46 = vld [vmem:[#allocation105_spill] sm:$0xff] }
 0x45b   :  { %10017 = vmatprep.subr.bf16.mxu0 %v16209_v21  ;;  %10209 = vmatprep.subr.bf16.mxu1 %v16210_v28  ;;  %v16231_v11 = vld [vmem:[#allocation49_spill] sm:$0xff]  ;;  %v16233_v28 = vld [vmem:[#allocation15_spill] sm:$0xff] }
 0x45c   :  { %v16232_v21 = vld [vmem:[#allocation5_spill] sm:$0xff] }
 0x45e   :  { %10019 = vmatpush1.bf16.msra.mxu0 %v16211_v49  ;;  %10211 = vmatpush1.bf16.msra.mxu1 %v16212_v36  ;;  %v16234_v49 = vld [vmem:[#allocation9_spill] sm:$0xff] }
 0x45f   :  { %10021 = vmatprep.subr.bf16.mxu0 %v16213_v3  ;;  %10213 = vmatprep.subr.bf16.mxu1 %v16214_v45  ;;  %v16235_v36 = vld [vmem:[#allocation17_spill] sm:$0xff]  ;;  %v16236_v3 = vld [vmem:[#allocation151_spill] sm:$0xff]  ;;  %v16238_v45 = vld [vmem:[#allocation20_spill] sm:$0xff] }
 0x462   :  { %10023 = vmatpush1.bf16.msra.mxu0 %v16215_v33  ;;  %10215 = vmatpush1.bf16.msra.mxu1 %v16216_v17  ;;  %v16239_v33 = vld [vmem:[#allocation11_spill] sm:$0xff]  ;;  %v16240_v17 = vld [vmem:[#allocation21_spill] sm:$0xff] }
 0x463   :  { %10025 = vmatprep.subr.bf16.mxu0 %v16217_v2  ;;  %10217 = vmatprep.subr.bf16.mxu1 %v16218_v55  ;;  %v16241_v2 = vld [vmem:[#allocation10_spill] sm:$0xff]  ;;  %v16242_v55 = vld [vmem:[#allocation24_spill] sm:$0xff] }
 0x466   :  { %10027 = vmatpush1.bf16.msra.mxu0 %v16219_v40  ;;  %10219 = vmatpush1.bf16.msra.mxu1 %v16220_v50  ;;  %v16244_v40 = vld [vmem:[#allocation27_spill] sm:$0xff]  ;;  %v16245_v50 = vld [vmem:[#allocation46_spill] sm:$0xff] }
 0x467   :  { %10029 = vmatprep.subr.bf16.mxu0 %v16221_v38  ;;  %10221 = vmatprep.subr.bf16.mxu1 %v16222_v0  ;;  %v16246_v38 = vld [vmem:[#allocation61_spill] sm:$0xff]  ;;  %v16247_v0 = vld [vmem:[#allocation63_spill] sm:$0xff] }
 0x46a   :  { %10031 = vmatpush1.bf16.msra.mxu0 %v16223_v19  ;;  %10223 = vmatpush1.bf16.msra.mxu1 %v16224_v12  ;;  %v16248_v19 = vld [vmem:[#allocation69_spill] sm:$0xff]  ;;  %v16249_v12 = vld [vmem:[#allocation78_spill] sm:$0xff] }
 0x46b   :  { %10033 = vmatprep.subr.bf16.mxu0 %v16225_v27  ;;  %10225 = vmatprep.subr.bf16.mxu1 %v16226_v58  ;;  %v16254_v27 = vld [vmem:[#allocation97_spill] sm:$0xff]  ;;  %v16255_v58 = vld [vmem:[#allocation98_spill] sm:$0xff] }
 0x46e   :  { %10035 = vmatpush1.bf16.msra.mxu0 %v16227_v39  ;;  %10227 = vmatpush1.bf16.msra.mxu1 %v16228_v46  ;;  %v16256_v39 = vld [vmem:[#allocation152_spill] sm:$0xff] }
 0x46f   :  { %10037 = vmatprep.subr.bf16.mxu0 %v16032_v42  ;;  %10229 = vmatprep.subr.bf16.mxu1 %v16033_v6 }
 0x471   :  { %6436 = vmatmul.mubr.f32.vlgmr.msra.gmra.mrb[56].mxu0 %v14300_v60  ;;  %7340 = vmatmul.mubr.f32.vlgmr.msra.gmra.mrb[56].mxu1 %v14300_v60  ;;  %v16229_v60 = vld [vmem:[#allocation12_spill] sm:$0xff] }
 0x472   :  { %10039 = vmatpush1.bf16.msra.mxu0 %v16035_v29  ;;  %10231 = vmatpush1.bf16.msra.mxu1 %v16036_v5 }
 0x473   :  { %6441 = vmatprep.mubr.f32.mxu0 %v15998_v10  ;;  %7345 = vmatprep.mubr.f32.mxu1 %v15998_v10 }
 0x474   :  { %10041 = vmatprep.subr.bf16.mxu0 %v16037_v32  ;;  %10233 = vmatprep.subr.bf16.mxu1 %v16038_v53 }
 0x475   :  { %6444 = vmatmul.mubr.f32.gmra.mrb[58].mxu0 %v14312_v22  ;;  %7348 = vmatmul.mubr.f32.gmra.mrb[58].mxu1 %v14312_v22  ;;  %v16230_v22 = vld [vmem:[#allocation13_spill] sm:$0xff] }
 0x476   :  { %10043 = vmatpush1.bf16.msra.mxu0 %v16040_v47  ;;  %10235 = vmatpush1.bf16.msra.mxu1 %v16041_v44 }
 0x477   :  { %10045 = vmatprep.subr.bf16.mxu0 %v16042_v48  ;;  %10237 = vmatprep.subr.bf16.mxu1 %v16043_v34 }
 0x478   :  { %6546 = vmatprep.mubr.f32.mxu0 %v15998_v10  ;;  %7450 = vmatprep.mubr.f32.mxu1 %v15998_v10 }
 0x47a   :  { %10047 = vmatpush1.bf16.msra.mxu0 %v16044_v30  ;;  %10239 = vmatpush1.bf16.msra.mxu1 %v16045_v51 }
 0x47b   :  { %10049 = vmatprep.subr.bf16.mxu0 %v16046_v61  ;;  %10241 = vmatprep.subr.bf16.mxu1 %v16047_v43 }
 0x47e   :  { %10051 = vmatpush1.bf16.msra.mxu0 %v16048_v37  ;;  %10243 = vmatpush1.bf16.msra.mxu1 %v16049_v20 }
 0x47f   :  { %10053 = vmatprep.subr.bf16.mxu0 %v16050_v9  ;;  %10245 = vmatprep.subr.bf16.mxu1 %v16051_v13 }
 0x482   :  { %10055 = vmatpush1.bf16.msra.mxu0 %v16052_v7  ;;  %10247 = vmatpush1.bf16.msra.mxu1 %v16053_v16 }
 0x483   :  { %10057 = vmatprep.subr.bf16.mxu0 %v16054_v25  ;;  %10249 = vmatprep.subr.bf16.mxu1 %v16055_v8 }
 0x486   :  { %10059 = vmatpush1.bf16.msra.mxu0 %v16056_v15  ;;  %10251 = vmatpush1.bf16.msra.mxu1 %v16057_v31 }
 0x487   :  { %10061 = vmatprep.subr.bf16.mxu0 %v16058_v56  ;;  %10253 = vmatprep.subr.bf16.mxu1 %v16059_v23 }
 0x48a   :  { %10063 = vmatpush1.bf16.msra.mxu0 %v16060_v63  ;;  %10255 = vmatpush1.bf16.msra.mxu1 %v16061_v52 }
 0x48b   :  { %10065 = vmatprep.subr.bf16.mxu0 %v16062_v59  ;;  %10257 = vmatprep.subr.bf16.mxu1 %v16063_v1 }
 0x48e   :  { %10067 = vmatpush1.bf16.msra.mxu0 %v16070_v57  ;;  %10259 = vmatpush1.bf16.msra.mxu1 %v16071_v4 }
 0x48f   :  { %10069 = vmatprep.subr.bf16.mxu0 %v16229_v60  ;;  %10261 = vmatprep.subr.bf16.mxu1 %v16230_v22 }
 0x491   :  { %6550 = vmatmul.mubr.f32.vlgmr.msra.gmra.mrb[56].mxu0 %v14309_v41  ;;  %7454 = vmatmul.mubr.f32.vlgmr.msra.gmra.mrb[56].mxu1 %v14309_v41  ;;  %v16237_v41 = vld [vmem:[#allocation6_spill] sm:$0xff] }
 0x492   :  { %10071 = vmatpush1.bf16.msra.mxu0 %v16231_v11  ;;  %10263 = vmatpush1.bf16.msra.mxu1 %v16232_v21 }
 0x493   :  { %6555 = vmatprep.mubr.f32.mxu0 %v15998_v10  ;;  %7459 = vmatprep.mubr.f32.mxu1 %v15998_v10 }
 0x494   :  { %10073 = vmatprep.subr.bf16.mxu0 %v16233_v28  ;;  %10265 = vmatprep.subr.bf16.mxu1 %v16234_v49 }
 0x495   :  { %6559 = vmatmul.mubr.f32.gmra.mrb[58].mxu0 %v14321_v14  ;;  %7463 = vmatmul.mubr.f32.gmra.mrb[58].mxu1 %v14321_v14  ;;  %v16243_v14 = vld [vmem:[#allocation16_spill] sm:$0xff] }
 0x496   :  { %10075 = vmatpush1.bf16.msra.mxu0 %v16235_v36  ;;  %10267 = vmatpush1.bf16.msra.mxu1 %v16236_v3 }
 0x497   :  { %10077 = vmatprep.subr.bf16.mxu0 %v16237_v41  ;;  %10269 = vmatprep.subr.bf16.mxu1 %v16238_v45 }
 0x498   :  { %6725 = vmatprep.mubr.f32.mxu0 %v15998_v10  ;;  %7629 = vmatprep.mubr.f32.mxu1 %v15998_v10 }
 0x49a   :  { %10079 = vmatpush1.bf16.msra.mxu0 %v16239_v33  ;;  %10271 = vmatpush1.bf16.msra.mxu1 %v16240_v17 }
 0x49b   :  { %10081 = vmatprep.subr.bf16.mxu0 %v16241_v2  ;;  %10273 = vmatprep.subr.bf16.mxu1 %v16242_v55 }
 0x49e   :  { %10083 = vmatpush1.bf16.msra.mxu0 %v14171_v18  ;;  %10275 = vmatpush1.bf16.msra.mxu1 %v14177_v24  ;;  %v16250_v18 = vld [vmem:[#allocation22_spill] sm:$0xff]  ;;  %v16251_v24 = vld [vmem:[#allocation48_spill] sm:$0xff] }
 0x49f   :  { %10085 = vmatprep.subr.bf16.mxu0 %v14185_v26  ;;  %10277 = vmatprep.subr.bf16.mxu1 %v14191_v54  ;;  %v16252_v26 = vld [vmem:[#allocation91_spill] sm:$0xff]  ;;  %v16253_v54 = vld [vmem:[#allocation94_spill] sm:$0xff] }
 0x4a2   :  { %10087 = vmatpush1.bf16.msra.mxu0 %v16243_v14  ;;  %10279 = vmatpush1.bf16.msra.mxu1 %v16244_v40 }
 0x4a3   :  { %10089 = vmatprep.subr.bf16.mxu0 %v16245_v50  ;;  %10281 = vmatprep.subr.bf16.mxu1 %v16246_v38 }
 0x4a6   :  { %10091 = vmatpush1.bf16.msra.mxu0 %v16247_v0  ;;  %10283 = vmatpush1.bf16.msra.mxu1 %v16248_v19 }
 0x4a7   :  { %10093 = vmatprep.subr.bf16.mxu0 %v16249_v12  ;;  %10285 = vmatprep.subr.bf16.mxu1 %v16250_v18 }
 0x4aa   :  { %10095 = vmatpush1.bf16.msra.mxu0 %v16251_v24  ;;  %10287 = vmatpush1.bf16.msra.mxu1 %v16252_v26 }
 0x4ab   :  { %10097 = vmatprep.subr.bf16.mxu0 %v16253_v54  ;;  %10289 = vmatprep.subr.bf16.mxu1 %v16254_v27 }
 0x4ae   :  { %10099 = vmatpush1.bf16.msra.mxu0 %v16255_v58  ;;  %10291 = vmatpush1.bf16.msra.mxu1 %v16256_v39 }
 0x4af   :  { %10101 = vmatprep.subr.bf16.mxu0 %v16032_v42  ;;  %10293 = vmatprep.subr.bf16.mxu1 %v16033_v6  ;;  %v16263_v42 = vld [vmem:[#allocation55_spill] sm:$0xff] }
 0x4b1   :  { %6727 = vmatmul.mubr.f32.vlgmr.msra.gmra.mrb[56].mxu0 %v14291_v35  ;;  %7631 = vmatmul.mubr.f32.vlgmr.msra.gmra.mrb[56].mxu1 %v14291_v35 }
 0x4b2   :  { %10103 = vmatpush1.bf16.msra.mxu0 %v16035_v29  ;;  %10295 = vmatpush1.bf16.msra.mxu1 %v16036_v5  ;;  %v16264_v29 = vld [vmem:[#allocation64_spill] sm:$0xff] }
 0x4b3   :  { %6732 = vmatprep.mubr.f32.mxu0 %v15998_v10  ;;  %7636 = vmatprep.mubr.f32.mxu1 %v15998_v10 }
 0x4b4   :  { %10105 = vmatprep.subr.bf16.mxu0 %v16037_v32  ;;  %10297 = vmatprep.subr.bf16.mxu1 %v16038_v53  ;;  %v7773_v32 = vlaneseq }
 0x4b5   :  { %6734 = vmatmul.mubr.f32.gmra.mrb[58].mxu0 %v14302_v62  ;;  %7638 = vmatmul.mubr.f32.gmra.mrb[58].mxu1 %v14302_v62 }
 0x4b6   :  { %10107 = vmatpush1.bf16.msra.mxu0 %v16040_v47  ;;  %10299 = vmatpush1.bf16.msra.mxu1 %v16041_v44  ;;  %v7774_v53 = vshrl.u32 %v7773_v32, 7 }
 0x4b7   :  { %10109 = vmatprep.subr.bf16.mxu0 %v16042_v48  ;;  %10301 = vmatprep.subr.bf16.mxu1 %v16043_v34  ;;  %v7771_v48 = vld [vmem:[%s14571_s4] sm:$0xf] }
 0x4b8   :  { %6836 = vmatprep.mubr.f32.mxu0 %v15998_v10  ;;  %7740 = vmatprep.mubr.f32.mxu1 %v15998_v10  ;;  %v7775_v47 = vsub.s32 0, %v7774_v53  ;;  %v7783_v44 = vsub.s32 2, %v7774_v53  ;;  %v7779_v34 = vsub.s32 1, %v7774_v53 }
 0x4ba   :  { %10111 = vmatpush1.bf16.msra.mxu0 %v16044_v30  ;;  %10303 = vmatpush1.bf16.msra.mxu1 %v16045_v51  ;;  %v7787_v30 = vsub.s32 3, %v7774_v53  ;;  %v7801_v51 = vld [vmem:[%s14572_s5] sm:$0xf]  ;;  %v7780_v60 = vrot.slane %v7771_v48, %v7779_v34 }
 0x4bb   :  { %10113 = vmatprep.subr.bf16.mxu0 %v16046_v61  ;;  %10305 = vmatprep.subr.bf16.mxu1 %v16047_v43  ;;  %v7806_v21 = vrot.slane %v7801_v51, %v7775_v47  ;;  %v7814_v49 = vrot.slane %v7801_v51, %v7783_v44  ;;  %v7810_v45 = vrot.slane %v7801_v51, %v7779_v34 }
 0x4bc   :  { %v7788_v22 = vrot.slane %v7771_v48, %v7787_v30  ;;  %v7818_v17 = vrot.slane %v7801_v51, %v7787_v30 }
 0x4be   :  { %10115 = vmatpush1.bf16.msra.mxu0 %v16048_v37  ;;  %10307 = vmatpush1.bf16.msra.mxu1 %v16049_v20  ;;  %v16262_v20 = vld [vmem:[#allocation62_spill] sm:$0xff]  ;;  %v7776_v37 = vrot.slane %v7771_v48, %v7775_v47 }
 0x4bf   :  { %10117 = vmatprep.subr.bf16.mxu0 %v16050_v9  ;;  %10309 = vmatprep.subr.bf16.mxu1 %v16051_v13  ;;  %v16261_v9 = vld [vmem:[#allocation53_spill] sm:$0xff] }
 0x4c2   :  { %10119 = vmatpush1.bf16.msra.mxu0 %v16052_v7  ;;  %10311 = vmatpush1.bf16.msra.mxu1 %v16053_v16 }
 0x4c3   :  { %10121 = vmatprep.subr.bf16.mxu0 %v16054_v25  ;;  %10313 = vmatprep.subr.bf16.mxu1 %v16055_v8  ;;  %v16258_v8 = vld [vmem:[#allocation59_spill] sm:$0xff] }
 0x4c6   :  { %10123 = vmatpush1.bf16.msra.mxu0 %v16056_v15  ;;  %10315 = vmatpush1.bf16.msra.mxu1 %v16057_v31  ;;  %v16257_v15 = vld [vmem:[#allocation50_spill] sm:$0xff] }
 0x4c7   :  { %10125 = vmatprep.subr.bf16.mxu0 %v16058_v56  ;;  %10317 = vmatprep.subr.bf16.mxu1 %v16059_v23 }
 0x4ca   :  { %10127 = vmatpush1.bf16.msra.mxu0 %v16060_v63  ;;  %10319 = vmatpush1.bf16.msra.mxu1 %v16061_v52  ;;  %v16260_v52 = vld [vmem:[#allocation60_spill] sm:$0xff] }
 0x4cb   :  { %10129 = vmatprep.subr.bf16.mxu0 %v16062_v59  ;;  %10321 = vmatprep.subr.bf16.mxu1 %v16063_v1  ;;  %v16259_v1 = vld [vmem:[#allocation52_spill] sm:$0xff] }
 0x4ce   :  { %10131 = vmatpush1.bf16.msra.mxu0 %v16070_v57  ;;  %10323 = vmatpush1.bf16.msra.mxu1 %v16071_v4 }
 0x4d1   :  { %6838 = vmatmul.mubr.f32.vlgmr.msra.gmra.mrb[56].mxu0 %v14291_v35  ;;  %7742 = vmatmul.mubr.f32.vlgmr.msra.gmra.mrb[56].mxu1 %v14291_v35  ;;  %v7784_v35 = vrot.slane %v7771_v48, %v7783_v44 }
 0x4d2   :  { %6843 = vmatprep.mubr.f32.mxu0 %v15998_v10  ;;  %7747 = vmatprep.mubr.f32.mxu1 %v15998_v10 }
 0x4d5   :  { %6845 = vmatmul.mubr.f32.gmra.mrb[58].mxu0 %v14302_v62  ;;  %7749 = vmatmul.mubr.f32.gmra.mrb[58].mxu1 %v14302_v62 }
 0x4e4   :  { %v5029_v16 = vpop.f32.mrb[52].mxu0  ;;  %v5933_v31 = vpop.f32.mrb[52].mxu1 }
 0x4e5   :  { %v7755_v25 = vmul.f32 %v5029_v16, %v16257_v15  ;;  %v7757_v56 = vmul.f32 %v5933_v31, %v16258_v8  ;;  %v5031_v57 = vpop.f32.mrb[53].mxu0  ;;  %v5935_v4 = vpop.f32.mrb[53].mxu1 }
 0x4e6   :  { %v7756_v59 = vmul.f32 %v5031_v57, %v16259_v1  ;;  %v7758_v63 = vmul.f32 %v5935_v4, %v16260_v52 }
 0x4e8   :  { %v5036_v23 = vpop.f32.mrb[54].mxu0  ;;  %v5940_v13 = vpop.f32.mrb[54].mxu1 }
 0x4e9   :  { %v7759_v10 = vmul.f32 %v5036_v23, %v16261_v9  ;;  %v7761_v7 = vmul.f32 %v5940_v13, %v16262_v20  ;;  %v5038_v43 = vpop.f32.mrb[55].mxu0  ;;  %v5942_v61 = vpop.f32.mrb[55].mxu1 }
 0x4ea   :  { %v7760_v6 = vmul.f32 %v5038_v43, %v16263_v42  ;;  %v7762_v5 = vmul.f32 %v5942_v61, %v16264_v29 }
 0x5a4   :  { %v6839_v62 = vpop.f32.mrb[56].mxu0  ;;  %v7743_v46 = vpop.f32.mrb[56].mxu1 }
 0x5a5   :  { %v7763_v11 = vsub.f32 %v7755_v25, %v6839_v62  ;;  %v7765_v28 = vsub.f32 %v7757_v56, %v7743_v46  ;;  %v6841_v36 = vpop.f32.mrb[57].mxu0  ;;  %v7745_v3 = vpop.f32.mrb[57].mxu1 }
 0x5a6   :  { %v7764_v41 = vsub.f32 %v7756_v59, %v6841_v36  ;;  %v7766_v33 = vsub.f32 %v7758_v63, %v7745_v3 }
 0x5a7   :  { %v7793_v2 = vmul.f32 %v7776_v37, %v7763_v11  ;;  %v7795_v55 = vmul.f32 %v7784_v35, %v7765_v28 }
 0x5a8   :  { %v7794_v14 = vmul.f32 %v7780_v60, %v7764_v41  ;;  %v7796_v40 = vmul.f32 %v7788_v22, %v7766_v33  ;;  %v6846_v50 = vpop.f32.mrb[58].mxu0  ;;  %v7750_v38 = vpop.f32.mrb[58].mxu1 }
 0x5a9   :  { %v7823_v0 = vadd.f32 %v7806_v21, %v7793_v2  ;;  %v7825_v19 = vadd.f32 %v7814_v49, %v7795_v55  ;;  %v7767_v12 = vsub.f32 %v7759_v10, %v6846_v50  ;;  %v7769_v18 = vsub.f32 %v7761_v7, %v7750_v38  ;;  %v6848_v24 = vpop.f32.mrb[59].mxu0  ;;  %v7752_v26 = vpop.f32.mrb[59].mxu1 }
 0x5aa   :  { %v7824_v54 = vadd.f32 %v7810_v45, %v7794_v14  ;;  %v7826_v27 = vadd.f32 %v7818_v17, %v7796_v40  ;;  %v7768_v58 = vsub.f32 %v7760_v6, %v6848_v24  ;;  %v7770_v39 = vsub.f32 %v7762_v5, %v7752_v26 }
 0x5ab   :  { %7831 = vst [vmem:[%s14573_s6] sm:$0xff] %v7823_v0  ;;  %7833 = vst [vmem:[%s14573_s6 + $0x10] sm:$0xff] %v7825_v19  ;;  %v7797_v16 = vmul.f32 %v7776_v37, %v7767_v12  ;;  %v7799_v31 = vmul.f32 %v7784_v35, %v7769_v18 }
 0x5ac   :  { %7832 = vst [vmem:[%s14573_s6 + $0x8] sm:$0xff] %v7824_v54  ;;  %7834 = vst [vmem:[%s14573_s6 + $0x18] sm:$0xff] %v7826_v27  ;;  %v7798_v15 = vmul.f32 %v7780_v60, %v7768_v58  ;;  %v7800_v25 = vmul.f32 %v7788_v22, %v7770_v39 }
 0x5ad   :  { %v7827_v8 = vadd.f32 %v7806_v21, %v7797_v16  ;;  %v7829_v56 = vadd.f32 %v7814_v49, %v7799_v31 }
 0x5ae   :  { %v7828_v57 = vadd.f32 %v7810_v45, %v7798_v15  ;;  %v7830_v4 = vadd.f32 %v7818_v17, %v7800_v25 }
 0x5af   :  { %7835 = vst [vmem:[%s14573_s6 + $0x20] sm:$0xff] %v7827_v8  ;;  %7837 = vst [vmem:[%s14573_s6 + $0x30] sm:$0xff] %v7829_v56 }
 0x5b0   :  { %7836 = vst [vmem:[%s14573_s6 + $0x28] sm:$0xff] %v7828_v57  ;;  %7838 = vst [vmem:[%s14573_s6 + $0x38] sm:$0xff] %v7830_v4 }
 0x5b1   :  { %7843 = vsyncpa [#allocation3], 1 }

</bundles_post_ra>
